<compile_context>
chip_gen: v7x
topology: tpu7x:2x2x1
jax: 0.10.0
libtpu: 0.0.40
codegen_flags: <defaults>
</compile_context>

<pallas_src>
import math

import jax
import jax.numpy as jnp
from jax.experimental import pallas as pl
from jax.experimental.pallas import tpu as pltpu

# ---------------------------------------------------------------------------
# Layer widths for n_feats=5, feats_scale=4 (matches the PyTorch module).
# ---------------------------------------------------------------------------
N_FEATS = 5
FEATS_SCALE = 4
DIMS = [
    N_FEATS,
    8 * FEATS_SCALE,    # 32
    16 * FEATS_SCALE,   # 64
    32 * FEATS_SCALE,   # 128
    64 * FEATS_SCALE,   # 256
    32 * FEATS_SCALE,   # 128
    16 * FEATS_SCALE,   # 64
    1,
]
N_LAYERS = len(DIMS) - 1        # 7
MAX_WIDTH = max(DIMS[1:])       # 256

_TARGET_TILE = 2048             # target batch-tile width on the lane axis


def _round_up(v, m):
    return ((v + m - 1) // m) * m


# Packed weight slab layout: layer l's (out, in) weight lives in rows
# [W_ROW_OFF[l], W_ROW_OFF[l] + DIMS[l+1]) and columns [0, DIMS[l]).
# Row pads are multiples of 16 (bf16 sublane tile), so every slice offset is aligned.
_W_ROW_PAD = [_round_up(DIMS[l + 1], 16) for l in range(N_LAYERS)]
W_ROW_OFF = [sum(_W_ROW_PAD[:l]) for l in range(N_LAYERS)]
W_SLAB_ROWS = sum(_W_ROW_PAD)                    # 688
W_SLAB_COLS = _round_up(max(DIMS[:-1]), 128)     # 256
B_SLAB_COLS = _round_up(N_LAYERS, 8)             # 8  (bias of layer l in column l)


# ---------------------------------------------------------------------------
# Tile planning (all at trace time; shapes are static under jit).
# ---------------------------------------------------------------------------
def _plan_tiles(batch):
    """Return (padded_batch, batch_tile, lane_sub_chunks_per_tile)."""
    b_pad = _round_up(batch, 256)
    if b_pad <= 512:
        tile = b_pad                              # tiny batches: a single small tile
    else:
        b_pad = _round_up(batch, 512)
        tile = 512
        # Largest tile that still leaves >= 2 grid steps (so v7x's 2 TCs both work).
        for t in (_TARGET_TILE, 1024):
            if b_pad % t == 0 and b_pad // t >= 2:
                tile = t
                break
    if tile <= 256:
        n_chunks = 1
    elif tile <= 1024:
        n_chunks = 2                              # 256-512 lane sub-chunks
    else:
        n_chunks = 4                              # 512 lane sub-chunks
    return b_pad, tile, n_chunks


# ---------------------------------------------------------------------------
# Kernel: whole MLP for one batch tile, batch on lanes, chunked for MXU overlap.
# ---------------------------------------------------------------------------
def _make_mlp_kernel(b_tile, n_chunks):
    chunk = b_tile // n_chunks                    # multiple of 128 by construction

    def mlp_kernel(x_ref, w_ref, b_ref, o_ref, h_ref):
        # x_ref: (b_tile, N_FEATS) f32            -- raw input layout, streamed per step
        # w_ref: (W_SLAB_ROWS, W_SLAB_COLS) bf16  -- packed (out, in) weights, resident
        # b_ref: (MAX_WIDTH, B_SLAB_COLS) f32     -- bias of layer l in column l, resident
        # o_ref: (1, b_tile) f32                  -- lane-dense output
        # h_ref: (MAX_WIDTH, b_tile) bf16 scratch -- activations (features, batch), reused
        for l in range(N_LAYERS):
            iw, ow = DIMS[l], DIMS[l + 1]
            ow_s = _W_ROW_PAD[l]                  # padded row count (== ow except last)
            off = W_ROW_OFF[l]                    # 16-aligned row offset into the slab
            w = w_ref[off:off + ow_s, 0:iw]       # (ow_s, iw) bf16; padded rows are zero
            b = b_ref[0:ow_s, l:l + 1]            # (ow_s, 1)  f32; padded rows are zero
            # Independent lane sub-chunks: the dots below share no data, so the
            # scheduler can overlap chunk c's drain/ReLU/store with chunk c+1's push.
            for c in range(n_chunks):
                cs = c * chunk
                if l == 0:
                    # Consume the untransposed x tile: contract the feature (lane) axes
                    # of W (out, in) and x (batch, feats) -> (ow_s, chunk); batch lands
                    # on lanes without any wrapper-side transpose of x.
                    xc = x_ref[cs:cs + chunk, :].astype(jnp.bfloat16)     # (chunk, 5)
                    acc = jax.lax.dot_general(
                        w, xc, (((1,), (1,)), ((), ())),
                        preferred_element_type=jnp.float32)
                else:
                    hc = h_ref[0:iw, cs:cs + chunk]                       # (iw, chunk)
                    acc = jnp.dot(w, hc, preferred_element_type=jnp.float32)
                acc = acc + b                                             # (ow_s, chunk)
                if l < N_LAYERS - 1:
                    h_ref[0:ow, cs:cs + chunk] = jnp.maximum(acc, 0.0).astype(h_ref.dtype)
                else:
                    o_ref[0:1, cs:cs + chunk] = acc[0:1, :]               # lane-dense f32

    return mlp_kernel


# ---------------------------------------------------------------------------
# Wrapper: PyTorch-layout (B, n_feats) in, (B, 1) out.
# ---------------------------------------------------------------------------
@jax.jit
def neural_nets_forward(x, w_slab, b_slab):
    B = x.shape[0]
    b_pad, tile, n_chunks = _plan_tiles(B)

    x = x.astype(jnp.float32)
    if b_pad != B:
        x = jnp.pad(x, ((0, b_pad - B), (0, 0)))   # zero rows -> garbage cols, sliced off

    out = pl.pallas_call(
        _make_mlp_kernel(tile, n_chunks),
        out_shape=jax.ShapeDtypeStruct((1, b_pad), jnp.float32),
        grid=(b_pad // tile,),
        in_specs=[
            pl.BlockSpec((tile, N_FEATS), lambda i: (i, 0)),             # streamed x tile
            pl.BlockSpec((W_SLAB_ROWS, W_SLAB_COLS), lambda i: (0, 0)),  # resident weights
            pl.BlockSpec((MAX_WIDTH, B_SLAB_COLS), lambda i: (0, 0)),    # resident biases
        ],
        out_specs=pl.BlockSpec((1, tile), lambda i: (0, i)),
        scratch_shapes=[pltpu.VMEM((MAX_WIDTH, tile), jnp.bfloat16)],
        compiler_params=pltpu.CompilerParams(
            dimension_semantics=("parallel",),        # shard batch tiles across v7x's 2 TCs
            vmem_limit_bytes=32 * 1024 * 1024,        # headroom over v5e's 16 MiB default
        ),
    )(x, w_slab, b_slab)

    return out[0, :B].reshape(B, 1)


# ---------------------------------------------------------------------------
# Parameter init (PyTorch nn.Linear default-style) and slab packing.
# ---------------------------------------------------------------------------
def init_params(key):
    """Weights in PyTorch layout (out, in); biases (out,)."""
    weights, biases = [], []
    for l in range(N_LAYERS):
        fan_in, fan_out = DIMS[l], DIMS[l + 1]
        key, kw, kb = jax.random.split(key, 3)
        bound = 1.0 / math.sqrt(fan_in)
        w = jax.random.uniform(kw, (fan_out, fan_in), jnp.float32, -bound, bound)
        b = jax.random.uniform(kb, (fan_out,), jnp.float32, -bound, bound)
        weights.append(w)
        biases.append(b)
    return weights, biases


def pack_params(weights, biases):
    w_slab = jnp.zeros((W_SLAB_ROWS, W_SLAB_COLS), jnp.bfloat16)
    b_slab = jnp.zeros((MAX_WIDTH, B_SLAB_COLS), jnp.float32)
    for l in range(N_LAYERS):
        iw, ow = DIMS[l], DIMS[l + 1]
        off = W_ROW_OFF[l]
        w_slab = w_slab.at[off:off + ow, 0:iw].set(weights[l].astype(jnp.bfloat16))
        b_slab = b_slab.at[0:ow, l].set(biases[l])
    return w_slab, b_slab


def reference_forward(x, weights, biases):
    """Pure-JAX reference mirroring the kernel math (bf16 weights/acts, f32 accum)."""
    h = x.astype(jnp.bfloat16)
    for l in range(N_LAYERS):
        w = weights[l].astype(jnp.bfloat16)               # (out, in)
        acc = jnp.dot(h, w.T, preferred_element_type=jnp.float32) + biases[l][None, :]
        if l < N_LAYERS - 1:
            h = jnp.maximum(acc, 0.0).astype(jnp.bfloat16)
        else:
            h = acc
    return h


if __name__ == "__main__":
    key = jax.random.PRNGKey(0)
    key, kx = jax.random.split(key)

    weights, biases = init_params(key)
    w_slab, b_slab = pack_params(weights, biases)

    def _check(batch, kseed):
        x = jax.random.normal(jax.random.fold_in(kx, kseed), (batch, N_FEATS),
                              dtype=jnp.float32)
        out = jax.block_until_ready(neural_nets_forward(x, w_slab, b_slab))
        ref = reference_forward(x, weights, biases)
        assert out.shape == (batch, 1), out.shape
        err = float(jnp.max(jnp.abs(out - ref)))
        assert jnp.allclose(out, ref, atol=5e-3, rtol=5e-3), err

    # Small primary check: 384 -> one 512-lane tile, 2 lane sub-chunks of 256.
    _check(384, 0)
    # Tiny-batch check: padded to a single 256-lane tile.
    _check(8, 1)
    # Larger check exercising the optimized path: 4000 -> 2 grid steps of
    # B_TILE=2048, each with 4 independent 512-lane sub-chunks.
    _check(4000, 2)

    print("KERNEL_OK")
</pallas_src>

<mosaic_0001>
module attributes {stable_mosaic.version = 11 : i64} {
  func.func @mlp_kernel(%arg0: i32, %arg1: memref<512x5xf32, #tpu.memory_space<vmem>>, %arg2: memref<688x256xbf16, #tpu.memory_space<vmem>>, %arg3: memref<256x8xf32, #tpu.memory_space<vmem>>, %arg4: memref<1x512xf32, #tpu.memory_space<vmem>>, %arg5: memref<256x512xbf16, #tpu.memory_space<vmem>>) attributes {dimension_semantics = [#tpu.dimension_semantics<parallel>], iteration_bounds = array<i64: 1>, scalar_prefetch = 0 : i64, scratch_operands = 1 : i64, tpu.core_type = #tpu.core_type<tc>, window_params = [{transform_indices = @transform_0, window_bounds = array<i64: 512, 5>}, {pipeline_mode = #tpu.pipeline_mode<synchronous>, transform_indices = @transform_1, window_bounds = array<i64: 688, 256>}, {pipeline_mode = #tpu.pipeline_mode<synchronous>, transform_indices = @transform_2, window_bounds = array<i64: 256, 8>}, {transform_indices = @transform_3, window_bounds = array<i64: 1, 512>}]} {
    %c0 = arith.constant 0 : index
    %c0_0 = arith.constant 0 : index
    %0 = vector.load %arg2[%c0, %c0_0] : memref<688x256xbf16, #tpu.memory_space<vmem>>, vector<32x5xbf16>
    %c0_1 = arith.constant 0 : index
    %c0_2 = arith.constant 0 : index
    %1 = vector.load %arg3[%c0_1, %c0_2] : memref<256x8xf32, #tpu.memory_space<vmem>>, vector<32x1xf32>
    %c0_3 = arith.constant 0 : index
    %c0_4 = arith.constant 0 : index
    %2 = vector.load %arg1[%c0_3, %c0_4] : memref<512x5xf32, #tpu.memory_space<vmem>>, vector<256x5xf32>
    %3 = arith.truncf %2 : vector<256x5xf32> to vector<256x5xbf16>
    %cst = arith.constant dense<0.000000e+00> : vector<32x256xf32>
    %4 = tpu.matmul %0, %3, %cst {dimension_numbers = #tpu.dot_dimension_numbers<[1], [1], [0], [0], [0, 0, 1, 0], [], []>} : vector<32x5xbf16>, vector<256x5xbf16>, vector<32x256xf32> -> vector<32x256xf32>
    %5 = vector.broadcast %1 : vector<32x1xf32> to vector<32x256xf32>
    %6 = arith.addf %4, %5 : vector<32x256xf32>
    %cst_5 = arith.constant 0.000000e+00 : f32
    %7 = vector.broadcast %cst_5 : f32 to vector<32x256xf32>
    %8 = arith.maximumf %6, %7 : vector<32x256xf32>
    %9 = arith.truncf %8 : vector<32x256xf32> to vector<32x256xbf16>
    %c0_6 = arith.constant 0 : index
    %c0_7 = arith.constant 0 : index
    %10 = vector.load %arg5[%c0_6, %c0_7] : memref<256x512xbf16, #tpu.memory_space<vmem>>, vector<32x256xbf16>
    tpu.vector_store %arg5[%c0_6, %c0_7], %9 {strides = array<i32>} : memref<256x512xbf16, #tpu.memory_space<vmem>>, vector<32x256xbf16>,
    %c256 = arith.constant 256 : index
    %c0_8 = arith.constant 0 : index
    %11 = vector.load %arg1[%c256, %c0_8] : memref<512x5xf32, #tpu.memory_space<vmem>>, vector<256x5xf32>
    %12 = arith.truncf %11 : vector<256x5xf32> to vector<256x5xbf16>
    %cst_9 = arith.constant dense<0.000000e+00> : vector<32x256xf32>
    %13 = tpu.matmul %0, %12, %cst_9 {dimension_numbers = #tpu.dot_dimension_numbers<[1], [1], [0], [0], [0, 0, 1, 0], [], []>} : vector<32x5xbf16>, vector<256x5xbf16>, vector<32x256xf32> -> vector<32x256xf32>
    %14 = vector.broadcast %1 : vector<32x1xf32> to vector<32x256xf32>
    %15 = arith.addf %13, %14 : vector<32x256xf32>
    %cst_10 = arith.constant 0.000000e+00 : f32
    %16 = vector.broadcast %cst_10 : f32 to vector<32x256xf32>
    %17 = arith.maximumf %15, %16 : vector<32x256xf32>
    %18 = arith.truncf %17 : vector<32x256xf32> to vector<32x256xbf16>
    %c0_11 = arith.constant 0 : index
    %c256_12 = arith.constant 256 : index
    %19 = vector.load %arg5[%c0_11, %c256_12] : memref<256x512xbf16, #tpu.memory_space<vmem>>, vector<32x256xbf16>
    tpu.vector_store %arg5[%c0_11, %c256_12], %18 {strides = array<i32>} : memref<256x512xbf16, #tpu.memory_space<vmem>>, vector<32x256xbf16>,
    %c32 = arith.constant 32 : index
    %c0_13 = arith.constant 0 : index
    %20 = vector.load %arg2[%c32, %c0_13] : memref<688x256xbf16, #tpu.memory_space<vmem>>, vector<64x32xbf16>
    %c0_14 = arith.constant 0 : index
    %c1 = arith.constant 1 : index
    %21 = vector.load %arg3[%c0_14, %c1] : memref<256x8xf32, #tpu.memory_space<vmem>>, vector<64x1xf32>
    %c0_15 = arith.constant 0 : index
    %c0_16 = arith.constant 0 : index
    %22 = vector.load %arg5[%c0_15, %c0_16] : memref<256x512xbf16, #tpu.memory_space<vmem>>, vector<32x256xbf16>
    %cst_17 = arith.constant dense<0.000000e+00> : vector<64x256xf32>
    %23 = tpu.matmul %20, %22, %cst_17 {dimension_numbers = #tpu.dot_dimension_numbers<[1], [0], [0], [1], [0, 0, 1, 1], [], []>} : vector<64x32xbf16>, vector<32x256xbf16>, vector<64x256xf32> -> vector<64x256xf32>
    %24 = vector.broadcast %21 : vector<64x1xf32> to vector<64x256xf32>
    %25 = arith.addf %23, %24 : vector<64x256xf32>
    %cst_18 = arith.constant 0.000000e+00 : f32
    %26 = vector.broadcast %cst_18 : f32 to vector<64x256xf32>
    %27 = arith.maximumf %25, %26 : vector<64x256xf32>
    %28 = arith.truncf %27 : vector<64x256xf32> to vector<64x256xbf16>
    %c0_19 = arith.constant 0 : index
    %c0_20 = arith.constant 0 : index
    %29 = vector.load %arg5[%c0_19, %c0_20] : memref<256x512xbf16, #tpu.memory_space<vmem>>, vector<64x256xbf16>
    tpu.vector_store %arg5[%c0_19, %c0_20], %28 {strides = array<i32>} : memref<256x512xbf16, #tpu.memory_space<vmem>>, vector<64x256xbf16>,
    %c0_21 = arith.constant 0 : index
    %c256_22 = arith.constant 256 : index
    %30 = vector.load %arg5[%c0_21, %c256_22] : memref<256x512xbf16, #tpu.memory_space<vmem>>, vector<32x256xbf16>
    %cst_23 = arith.constant dense<0.000000e+00> : vector<64x256xf32>
    %31 = tpu.matmul %20, %30, %cst_23 {dimension_numbers = #tpu.dot_dimension_numbers<[1], [0], [0], [1], [0, 0, 1, 1], [], []>} : vector<64x32xbf16>, vector<32x256xbf16>, vector<64x256xf32> -> vector<64x256xf32>
    %32 = vector.broadcast %21 : vector<64x1xf32> to vector<64x256xf32>
    %33 = arith.addf %31, %32 : vector<64x256xf32>
    %cst_24 = arith.constant 0.000000e+00 : f32
    %34 = vector.broadcast %cst_24 : f32 to vector<64x256xf32>
    %35 = arith.maximumf %33, %34 : vector<64x256xf32>
    %36 = arith.truncf %35 : vector<64x256xf32> to vector<64x256xbf16>
    %c0_25 = arith.constant 0 : index
    %c256_26 = arith.constant 256 : index
    %37 = vector.load %arg5[%c0_25, %c256_26] : memref<256x512xbf16, #tpu.memory_space<vmem>>, vector<64x256xbf16>
    tpu.vector_store %arg5[%c0_25, %c256_26], %36 {strides = array<i32>} : memref<256x512xbf16, #tpu.memory_space<vmem>>, vector<64x256xbf16>,
    %c96 = arith.constant 96 : index
    %c0_27 = arith.constant 0 : index
    %38 = vector.load %arg2[%c96, %c0_27] : memref<688x256xbf16, #tpu.memory_space<vmem>>, vector<128x64xbf16>
    %c0_28 = arith.constant 0 : index
    %c2 = arith.constant 2 : index
    %39 = vector.load %arg3[%c0_28, %c2] : memref<256x8xf32, #tpu.memory_space<vmem>>, vector<128x1xf32>
    %c0_29 = arith.constant 0 : index
    %c0_30 = arith.constant 0 : index
    %40 = vector.load %arg5[%c0_29, %c0_30] : memref<256x512xbf16, #tpu.memory_space<vmem>>, vector<64x256xbf16>
    %cst_31 = arith.constant dense<0.000000e+00> : vector<128x256xf32>
    %41 = tpu.matmul %38, %40, %cst_31 {dimension_numbers = #tpu.dot_dimension_numbers<[1], [0], [0], [1], [0, 0, 1, 1], [], []>} : vector<128x64xbf16>, vector<64x256xbf16>, vector<128x256xf32> -> vector<128x256xf32>
    %42 = vector.broadcast %39 : vector<128x1xf32> to vector<128x256xf32>
    %43 = arith.addf %41, %42 : vector<128x256xf32>
    %cst_32 = arith.constant 0.000000e+00 : f32
    %44 = vector.broadcast %cst_32 : f32 to vector<128x256xf32>
    %45 = arith.maximumf %43, %44 : vector<128x256xf32>
    %46 = arith.truncf %45 : vector<128x256xf32> to vector<128x256xbf16>
    %c0_33 = arith.constant 0 : index
    %c0_34 = arith.constant 0 : index
    %47 = vector.load %arg5[%c0_33, %c0_34] : memref<256x512xbf16, #tpu.memory_space<vmem>>, vector<128x256xbf16>
    tpu.vector_store %arg5[%c0_33, %c0_34], %46 {strides = array<i32>} : memref<256x512xbf16, #tpu.memory_space<vmem>>, vector<128x256xbf16>,
    %c0_35 = arith.constant 0 : index
    %c256_36 = arith.constant 256 : index
    %48 = vector.load %arg5[%c0_35, %c256_36] : memref<256x512xbf16, #tpu.memory_space<vmem>>, vector<64x256xbf16>
    %cst_37 = arith.constant dense<0.000000e+00> : vector<128x256xf32>
    %49 = tpu.matmul %38, %48, %cst_37 {dimension_numbers = #tpu.dot_dimension_numbers<[1], [0], [0], [1], [0, 0, 1, 1], [], []>} : vector<128x64xbf16>, vector<64x256xbf16>, vector<128x256xf32> -> vector<128x256xf32>
    %50 = vector.broadcast %39 : vector<128x1xf32> to vector<128x256xf32>
    %51 = arith.addf %49, %50 : vector<128x256xf32>
    %cst_38 = arith.constant 0.000000e+00 : f32
    %52 = vector.broadcast %cst_38 : f32 to vector<128x256xf32>
    %53 = arith.maximumf %51, %52 : vector<128x256xf32>
    %54 = arith.truncf %53 : vector<128x256xf32> to vector<128x256xbf16>
    %c0_39 = arith.constant 0 : index
    %c256_40 = arith.constant 256 : index
    %55 = vector.load %arg5[%c0_39, %c256_40] : memref<256x512xbf16, #tpu.memory_space<vmem>>, vector<128x256xbf16>
    tpu.vector_store %arg5[%c0_39, %c256_40], %54 {strides = array<i32>} : memref<256x512xbf16, #tpu.memory_space<vmem>>, vector<128x256xbf16>,
    %c224 = arith.constant 224 : index
    %c0_41 = arith.constant 0 : index
    %56 = vector.load %arg2[%c224, %c0_41] : memref<688x256xbf16, #tpu.memory_space<vmem>>, vector<256x128xbf16>
    %c0_42 = arith.constant 0 : index
    %c3 = arith.constant 3 : index
    %57 = vector.load %arg3[%c0_42, %c3] : memref<256x8xf32, #tpu.memory_space<vmem>>, vector<256x1xf32>
    %c0_43 = arith.constant 0 : index
    %c0_44 = arith.constant 0 : index
    %58 = vector.load %arg5[%c0_43, %c0_44] : memref<256x512xbf16, #tpu.memory_space<vmem>>, vector<128x256xbf16>
    %cst_45 = arith.constant dense<0.000000e+00> : vector<256x256xf32>
    %59 = tpu.matmul %56, %58, %cst_45 {dimension_numbers = #tpu.dot_dimension_numbers<[1], [0], [0], [1], [0, 0, 1, 1], [], []>} : vector<256x128xbf16>, vector<128x256xbf16>, vector<256x256xf32> -> vector<256x256xf32>
    %60 = vector.broadcast %57 : vector<256x1xf32> to vector<256x256xf32>
    %61 = arith.addf %59, %60 : vector<256x256xf32>
    %cst_46 = arith.constant 0.000000e+00 : f32
    %62 = vector.broadcast %cst_46 : f32 to vector<256x256xf32>
    %63 = arith.maximumf %61, %62 : vector<256x256xf32>
    %64 = arith.truncf %63 : vector<256x256xf32> to vector<256x256xbf16>
    %c0_47 = arith.constant 0 : index
    %c0_48 = arith.constant 0 : index
    %65 = vector.load %arg5[%c0_47, %c0_48] : memref<256x512xbf16, #tpu.memory_space<vmem>>, vector<256x256xbf16>
    tpu.vector_store %arg5[%c0_47, %c0_48], %64 {strides = array<i32>} : memref<256x512xbf16, #tpu.memory_space<vmem>>, vector<256x256xbf16>,
    %c0_49 = arith.constant 0 : index
    %c256_50 = arith.constant 256 : index
    %66 = vector.load %arg5[%c0_49, %c256_50] : memref<256x512xbf16, #tpu.memory_space<vmem>>, vector<128x256xbf16>
    %cst_51 = arith.constant dense<0.000000e+00> : vector<256x256xf32>
    %67 = tpu.matmul %56, %66, %cst_51 {dimension_numbers = #tpu.dot_dimension_numbers<[1], [0], [0], [1], [0, 0, 1, 1], [], []>} : vector<256x128xbf16>, vector<128x256xbf16>, vector<256x256xf32> -> vector<256x256xf32>
    %68 = vector.broadcast %57 : vector<256x1xf32> to vector<256x256xf32>
    %69 = arith.addf %67, %68 : vector<256x256xf32>
    %cst_52 = arith.constant 0.000000e+00 : f32
    %70 = vector.broadcast %cst_52 : f32 to vector<256x256xf32>
    %71 = arith.maximumf %69, %70 : vector<256x256xf32>
    %72 = arith.truncf %71 : vector<256x256xf32> to vector<256x256xbf16>
    %c0_53 = arith.constant 0 : index
    %c256_54 = arith.constant 256 : index
    %73 = vector.load %arg5[%c0_53, %c256_54] : memref<256x512xbf16, #tpu.memory_space<vmem>>, vector<256x256xbf16>
    tpu.vector_store %arg5[%c0_53, %c256_54], %72 {strides = array<i32>} : memref<256x512xbf16, #tpu.memory_space<vmem>>, vector<256x256xbf16>,
    %c480 = arith.constant 480 : index
    %c0_55 = arith.constant 0 : index
    %74 = vector.load %arg2[%c480, %c0_55] : memref<688x256xbf16, #tpu.memory_space<vmem>>, vector<128x256xbf16>
    %c0_56 = arith.constant 0 : index
    %c4 = arith.constant 4 : index
    %75 = vector.load %arg3[%c0_56, %c4] : memref<256x8xf32, #tpu.memory_space<vmem>>, vector<128x1xf32>
    %c0_57 = arith.constant 0 : index
    %c0_58 = arith.constant 0 : index
    %76 = vector.load %arg5[%c0_57, %c0_58] : memref<256x512xbf16, #tpu.memory_space<vmem>>, vector<256x256xbf16>
    %cst_59 = arith.constant dense<0.000000e+00> : vector<128x256xf32>
    %77 = tpu.matmul %74, %76, %cst_59 {dimension_numbers = #tpu.dot_dimension_numbers<[1], [0], [0], [1], [0, 0, 1, 1], [], []>} : vector<128x256xbf16>, vector<256x256xbf16>, vector<128x256xf32> -> vector<128x256xf32>
    %78 = vector.broadcast %75 : vector<128x1xf32> to vector<128x256xf32>
    %79 = arith.addf %77, %78 : vector<128x256xf32>
    %cst_60 = arith.constant 0.000000e+00 : f32
    %80 = vector.broadcast %cst_60 : f32 to vector<128x256xf32>
    %81 = arith.maximumf %79, %80 : vector<128x256xf32>
    %82 = arith.truncf %81 : vector<128x256xf32> to vector<128x256xbf16>
    %c0_61 = arith.constant 0 : index
    %c0_62 = arith.constant 0 : index
    %83 = vector.load %arg5[%c0_61, %c0_62] : memref<256x512xbf16, #tpu.memory_space<vmem>>, vector<128x256xbf16>
    tpu.vector_store %arg5[%c0_61, %c0_62], %82 {strides = array<i32>} : memref<256x512xbf16, #tpu.memory_space<vmem>>, vector<128x256xbf16>,
    %c0_63 = arith.constant 0 : index
    %c256_64 = arith.constant 256 : index
    %84 = vector.load %arg5[%c0_63, %c256_64] : memref<256x512xbf16, #tpu.memory_space<vmem>>, vector<256x256xbf16>
    %cst_65 = arith.constant dense<0.000000e+00> : vector<128x256xf32>
    %85 = tpu.matmul %74, %84, %cst_65 {dimension_numbers = #tpu.dot_dimension_numbers<[1], [0], [0], [1], [0, 0, 1, 1], [], []>} : vector<128x256xbf16>, vector<256x256xbf16>, vector<128x256xf32> -> vector<128x256xf32>
    %86 = vector.broadcast %75 : vector<128x1xf32> to vector<128x256xf32>
    %87 = arith.addf %85, %86 : vector<128x256xf32>
    %cst_66 = arith.constant 0.000000e+00 : f32
    %88 = vector.broadcast %cst_66 : f32 to vector<128x256xf32>
    %89 = arith.maximumf %87, %88 : vector<128x256xf32>
    %90 = arith.truncf %89 : vector<128x256xf32> to vector<128x256xbf16>
    %c0_67 = arith.constant 0 : index
    %c256_68 = arith.constant 256 : index
    %91 = vector.load %arg5[%c0_67, %c256_68] : memref<256x512xbf16, #tpu.memory_space<vmem>>, vector<128x256xbf16>
    tpu.vector_store %arg5[%c0_67, %c256_68], %90 {strides = array<i32>} : memref<256x512xbf16, #tpu.memory_space<vmem>>, vector<128x256xbf16>,
    %c608 = arith.constant 608 : index
    %c0_69 = arith.constant 0 : index
    %92 = vector.load %arg2[%c608, %c0_69] : memref<688x256xbf16, #tpu.memory_space<vmem>>, vector<64x128xbf16>
    %c0_70 = arith.constant 0 : index
    %c5 = arith.constant 5 : index
    %93 = vector.load %arg3[%c0_70, %c5] : memref<256x8xf32, #tpu.memory_space<vmem>>, vector<64x1xf32>
    %c0_71 = arith.constant 0 : index
    %c0_72 = arith.constant 0 : index
    %94 = vector.load %arg5[%c0_71, %c0_72] : memref<256x512xbf16, #tpu.memory_space<vmem>>, vector<128x256xbf16>
    %cst_73 = arith.constant dense<0.000000e+00> : vector<64x256xf32>
    %95 = tpu.matmul %92, %94, %cst_73 {dimension_numbers = #tpu.dot_dimension_numbers<[1], [0], [0], [1], [0, 0, 1, 1], [], []>} : vector<64x128xbf16>, vector<128x256xbf16>, vector<64x256xf32> -> vector<64x256xf32>
    %96 = vector.broadcast %93 : vector<64x1xf32> to vector<64x256xf32>
    %97 = arith.addf %95, %96 : vector<64x256xf32>
    %cst_74 = arith.constant 0.000000e+00 : f32
    %98 = vector.broadcast %cst_74 : f32 to vector<64x256xf32>
    %99 = arith.maximumf %97, %98 : vector<64x256xf32>
    %100 = arith.truncf %99 : vector<64x256xf32> to vector<64x256xbf16>
    %c0_75 = arith.constant 0 : index
    %c0_76 = arith.constant 0 : index
    %101 = vector.load %arg5[%c0_75, %c0_76] : memref<256x512xbf16, #tpu.memory_space<vmem>>, vector<64x256xbf16>
    tpu.vector_store %arg5[%c0_75, %c0_76], %100 {strides = array<i32>} : memref<256x512xbf16, #tpu.memory_space<vmem>>, vector<64x256xbf16>,
    %c0_77 = arith.constant 0 : index
    %c256_78 = arith.constant 256 : index
    %102 = vector.load %arg5[%c0_77, %c256_78] : memref<256x512xbf16, #tpu.memory_space<vmem>>, vector<128x256xbf16>
    %cst_79 = arith.constant dense<0.000000e+00> : vector<64x256xf32>
    %103 = tpu.matmul %92, %102, %cst_79 {dimension_numbers = #tpu.dot_dimension_numbers<[1], [0], [0], [1], [0, 0, 1, 1], [], []>} : vector<64x128xbf16>, vector<128x256xbf16>, vector<64x256xf32> -> vector<64x256xf32>
    %104 = vector.broadcast %93 : vector<64x1xf32> to vector<64x256xf32>
    %105 = arith.addf %103, %104 : vector<64x256xf32>
    %cst_80 = arith.constant 0.000000e+00 : f32
    %106 = vector.broadcast %cst_80 : f32 to vector<64x256xf32>
    %107 = arith.maximumf %105, %106 : vector<64x256xf32>
    %108 = arith.truncf %107 : vector<64x256xf32> to vector<64x256xbf16>
    %c0_81 = arith.constant 0 : index
    %c256_82 = arith.constant 256 : index
    %109 = vector.load %arg5[%c0_81, %c256_82] : memref<256x512xbf16, #tpu.memory_space<vmem>>, vector<64x256xbf16>
    tpu.vector_store %arg5[%c0_81, %c256_82], %108 {strides = array<i32>} : memref<256x512xbf16, #tpu.memory_space<vmem>>, vector<64x256xbf16>,
    %c672 = arith.constant 672 : index
    %c0_83 = arith.constant 0 : index
    %110 = vector.load %arg2[%c672, %c0_83] : memref<688x256xbf16, #tpu.memory_space<vmem>>, vector<16x64xbf16>
    %c0_84 = arith.constant 0 : index
    %c6 = arith.constant 6 : index
    %111 = vector.load %arg3[%c0_84, %c6] : memref<256x8xf32, #tpu.memory_space<vmem>>, vector<16x1xf32>
    %c0_85 = arith.constant 0 : index
    %c0_86 = arith.constant 0 : index
    %112 = vector.load %arg5[%c0_85, %c0_86] : memref<256x512xbf16, #tpu.memory_space<vmem>>, vector<64x256xbf16>
    %cst_87 = arith.constant dense<0.000000e+00> : vector<16x256xf32>
    %113 = tpu.matmul %110, %112, %cst_87 {dimension_numbers = #tpu.dot_dimension_numbers<[1], [0], [0], [1], [0, 0, 1, 1], [], []>} : vector<16x64xbf16>, vector<64x256xbf16>, vector<16x256xf32> -> vector<16x256xf32>
    %114 = vector.broadcast %111 : vector<16x1xf32> to vector<16x256xf32>
    %115 = arith.addf %113, %114 : vector<16x256xf32>
    %116 = vector.extract_strided_slice %115 {offsets = [0, 0], sizes = [1, 256], strides = [1, 1]} : vector<16x256xf32> to vector<1x256xf32>
    %c0_88 = arith.constant 0 : index
    %c0_89 = arith.constant 0 : index
    %117 = vector.load %arg4[%c0_88, %c0_89] : memref<1x512xf32, #tpu.memory_space<vmem>>, vector<1x256xf32>
    tpu.vector_store %arg4[%c0_88, %c0_89], %116 {strides = array<i32>} : memref<1x512xf32, #tpu.memory_space<vmem>>, vector<1x256xf32>,
    %c0_90 = arith.constant 0 : index
    %c256_91 = arith.constant 256 : index
    %118 = vector.load %arg5[%c0_90, %c256_91] : memref<256x512xbf16, #tpu.memory_space<vmem>>, vector<64x256xbf16>
    %cst_92 = arith.constant dense<0.000000e+00> : vector<16x256xf32>
    %119 = tpu.matmul %110, %118, %cst_92 {dimension_numbers = #tpu.dot_dimension_numbers<[1], [0], [0], [1], [0, 0, 1, 1], [], []>} : vector<16x64xbf16>, vector<64x256xbf16>, vector<16x256xf32> -> vector<16x256xf32>
    %120 = vector.broadcast %111 : vector<16x1xf32> to vector<16x256xf32>
    %121 = arith.addf %119, %120 : vector<16x256xf32>
    %122 = vector.extract_strided_slice %121 {offsets = [0, 0], sizes = [1, 256], strides = [1, 1]} : vector<16x256xf32> to vector<1x256xf32>
    %c0_93 = arith.constant 0 : index
    %c256_94 = arith.constant 256 : index
    %123 = vector.load %arg4[%c0_93, %c256_94] : memref<1x512xf32, #tpu.memory_space<vmem>>, vector<1x256xf32>
    tpu.vector_store %arg4[%c0_93, %c256_94], %122 {strides = array<i32>} : memref<1x512xf32, #tpu.memory_space<vmem>>, vector<1x256xf32>,
    return
  }
  func.func @transform_0(%arg0: i32) -> (i32, i32) {
    %c0_i32 = arith.constant 0 : i32
    %c0_i32_0 = arith.constant 0 : i32
    return %arg0, %c0_i32 : i32, i32
  }
  func.func @transform_1(%arg0: i32) -> (i32, i32) {
    %c0_i32 = arith.constant 0 : i32
    %c0_i32_0 = arith.constant 0 : i32
    %c0_i32_1 = arith.constant 0 : i32
    return %c0_i32, %c0_i32_0 : i32, i32
  }
  func.func @transform_2(%arg0: i32) -> (i32, i32) {
    %c0_i32 = arith.constant 0 : i32
    %c0_i32_0 = arith.constant 0 : i32
    %c0_i32_1 = arith.constant 0 : i32
    return %c0_i32, %c0_i32_0 : i32, i32
  }
  func.func @transform_3(%arg0: i32) -> (i32, i32) {
    %c0_i32 = arith.constant 0 : i32
    %c0_i32_0 = arith.constant 0 : i32
    return %c0_i32, %arg0 : i32, i32
  }
}

</mosaic_0001>

<bundles_post_ra>
// kernel: neural_nets_forward.1
= control target key start
LH: loop header
LB: loop body
LE: loop exit
PB: predicated region body
PF: predicated region fallthrough
CT: control target
= control target key end

     0   :  { %vm101_vm0 = vcmask 39936   ;;  %v3554_v3 = vmov 0   ;;  %vm470_vm1 = vcmask 261120   ;;  %vm857_vm2 = vcmask 523264   ;;  %s4344_s0 = inlined_call_operand.vmem [shape: f32[512,5], index: 0, kind: input, shape index: {}]   ;;  %s4345_s1 = inlined_call_operand.vmem [shape: bf16[688,256], index: 1, kind: input, shape index: {}]   ;;  %s4346_s2 = inlined_call_operand.vmem [shape: f32[256,8], index: 2, kind: input, shape index: {}]   ;;  %s4347_s3 = inlined_call_operand.vmem [shape: f32[1,512], index: 3, kind: output, shape index: {}]  }
   0x1   :  { %v39_v0 = vld [vmem:[%s4344_s0 + $0x80] sm:$0xff]  ;;  %v40_v1 = vld [vmem:[%s4344_s0 + $0x88] sm:$0xff]  ;;  %3480 = vset.pattern.permute.xlu0 %v3554_v3  ;;  %3481 = vset.pattern.permute.xlu1 %v3554_v3  ;;  %v41_v12 = vld [vmem:[%s4344_s0 + $0x90] sm:$0xff] }
   0x2   :  { %v241_v2 = vld [vmem:[%s4344_s0 + $0x180] sm:$0xff]  ;;  %v63_v4 = vpack.c.bf16 %v40_v1, %v39_v0  ;;  %v242_v5 = vld [vmem:[%s4344_s0 + $0x188] sm:$0xff]  ;;  %v42_v14 = vld [vmem:[%s4344_s0 + $0x98] sm:$0xff] }
   0x3   :  { %v23_v6 = vld [vmem:[%s4344_s0] sm:$0xff]  ;;  %v24_v7 = vld [vmem:[%s4344_s0 + $0x8] sm:$0xff]  ;;  %v265_v8 = vpack.c.bf16 %v242_v5, %v241_v2  ;;  %v243_v15 = vld [vmem:[%s4344_s0 + $0x190] sm:$0xff]  ;;  %v64_v18 = vpack.c.bf16 %v42_v14, %v41_v12 }
   0x4   :  { %v55_v9 = vpack.c.bf16 %v24_v7, %v23_v6  ;;  %v225_v10 = vld [vmem:[%s4344_s0 + $0x100] sm:$0xff]  ;;  %v226_v11 = vld [vmem:[%s4344_s0 + $0x108] sm:$0xff]  ;;  %3456 = vmatprep.subr.msk.bf16.mxu0 %vm101_vm0, %v63_v4  ;;  %v244_v16 = vld [vmem:[%s4344_s0 + $0x198] sm:$0xff] }
   0x5   :  { %v257_v13 = vpack.c.bf16 %v226_v11, %v225_v10  ;;  %3464 = vmatprep.subr.msk.bf16.mxu1 %vm101_vm0, %v265_v8  ;;  %v266_v19 = vpack.c.bf16 %v244_v16, %v243_v15  ;;  %v25_v20 = vld [vmem:[%s4344_s0 + $0x10] sm:$0xff]  ;;  %v26_v21 = vld [vmem:[%s4344_s0 + $0x18] sm:$0xff]  ;;  %v43_v27 = vld [vmem:[%s4344_s0 + $0xa0] sm:$0xff] }
   0x6   :  { %v109_v17 = vsel %vm101_vm0, %v55_v9, 0  ;;  %v227_v22 = vld [vmem:[%s4344_s0 + $0x110] sm:$0xff]  ;;  %v228_v24 = vld [vmem:[%s4344_s0 + $0x118] sm:$0xff]  ;;  %v56_v25 = vpack.c.bf16 %v26_v21, %v25_v20  ;;  %v44_v28 = vld [vmem:[%s4344_s0 + $0xa8] sm:$0xff] }
   0x7   :  { %3417 = vmatpush3.bf16.xpose.msra.mxu0 %v109_v17  ;;  %v274_v23 = vsel %vm101_vm0, %v257_v13, 0  ;;  %v258_v26 = vpack.c.bf16 %v228_v24, %v227_v22  ;;  %v245_v29 = vld [vmem:[%s4344_s0 + $0x1a0] sm:$0xff]  ;;  %v246_v30 = vld [vmem:[%s4344_s0 + $0x1a8] sm:$0xff]  ;;  %v65_v32 = vpack.c.bf16 %v44_v28, %v43_v27  ;;  %v45_v39 = vld [vmem:[%s4344_s0 + $0xb0] sm:$0xff] }
   0x8   :  { %3437 = vmatpush3.bf16.xpose.msra.mxu1 %v274_v23  ;;  %3457 = vmatprep.subr.msk.bf16.mxu0 %vm101_vm0, %v64_v18  ;;  %v112_v31 = vsel %vm101_vm0, %v56_v25, 0  ;;  %v27_v33 = vld [vmem:[%s4344_s0 + $0x20] sm:$0xff]  ;;  %v267_v35 = vpack.c.bf16 %v246_v30, %v245_v29  ;;  %v28_v36 = vld [vmem:[%s4344_s0 + $0x28] sm:$0xff]  ;;  %v46_v40 = vld [vmem:[%s4344_s0 + $0xb8] sm:$0xff] }
   0x9   :  { %3465 = vmatprep.subr.msk.bf16.mxu1 %vm101_vm0, %v266_v19  ;;  %v277_v34 = vsel %vm101_vm0, %v258_v26, 0  ;;  %v229_v37 = vld [vmem:[%s4344_s0 + $0x120] sm:$0xff]  ;;  %v230_v38 = vld [vmem:[%s4344_s0 + $0x128] sm:$0xff]  ;;  %v57_v41 = vpack.c.bf16 %v28_v36, %v27_v33  ;;  %v247_v43 = vld [vmem:[%s4344_s0 + $0x1b0] sm:$0xff]  ;;  %v66_v57 = vpack.c.bf16 %v46_v40, %v45_v39 }
   0xa   :  { %v259_v42 = vpack.c.bf16 %v230_v38, %v229_v37  ;;  %v248_v44 = vld [vmem:[%s4344_s0 + $0x1b8] sm:$0xff]  ;;  %v29_v45 = vld [vmem:[%s4344_s0 + $0x30] sm:$0xff]  ;;  %v31_v49 = vld [vmem:[%s4344_s0 + $0x40] sm:$0xff] }
   0xb   :  { %v30_v46 = vld [vmem:[%s4344_s0 + $0x38] sm:$0xff]  ;;  %v231_v47 = vld [vmem:[%s4344_s0 + $0x130] sm:$0xff]  ;;  %v32_v50 = vld [vmem:[%s4344_s0 + $0x48] sm:$0xff]  ;;  %v115_v55 = vsel %vm101_vm0, %v57_v41, 0  ;;  %v268_v58 = vpack.c.bf16 %v248_v44, %v247_v43 }
   0xc   :  { %v232_v48 = vld [vmem:[%s4344_s0 + $0x138] sm:$0xff]  ;;  %v233_v51 = vld [vmem:[%s4344_s0 + $0x140] sm:$0xff]  ;;  %v234_v52 = vld [vmem:[%s4344_s0 + $0x148] sm:$0xff]  ;;  %v280_v56 = vsel %vm101_vm0, %v259_v42, 0  ;;  %v58_v59 = vpack.c.bf16 %v30_v46, %v29_v45  ;;  %v59_v61 = vpack.c.bf16 %v32_v50, %v31_v49 }
   0xd   :  { %v33_v53 = vld [vmem:[%s4344_s0 + $0x50] sm:$0xff]  ;;  %v34_v54 = vld [vmem:[%s4344_s0 + $0x58] sm:$0xff]  ;;  %v260_v60 = vpack.c.bf16 %v232_v48, %v231_v47  ;;  %v261_v62 = vpack.c.bf16 %v234_v52, %v233_v51  ;;  %v47_v0 = vld [vmem:[%s4344_s0 + $0xc0] sm:$0xff] }
   0xe   :  { %v60_v63 = vpack.c.bf16 %v34_v54, %v33_v53  ;;  %v48_v1 = vld [vmem:[%s4344_s0 + $0xc8] sm:$0xff]  ;;  %v118_v4 = vsel %vm101_vm0, %v58_v59, 0  ;;  %v249_v6 = vld [vmem:[%s4344_s0 + $0x1c0] sm:$0xff]  ;;  %v121_v8 = vsel %vm101_vm0, %v59_v61, 0  ;;  %v3751_v13 = vld [vmem:[%s4346_s2 + $0x10] sm:$0xff] }
   0xf   :  { %3419 = vmatpush3.bf16.xpose.msra.mxu0 %v112_v31  ;;  %v3720_v2 = vld [vmem:[%s4345_s1] ss:$8 sps:$4 sm:$0xff]   ;;  %v283_v5 = vsel %vm101_vm0, %v260_v60, 0  ;;  %v286_v10 = vsel %vm101_vm0, %v261_v62, 0  ;;  %83 = vperm.xlu1 %3481, %v3751_v13   ;;  %v67_v14 = vpack.c.bf16 %v48_v1, %v47_v0  ;;  %v3758_v15 = vld [vmem:[%s4346_s2 + $0x18] sm:$0xff]  ;;  %v49_v17 = vld [vmem:[%s4344_s0 + $0xd0] sm:$0xff] }
  0x10   :  { %3439 = vmatpush3.bf16.xpose.msra.mxu1 %v277_v34  ;;  %3458 = vmatprep.subr.msk.bf16.mxu0 %vm101_vm0, %v65_v32  ;;  %v250_v7 = vld [vmem:[%s4344_s0 + $0x1c8] sm:$0xff]  ;;  %v3735_v9 = vld [vmem:[%s4346_s2] sm:$0xff]  ;;  %v124_v11 = vsel %vm101_vm0, %v60_v63, 0  ;;  %v50_v18 = vld [vmem:[%s4344_s0 + $0xd8] sm:$0xff] }
  0x11   :  { %3466 = vmatprep.subr.msk.bf16.mxu1 %vm101_vm0, %v267_v35  ;;  %3432 = vmatprep.mubr.msk.bf16.mxu0 %vm101_vm0, %v3720_v2  ;;  %v3746_v12 = vld [vmem:[%s4346_s2 + $0x8] sm:$0xff]  ;;  %v269_v16 = vpack.c.bf16 %v250_v7, %v249_v6  ;;  %v251_v19 = vld [vmem:[%s4344_s0 + $0x1d0] sm:$0xff]  ;;  %v252_v20 = vld [vmem:[%s4344_s0 + $0x1d8] sm:$0xff]  ;;  %v68_v21 = vpack.c.bf16 %v50_v18, %v49_v17 }
  0x12   :  { %3452 = vmatprep.mubr.msk.bf16.mxu1 %vm101_vm0, %v3720_v2  ;;  %73 = vperm.xlu0 %3480, %v3735_v9   ;;  %v235_v22 = vld [vmem:[%s4344_s0 + $0x150] sm:$0xff]  ;;  %v236_v23 = vld [vmem:[%s4344_s0 + $0x158] sm:$0xff]  ;;  %v270_v24 = vpack.c.bf16 %v252_v20, %v251_v19  ;;  %v51_v25 = vld [vmem:[%s4344_s0 + $0xe0] sm:$0xff] }
  0x13   :  { %88 = vperm.xlu1 %3481, %v3758_v15   ;;  %v52_v26 = vld [vmem:[%s4344_s0 + $0xe8] sm:$0xff]  ;;  %v253_v27 = vld [vmem:[%s4344_s0 + $0x1e0] sm:$0xff]  ;;  %v262_v29 = vpack.c.bf16 %v236_v23, %v235_v22  ;;  %v53_v39 = vld [vmem:[%s4344_s0 + $0xf0] sm:$0xff] }
  0x14   :  { %v254_v28 = vld [vmem:[%s4344_s0 + $0x1e8] sm:$0xff]  ;;  %v35_v30 = vld [vmem:[%s4344_s0 + $0x60] sm:$0xff]  ;;  %v69_v34 = vpack.c.bf16 %v52_v26, %v51_v25  ;;  %v54_v40 = vld [vmem:[%s4344_s0 + $0xf8] sm:$0xff] }
  0x15   :  { %v36_v31 = vld [vmem:[%s4344_s0 + $0x68] sm:$0xff]  ;;  %v237_v32 = vld [vmem:[%s4344_s0 + $0x160] sm:$0xff]  ;;  %v289_v35 = vsel %vm101_vm0, %v262_v29, 0  ;;  %v271_v36 = vpack.c.bf16 %v254_v28, %v253_v27  ;;  %v255_v41 = vld [vmem:[%s4344_s0 + $0x1f0] sm:$0xff]  ;;  %v70_v47 = vpack.c.bf16 %v54_v40, %v53_v39 }
  0x16   :  { %78 = vperm.xlu0 %3480, %v3746_v12   ;;  %v238_v33 = vld [vmem:[%s4344_s0 + $0x168] sm:$0xff]  ;;  %v61_v37 = vpack.c.bf16 %v36_v31, %v35_v30  ;;  %v256_v42 = vld [vmem:[%s4344_s0 + $0x1f8] sm:$0xff]  ;;  %v37_v45 = vld [vmem:[%s4344_s0 + $0x70] sm:$0xff] }
  0x17   :  { %3421 = vmatpush3.bf16.xpose.msra.mxu0 %v115_v55  ;;  %v263_v38 = vpack.c.bf16 %v238_v33, %v237_v32  ;;  %v38_v46 = vld [vmem:[%s4344_s0 + $0x78] sm:$0xff]  ;;  %v272_v48 = vpack.c.bf16 %v256_v42, %v255_v41  ;;  %v239_v49 = vld [vmem:[%s4344_s0 + $0x170] sm:$0xff] }
  0x18   :  { %3441 = vmatpush3.bf16.xpose.msra.mxu1 %v280_v56  ;;  %3459 = vmatprep.subr.msk.bf16.mxu0 %vm101_vm0, %v66_v57  ;;  %v127_v43 = vsel %vm101_vm0, %v61_v37, 0  ;;  %v240_v50 = vld [vmem:[%s4344_s0 + $0x178] sm:$0xff]  ;;  %v62_v51 = vpack.c.bf16 %v38_v46, %v37_v45  ;;  %v3555_v56 = vmov 1   ;;  %v3861_v57 = vld [vmem:[%s4346_s2 + $0x20] sm:$0xff]  ;;  %v3873_v59 = vld [vmem:[%s4346_s2 + $0x30] sm:$0xff] }
  0x19   :  { %3467 = vmatprep.subr.msk.bf16.mxu1 %vm101_vm0, %v268_v58  ;;  %v292_v44 = vsel %vm101_vm0, %v263_v38, 0  ;;  %v264_v52 = vpack.c.bf16 %v240_v50, %v239_v49  ;;  %v3495_v55 = vld [vmem:[%s4345_s1 + $0x10] ss:$8 sps:$4 sm:$0xff]   ;;  %3483 = vset.pattern.permute.xlu1 %v3555_v56  ;;  %v3866_v58 = vld [vmem:[%s4346_s2 + $0x28] sm:$0xff] }
  0x1a   :  { %v130_v53 = vsel %vm101_vm0, %v62_v51, 0  ;;  %3482 = vset.pattern.permute.xlu0 %v3555_v56  ;;  %417 = vperm.xlu1 %3483, %v3746_v12   ;;  %v3878_v60 = vld [vmem:[%s4346_s2 + $0x38] sm:$0xff] }
  0x1b   :  { %v295_v54 = vsel %vm101_vm0, %v264_v52, 0  ;;  %412 = vperm.xlu0 %3482, %v3735_v9  }
  0x1e   :  { %422 = vperm.xlu1 %3483, %v3751_v13  }
  0x1f   :  { %3423 = vmatpush3.bf16.xpose.msra.mxu0 %v118_v4  ;;  %427 = vperm.xlu0 %3482, %v3758_v15  }
  0x20   :  { %3443 = vmatpush3.bf16.xpose.msra.mxu1 %v283_v5  ;;  %3460 = vmatprep.subr.msk.bf16.mxu0 %vm101_vm0, %v67_v14 }
  0x21   :  { %3468 = vmatprep.subr.msk.bf16.mxu1 %vm101_vm0, %v269_v16 }
  0x22   :  { %432 = vperm.xlu1 %3483, %v3861_v57  }
  0x23   :  { %437 = vperm.xlu0 %3482, %v3866_v58  }
  0x26   :  { %442 = vperm.xlu1 %3483, %v3873_v59  }
  0x27   :  { %3425 = vmatpush3.bf16.xpose.msra.mxu0 %v121_v8  ;;  %447 = vperm.xlu0 %3482, %v3878_v60  }
  0x28   :  { %3445 = vmatpush3.bf16.xpose.msra.mxu1 %v286_v10  ;;  %3461 = vmatprep.subr.msk.bf16.mxu0 %vm101_vm0, %v68_v21 }
  0x29   :  { %3469 = vmatprep.subr.msk.bf16.mxu1 %vm101_vm0, %v270_v24 }
  0x2f   :  { %3427 = vmatpush3.bf16.xpose.msra.mxu0 %v124_v11 }
  0x30   :  { %3447 = vmatpush3.bf16.xpose.msra.mxu1 %v289_v35  ;;  %3462 = vmatprep.subr.msk.bf16.mxu0 %vm101_vm0, %v69_v34 }
  0x31   :  { %3470 = vmatprep.subr.msk.bf16.mxu1 %vm101_vm0, %v271_v36 }
  0x37   :  { %3429 = vmatpush3.bf16.xpose.msra.mxu0 %v127_v43 }
  0x38   :  { %3449 = vmatpush3.bf16.xpose.msra.mxu1 %v292_v44  ;;  %3463 = vmatprep.subr.msk.bf16.mxu0 %vm101_vm0, %v70_v47 }
  0x39   :  { %3471 = vmatprep.subr.msk.bf16.mxu1 %vm101_vm0, %v272_v48 }
  0x3f   :  { %3431 = vmatpush3.bf16.xpose.msra.mxu0 %v130_v53 }
  0x40   :  { %3451 = vmatpush3.bf16.xpose.msra.mxu1 %v295_v54 }
  0x46   :  { %3433 = vmatmul.mubr.msk.bf16.vlgmr.msra.gmra.mrb[0].mxu0 %vm101_vm0, %v3720_v2 }
  0x47   :  { %3453 = vmatmul.mubr.msk.bf16.vlgmr.msra.gmra.mrb[0].mxu1 %vm101_vm0, %v3720_v2  ;;  %3434 = vmatprep.mubr.msk.bf16.mxu0 %vm101_vm0, %v3495_v55 }
  0x48   :  { %3454 = vmatprep.mubr.msk.bf16.mxu1 %vm101_vm0, %v3495_v55 }
  0x4e   :  { %3435 = vmatmul.mubr.msk.bf16.gmra.mrb[4].mxu0 %vm101_vm0, %v3495_v55 }
  0x4f   :  { %3455 = vmatmul.mubr.msk.bf16.gmra.mrb[4].mxu1 %vm101_vm0, %v3495_v55  ;;  %515 = vmatprep.mubr.bf16.mxu0 %v3554_v3 }
  0x50   :  { %624 = vmatprep.mubr.bf16.mxu1 %v3554_v3 }
  0x8e   :  { %v84_v62 = vpop.permute.xlu1 %83 }
  0x91   :  { %v74_v61 = vpop.permute.xlu0 %73 }
  0x92   :  { %v89_v32 = vpop.permute.xlu1 %88 }
  0x95   :  { %v79_v63 = vpop.permute.xlu0 %78 }
 0x119   :  { %v190_v0 = vpop.f32.mrb[0].mxu0 }
 0x11a   :  { %v191_v1 = vadd.f32 %v190_v0, %v74_v61  ;;  %v355_v2 = vpop.f32.mrb[0].mxu1  ;;  %v192_v4 = vpop.f32.mrb[1].mxu0 }
 0x11b   :  { %v356_v5 = vadd.f32 %v355_v2, %v74_v61  ;;  %v193_v6 = vadd.f32 %v192_v4, %v74_v61  ;;  %v357_v7 = vpop.f32.mrb[1].mxu1  ;;  %v194_v8 = vpop.f32.mrb[2].mxu0  ;;  %v3496_v2 = vld [vmem:[%s4345_s1 + $0x20] ss:$8 sps:$4 sm:$0xff]   ;;  %v3497_v4 = vld [vmem:[%s4345_s1 + $0x30] ss:$8 sps:$4 sm:$0xff]  }
 0x11c   :  { %v358_v10 = vadd.f32 %v357_v7, %v74_v61  ;;  %v195_v11 = vadd.f32 %v194_v8, %v79_v63  ;;  %v359_v14 = vpop.f32.mrb[2].mxu1  ;;  %v196_v16 = vpop.f32.mrb[3].mxu0  ;;  %v209_v20 = vmax.f32 %v191_v1, 0.0  ;;  %v3556_v7 = vmov 2   ;;  %v3919_v8 = vld [vmem:[%s4346_s2 + $0x40] sm:$0xff] }
 0x11d   :  { %v360_v17 = vadd.f32 %v359_v14, %v79_v63  ;;  %v197_v18 = vadd.f32 %v196_v16, %v79_v63  ;;  %v361_v19 = vpop.f32.mrb[3].mxu1  ;;  %v374_v23 = vmax.f32 %v356_v5, 0.0  ;;  %v210_v24 = vmax.f32 %v193_v6, 0.0  ;;  %v3498_v5 = vld [vmem:[%s4345_s1 + $0x40] ss:$8 sps:$4 sm:$0xff]   ;;  %3484 = vset.pattern.permute.xlu1 %v3556_v7  ;;  %3485 = vset.pattern.permute.xlu0 %v3556_v7 }
 0x11e   :  { %v211_v21 = vmax.f32 %v195_v11, 0.0  ;;  %v362_v22 = vadd.f32 %v361_v19, %v79_v63  ;;  %v375_v27 = vmax.f32 %v358_v10, 0.0  ;;  %v3499_v6 = vld [vmem:[%s4345_s1 + $0x50] ss:$8 sps:$4 sm:$0xff]   ;;  %739 = vperm.xlu1 %3484, %v3735_v9   ;;  %744 = vperm.xlu0 %3485, %v3746_v12   ;;  %v3933_v12 = vld [vmem:[%s4346_s2 + $0x48] sm:$0xff]  ;;  %v418_v10 = vpop.permute.xlu1 %417 }
 0x11f   :  { %v376_v25 = vmax.f32 %v360_v17, 0.0  ;;  %v212_v26 = vmax.f32 %v197_v18, 0.0  ;;  %v3926_v9 = vld [vmem:[%s4346_s2 + $0x50] sm:$0xff] }
 0x120   :  { %v217_v28 = vpack.c.bf16 %v211_v21, %v209_v20  ;;  %v377_v29 = vmax.f32 %v362_v22, 0.0 }
 0x121   :  { %v382_v30 = vpack.c.bf16 %v376_v25, %v374_v23  ;;  %v218_v31 = vpack.c.bf16 %v212_v26, %v210_v24  ;;  %v200_v33 = vpop.f32.mrb[4].mxu0 }
 0x122   :  { %v383_v34 = vpack.c.bf16 %v377_v29, %v375_v27  ;;  %v201_v35 = vadd.f32 %v200_v33, %v84_v62  ;;  %v365_v36 = vpop.f32.mrb[4].mxu1  ;;  %v202_v37 = vpop.f32.mrb[5].mxu0  ;;  %749 = vperm.xlu1 %3484, %v3751_v13   ;;  %759 = vperm.xlu0 %3485, %v3861_v57   ;;  %v3938_v13 = vld [vmem:[%s4346_s2 + $0x60] sm:$0xff]  ;;  %v3950_v57 = vld [vmem:[%s4346_s2 + $0x70] sm:$0xff] }
 0x123   :  { %v366_v38 = vadd.f32 %v365_v36, %v84_v62  ;;  %v203_v39 = vadd.f32 %v202_v37, %v84_v62  ;;  %v367_v40 = vpop.f32.mrb[5].mxu1  ;;  %v204_v41 = vpop.f32.mrb[6].mxu0  ;;  %483 = vmatprep.subr.bf16.mxu0 %v218_v31 }
 0x124   :  { %v368_v42 = vadd.f32 %v367_v40, %v84_v62  ;;  %v205_v43 = vadd.f32 %v204_v41, %v89_v32  ;;  %v369_v44 = vpop.f32.mrb[6].mxu1  ;;  %592 = vmatprep.subr.bf16.mxu1 %v383_v34  ;;  %v206_v45 = vpop.f32.mrb[7].mxu0  ;;  %484 = vmatpush1.bf16.msra.mxu0 %v217_v28  ;;  %v213_v49 = vmax.f32 %v201_v35, 0.0 }
 0x125   :  { %v370_v46 = vadd.f32 %v369_v44, %v89_v32  ;;  %v207_v47 = vadd.f32 %v206_v45, %v89_v32  ;;  %v371_v48 = vpop.f32.mrb[7].mxu1  ;;  %593 = vmatpush1.bf16.msra.mxu1 %v382_v30  ;;  %v378_v52 = vmax.f32 %v366_v38, 0.0  ;;  %v214_v53 = vmax.f32 %v203_v39, 0.0 }
 0x126   :  { %v215_v50 = vmax.f32 %v205_v43, 0.0  ;;  %v372_v51 = vadd.f32 %v371_v48, %v89_v32  ;;  %v379_v56 = vmax.f32 %v368_v42, 0.0  ;;  %754 = vperm.xlu1 %3484, %v3758_v15   ;;  %769 = vperm.xlu0 %3485, %v3873_v59   ;;  %v3945_v15 = vld [vmem:[%s4346_s2 + $0x58] sm:$0xff]  ;;  %v423_v32 = vpop.permute.xlu1 %422 }
 0x127   :  { %v380_v54 = vmax.f32 %v370_v46, 0.0  ;;  %v216_v55 = vmax.f32 %v207_v47, 0.0  ;;  %v3963_v59 = vld [vmem:[%s4346_s2 + $0x78] sm:$0xff] }
 0x128   :  { %v219_v61 = vpack.c.bf16 %v215_v50, %v213_v49  ;;  %v381_v63 = vmax.f32 %v372_v51, 0.0 }
 0x129   :  { %v384_v62 = vpack.c.bf16 %v380_v54, %v378_v52  ;;  %v220_v0 = vpack.c.bf16 %v216_v55, %v214_v53 }
 0x12a   :  { %v385_v1 = vpack.c.bf16 %v381_v63, %v379_v56  ;;  %764 = vperm.xlu1 %3484, %v3866_v58   ;;  %779 = vperm.xlu0 %3485, %v3919_v8   ;;  %v3957_v58 = vld [vmem:[%s4346_s2 + $0x68] sm:$0xff]  ;;  %v433_v7 = vpop.permute.xlu1 %432 }
 0x12b   :  { %485 = vmatprep.subr.bf16.mxu0 %v220_v0 }
 0x12c   :  { %594 = vmatprep.subr.bf16.mxu1 %v385_v1  ;;  %486 = vmatpush1.bf16.msra.mxu0 %v219_v61 }
 0x12d   :  { %595 = vmatpush1.bf16.msra.mxu1 %v384_v62 }
 0x12e   :  { %774 = vperm.xlu1 %3484, %v3878_v60   ;;  %789 = vperm.xlu0 %3485, %v3926_v9   ;;  %v413_v60 = vpop.permute.xlu0 %412 }
 0x12f   :  { %3345 = vmatmul.mubr.msk.bf16.vlgmr.msra.gmra.mrb[8].mxu0 %vm470_vm1, %v3496_v2 }
 0x130   :  { %3349 = vmatmul.mubr.msk.bf16.vlgmr.msra.gmra.mrb[8].mxu1 %vm470_vm1, %v3496_v2  ;;  %525 = vmatprep.mubr.bf16.mxu0 %v3554_v3 }
 0x131   :  { %634 = vmatprep.mubr.bf16.mxu1 %v3554_v3 }
 0x132   :  { %784 = vperm.xlu1 %3484, %v3933_v12   ;;  %799 = vperm.xlu0 %3485, %v3938_v13   ;;  %v428_v40 = vpop.permute.xlu0 %427 }
 0x136   :  { %794 = vperm.xlu1 %3484, %v3945_v15   ;;  %809 = vperm.xlu0 %3485, %v3950_v57  }
 0x137   :  { %3346 = vmatmul.mubr.msk.bf16.gmra.mrb[12].mxu0 %vm470_vm1, %v3497_v4 }
 0x138   :  { %3350 = vmatmul.mubr.msk.bf16.gmra.mrb[12].mxu1 %vm470_vm1, %v3497_v4  ;;  %535 = vmatprep.mubr.bf16.mxu0 %v3554_v3 }
 0x139   :  { %644 = vmatprep.mubr.bf16.mxu1 %v3554_v3 }
 0x13a   :  { %804 = vperm.xlu1 %3484, %v3957_v58  }
 0x13e   :  { %814 = vperm.xlu1 %3484, %v3963_v59  }
 0x13f   :  { %3347 = vmatmul.mubr.msk.bf16.gmra.mrb[16].mxu0 %vm470_vm1, %v3498_v5 }
 0x140   :  { %3351 = vmatmul.mubr.msk.bf16.gmra.mrb[16].mxu1 %vm470_vm1, %v3498_v5  ;;  %545 = vmatprep.mubr.bf16.mxu0 %v3554_v3 }
 0x141   :  { %654 = vmatprep.mubr.bf16.mxu1 %v3554_v3 }
 0x147   :  { %3348 = vmatmul.mubr.msk.bf16.gmra.mrb[20].mxu0 %vm470_vm1, %v3499_v6 }
 0x148   :  { %3352 = vmatmul.mubr.msk.bf16.gmra.mrb[20].mxu1 %vm470_vm1, %v3499_v6  ;;  %914 = vmatprep.mubr.bf16.mxu0 %v3554_v3 }
 0x149   :  { %1099 = vmatprep.mubr.bf16.mxu1 %v3554_v3 }
 0x202   :  { %v517_v11 = vpop.f32.mrb[8].mxu0 }
 0x203   :  { %v518_v14 = vadd.f32 %v517_v11, %v413_v60  ;;  %v626_v16 = vpop.f32.mrb[8].mxu1  ;;  %v519_v17 = vpop.f32.mrb[9].mxu0 }
 0x204   :  { %v627_v18 = vadd.f32 %v626_v16, %v413_v60  ;;  %v520_v19 = vadd.f32 %v519_v17, %v413_v60  ;;  %v628_v20 = vpop.f32.mrb[9].mxu1  ;;  %v521_v21 = vpop.f32.mrb[10].mxu0 }
 0x205   :  { %v629_v22 = vadd.f32 %v628_v20, %v413_v60  ;;  %v522_v23 = vadd.f32 %v521_v21, %v418_v10  ;;  %v630_v24 = vpop.f32.mrb[10].mxu1  ;;  %v523_v25 = vpop.f32.mrb[11].mxu0  ;;  %v556_v29 = vmax.f32 %v518_v14, 0.0 }
 0x206   :  { %v631_v26 = vadd.f32 %v630_v24, %v418_v10  ;;  %v524_v27 = vadd.f32 %v523_v25, %v418_v10  ;;  %v632_v28 = vpop.f32.mrb[11].mxu1  ;;  %v665_v33 = vmax.f32 %v627_v18, 0.0  ;;  %v557_v34 = vmax.f32 %v520_v19, 0.0  ;;  %v438_v14 = vpop.permute.xlu0 %437 }
 0x207   :  { %v558_v30 = vmax.f32 %v522_v23, 0.0  ;;  %v633_v31 = vadd.f32 %v632_v28, %v418_v10  ;;  %v666_v37 = vmax.f32 %v629_v22, 0.0 }
 0x208   :  { %v667_v35 = vmax.f32 %v631_v26, 0.0  ;;  %v559_v36 = vmax.f32 %v524_v27, 0.0 }
 0x209   :  { %v572_v38 = vpack.c.bf16 %v558_v30, %v556_v29  ;;  %v668_v39 = vmax.f32 %v633_v31, 0.0 }
 0x20a   :  { %v681_v41 = vpack.c.bf16 %v667_v35, %v665_v33  ;;  %v573_v42 = vpack.c.bf16 %v559_v36, %v557_v34  ;;  %v527_v43 = vpop.f32.mrb[12].mxu0 }
 0x20b   :  { %v682_v44 = vpack.c.bf16 %v668_v39, %v666_v37  ;;  %v528_v45 = vadd.f32 %v527_v43, %v423_v32  ;;  %v636_v46 = vpop.f32.mrb[12].mxu1  ;;  %v529_v47 = vpop.f32.mrb[13].mxu0 }
 0x20c   :  { %v637_v48 = vadd.f32 %v636_v46, %v423_v32  ;;  %v530_v49 = vadd.f32 %v529_v47, %v423_v32  ;;  %v638_v50 = vpop.f32.mrb[13].mxu1  ;;  %v531_v51 = vpop.f32.mrb[14].mxu0  ;;  %882 = vmatprep.subr.bf16.mxu0 %v573_v42 }
 0x20d   :  { %v639_v52 = vadd.f32 %v638_v50, %v423_v32  ;;  %v532_v53 = vadd.f32 %v531_v51, %v428_v40  ;;  %v640_v54 = vpop.f32.mrb[14].mxu1  ;;  %1067 = vmatprep.subr.bf16.mxu1 %v682_v44  ;;  %v533_v55 = vpop.f32.mrb[15].mxu0  ;;  %883 = vmatpush1.bf16.msra.mxu0 %v572_v38  ;;  %v560_v62 = vmax.f32 %v528_v45, 0.0 }
 0x20e   :  { %v641_v56 = vadd.f32 %v640_v54, %v428_v40  ;;  %v534_v61 = vadd.f32 %v533_v55, %v428_v40  ;;  %v642_v63 = vpop.f32.mrb[15].mxu1  ;;  %1068 = vmatpush1.bf16.msra.mxu1 %v681_v41  ;;  %v669_v2 = vmax.f32 %v637_v48, 0.0  ;;  %v561_v4 = vmax.f32 %v530_v49, 0.0  ;;  %v443_v41 = vpop.permute.xlu1 %442 }
 0x20f   :  { %v562_v0 = vmax.f32 %v532_v53, 0.0  ;;  %v643_v1 = vadd.f32 %v642_v63, %v428_v40  ;;  %v670_v60 = vmax.f32 %v639_v52, 0.0  ;;  %v448_v45 = vpop.permute.xlu0 %447 }
 0x210   :  { %v671_v5 = vmax.f32 %v641_v56, 0.0  ;;  %v563_v6 = vmax.f32 %v534_v61, 0.0 }
 0x211   :  { %v574_v10 = vpack.c.bf16 %v562_v0, %v560_v62  ;;  %v672_v11 = vmax.f32 %v643_v1, 0.0 }
 0x212   :  { %v683_v16 = vpack.c.bf16 %v671_v5, %v669_v2  ;;  %v575_v17 = vpack.c.bf16 %v563_v6, %v561_v4  ;;  %v537_v18 = vpop.f32.mrb[16].mxu0 }
 0x213   :  { %v684_v19 = vpack.c.bf16 %v672_v11, %v670_v60  ;;  %v538_v20 = vadd.f32 %v537_v18, %v433_v7  ;;  %v646_v21 = vpop.f32.mrb[16].mxu1  ;;  %v539_v22 = vpop.f32.mrb[17].mxu0 }
 0x214   :  { %v647_v23 = vadd.f32 %v646_v21, %v433_v7  ;;  %v540_v24 = vadd.f32 %v539_v22, %v433_v7  ;;  %v648_v25 = vpop.f32.mrb[17].mxu1  ;;  %v541_v26 = vpop.f32.mrb[18].mxu0  ;;  %884 = vmatprep.subr.bf16.mxu0 %v575_v17  ;;  %v3500_v22 = vld [vmem:[%s4345_s1 + $0x60] ss:$8 sps:$4 sm:$0xff]  }
 0x215   :  { %v649_v27 = vadd.f32 %v648_v25, %v433_v7  ;;  %v542_v28 = vadd.f32 %v541_v26, %v438_v14  ;;  %v650_v29 = vpop.f32.mrb[18].mxu1  ;;  %1069 = vmatprep.subr.bf16.mxu1 %v684_v19  ;;  %v543_v30 = vpop.f32.mrb[19].mxu0  ;;  %885 = vmatpush1.bf16.msra.mxu0 %v574_v10  ;;  %v564_v34 = vmax.f32 %v538_v20, 0.0  ;;  %v3503_v25 = vld [vmem:[%s4345_s1 + $0x90] ss:$8 sps:$4 sm:$0xff]  }
 0x216   :  { %v651_v31 = vadd.f32 %v650_v29, %v438_v14  ;;  %v544_v32 = vadd.f32 %v543_v30, %v438_v14  ;;  %v652_v33 = vpop.f32.mrb[19].mxu1  ;;  %1070 = vmatpush1.bf16.msra.mxu1 %v683_v16  ;;  %v673_v37 = vmax.f32 %v647_v23, 0.0  ;;  %v565_v38 = vmax.f32 %v540_v24, 0.0  ;;  %v3501_v23 = vld [vmem:[%s4345_s1 + $0x70] ss:$8 sps:$4 sm:$0xff]   ;;  %v1277_v30 = vld [vmem:[%s4346_s2 + $0x8] sm:$0xff] }
 0x217   :  { %v566_v35 = vmax.f32 %v542_v28, 0.0  ;;  %v653_v36 = vadd.f32 %v652_v33, %v438_v14  ;;  %v674_v42 = vmax.f32 %v649_v27, 0.0  ;;  %v3502_v24 = vld [vmem:[%s4345_s1 + $0x80] ss:$8 sps:$4 sm:$0xff]   ;;  %v3505_v27 = vld [vmem:[%s4345_s1 + $0xb0] ss:$8 sps:$4 sm:$0xff]  }
 0x218   :  { %v675_v39 = vmax.f32 %v651_v31, 0.0  ;;  %v567_v40 = vmax.f32 %v544_v32, 0.0  ;;  %v3504_v26 = vld [vmem:[%s4345_s1 + $0xa0] ss:$8 sps:$4 sm:$0xff]   ;;  %v3507_v29 = vld [vmem:[%s4345_s1 + $0xd0] ss:$8 sps:$4 sm:$0xff]  }
 0x219   :  { %v576_v43 = vpack.c.bf16 %v566_v35, %v564_v34  ;;  %v676_v44 = vmax.f32 %v653_v36, 0.0  ;;  %v3506_v28 = vld [vmem:[%s4345_s1 + $0xc0] ss:$8 sps:$4 sm:$0xff]   ;;  %v3557_v32 = vmov 3   ;;  %v1278_v33 = vld [vmem:[%s4346_s2 + $0x10] sm:$0xff]  ;;  %v1279_v34 = vld [vmem:[%s4346_s2 + $0x18] sm:$0xff] }
 0x21a   :  { %v685_v46 = vpack.c.bf16 %v675_v39, %v673_v37  ;;  %v577_v47 = vpack.c.bf16 %v567_v40, %v565_v38  ;;  %v547_v48 = vpop.f32.mrb[20].mxu0  ;;  %v1276_v31 = vld [vmem:[%s4346_s2] sm:$0xff]  ;;  %3487 = vset.pattern.permute.xlu1 %v3557_v32  ;;  %3486 = vset.pattern.permute.xlu0 %v3557_v32  ;;  %v1281_v36 = vld [vmem:[%s4346_s2 + $0x28] sm:$0xff]  ;;  %v1282_v37 = vld [vmem:[%s4346_s2 + $0x30] sm:$0xff]  ;;  %v740_v39 = vpop.permute.xlu1 %739 }
 0x21b   :  { %v686_v49 = vpack.c.bf16 %v676_v44, %v674_v42  ;;  %v548_v50 = vadd.f32 %v547_v48, %v443_v41  ;;  %v656_v51 = vpop.f32.mrb[20].mxu1  ;;  %v549_v52 = vpop.f32.mrb[21].mxu0  ;;  %1331 = vperm.xlu1 %3487, %v1277_v30   ;;  %1326 = vperm.xlu0 %3486, %v1276_v31   ;;  %v1280_v35 = vld [vmem:[%s4346_s2 + $0x20] sm:$0xff]  ;;  %v1283_v38 = vld [vmem:[%s4346_s2 + $0x38] sm:$0xff]  ;;  %v1294_v44 = vld [vmem:[%s4346_s2 + $0x90] sm:$0xff] }
 0x21c   :  { %v657_v53 = vadd.f32 %v656_v51, %v443_v41  ;;  %v550_v54 = vadd.f32 %v549_v52, %v443_v41  ;;  %v658_v55 = vpop.f32.mrb[21].mxu1  ;;  %v551_v56 = vpop.f32.mrb[22].mxu0  ;;  %886 = vmatprep.subr.bf16.mxu0 %v577_v47 }
 0x21d   :  { %v659_v61 = vadd.f32 %v658_v55, %v443_v41  ;;  %v552_v63 = vadd.f32 %v551_v56, %v448_v45  ;;  %v660_v62 = vpop.f32.mrb[22].mxu1  ;;  %1071 = vmatprep.subr.bf16.mxu1 %v686_v49  ;;  %v553_v0 = vpop.f32.mrb[23].mxu0  ;;  %887 = vmatpush1.bf16.msra.mxu0 %v576_v43  ;;  %v568_v5 = vmax.f32 %v548_v50, 0.0 }
 0x21e   :  { %v661_v1 = vadd.f32 %v660_v62, %v448_v45  ;;  %v554_v2 = vadd.f32 %v553_v0, %v448_v45  ;;  %v662_v4 = vpop.f32.mrb[23].mxu1  ;;  %1072 = vmatpush1.bf16.msra.mxu1 %v685_v46  ;;  %v677_v60 = vmax.f32 %v657_v53, 0.0  ;;  %v569_v10 = vmax.f32 %v550_v54, 0.0  ;;  %v745_v40 = vpop.permute.xlu0 %744 }
 0x21f   :  { %v570_v6 = vmax.f32 %v552_v63, 0.0  ;;  %v663_v7 = vadd.f32 %v662_v4, %v448_v45  ;;  %v678_v16 = vmax.f32 %v659_v61, 0.0  ;;  %1336 = vperm.xlu1 %3487, %v1278_v33   ;;  %1341 = vperm.xlu0 %3486, %v1279_v34   ;;  %v1295_v45 = vld [vmem:[%s4346_s2 + $0x98] sm:$0xff]  ;;  %v1296_v4 = vld [vmem:[%s4346_s2 + $0xa0] sm:$0xff] }
 0x220   :  { %v679_v11 = vmax.f32 %v661_v1, 0.0  ;;  %v571_v14 = vmax.f32 %v554_v2, 0.0 }
 0x221   :  { %v578_v17 = vpack.c.bf16 %v570_v6, %v568_v5  ;;  %v680_v18 = vmax.f32 %v663_v7, 0.0  ;;  %v1297_v5 = vld [vmem:[%s4346_s2 + $0xa8] sm:$0xff] }
 0x222   :  { %v687_v19 = vpack.c.bf16 %v679_v11, %v677_v60  ;;  %v579_v20 = vpack.c.bf16 %v571_v14, %v569_v10 }
 0x223   :  { %v688_v21 = vpack.c.bf16 %v680_v18, %v678_v16  ;;  %1346 = vperm.xlu1 %3487, %v1280_v35   ;;  %1351 = vperm.xlu0 %3486, %v1281_v36  }
 0x224   :  { %888 = vmatprep.subr.bf16.mxu0 %v579_v20 }
 0x225   :  { %1073 = vmatprep.subr.bf16.mxu1 %v688_v21  ;;  %889 = vmatpush1.bf16.msra.mxu0 %v578_v17 }
 0x226   :  { %1074 = vmatpush1.bf16.msra.mxu1 %v687_v19 }
 0x227   :  { %1356 = vperm.xlu1 %3487, %v1282_v37   ;;  %1361 = vperm.xlu0 %3486, %v1283_v38   ;;  %v760_v38 = vpop.permute.xlu0 %759 }
 0x228   :  { %3361 = vmatmul.mubr.msk.bf16.vlgmr.msra.gmra.mrb[24].mxu0 %vm857_vm2, %v3500_v22 }
 0x229   :  { %3369 = vmatmul.mubr.msk.bf16.vlgmr.msra.gmra.mrb[24].mxu1 %vm857_vm2, %v3500_v22  ;;  %924 = vmatprep.mubr.bf16.mxu0 %v3554_v3  ;;  %v1298_v22 = vld [vmem:[%s4346_s2 + $0xb0] sm:$0xff] }
 0x22a   :  { %1109 = vmatprep.mubr.bf16.mxu1 %v3554_v3 }
 0x22b   :  { %1366 = vperm.xlu1 %3487, %v3919_v8   ;;  %1371 = vperm.xlu0 %3486, %v3933_v12   ;;  %v1292_v8 = vld [vmem:[%s4346_s2 + $0x80] sm:$0xff]  ;;  %v750_v12 = vpop.permute.xlu1 %749 }
 0x22f   :  { %1376 = vperm.xlu1 %3487, %v3926_v9   ;;  %1381 = vperm.xlu0 %3486, %v3945_v15   ;;  %v1293_v9 = vld [vmem:[%s4346_s2 + $0x88] sm:$0xff]  ;;  %v755_v6 = vpop.permute.xlu1 %754 }
 0x230   :  { %3362 = vmatmul.mubr.msk.bf16.gmra.mrb[28].mxu0 %vm857_vm2, %v3501_v23 }
 0x231   :  { %3370 = vmatmul.mubr.msk.bf16.gmra.mrb[28].mxu1 %vm857_vm2, %v3501_v23  ;;  %934 = vmatprep.mubr.bf16.mxu0 %v3554_v3  ;;  %v1299_v23 = vld [vmem:[%s4346_s2 + $0xb8] sm:$0xff] }
 0x232   :  { %1119 = vmatprep.mubr.bf16.mxu1 %v3554_v3 }
 0x233   :  { %1386 = vperm.xlu1 %3487, %v3938_v13   ;;  %1391 = vperm.xlu0 %3486, %v3957_v58  }
 0x237   :  { %1396 = vperm.xlu1 %3487, %v3950_v57   ;;  %1401 = vperm.xlu0 %3486, %v3963_v59  }
 0x238   :  { %3363 = vmatmul.mubr.msk.bf16.gmra.mrb[32].mxu0 %vm857_vm2, %v3502_v24 }
 0x239   :  { %3371 = vmatmul.mubr.msk.bf16.gmra.mrb[32].mxu1 %vm857_vm2, %v3502_v24  ;;  %944 = vmatprep.mubr.bf16.mxu0 %v3554_v3 }
 0x23a   :  { %1129 = vmatprep.mubr.bf16.mxu1 %v3554_v3 }
 0x23b   :  { %1406 = vperm.xlu1 %3487, %v1292_v8   ;;  %1411 = vperm.xlu0 %3486, %v1293_v9   ;;  %v1300_v9 = vld [vmem:[%s4346_s2 + $0xc0] sm:$0xff] }
 0x23f   :  { %1416 = vperm.xlu1 %3487, %v1294_v44   ;;  %1421 = vperm.xlu0 %3486, %v1295_v45  }
 0x240   :  { %3364 = vmatmul.mubr.msk.bf16.gmra.mrb[36].mxu0 %vm857_vm2, %v3503_v25 }
 0x241   :  { %3372 = vmatmul.mubr.msk.bf16.gmra.mrb[36].mxu1 %vm857_vm2, %v3503_v25  ;;  %954 = vmatprep.mubr.bf16.mxu0 %v3554_v3 }
 0x242   :  { %1139 = vmatprep.mubr.bf16.mxu1 %v3554_v3 }
 0x243   :  { %1426 = vperm.xlu1 %3487, %v1296_v4   ;;  %1431 = vperm.xlu0 %3486, %v1297_v5   ;;  %v770_v5 = vpop.permute.xlu0 %769 }
 0x247   :  { %1436 = vperm.xlu1 %3487, %v1298_v22   ;;  %1441 = vperm.xlu0 %3486, %v1299_v23  }
 0x248   :  { %3365 = vmatmul.mubr.msk.bf16.gmra.mrb[40].mxu0 %vm857_vm2, %v3504_v26 }
 0x249   :  { %3373 = vmatmul.mubr.msk.bf16.gmra.mrb[40].mxu1 %vm857_vm2, %v3504_v26  ;;  %964 = vmatprep.mubr.bf16.mxu0 %v3554_v3 }
 0x24a   :  { %1149 = vmatprep.mubr.bf16.mxu1 %v3554_v3 }
 0x24b   :  { %1446 = vperm.xlu1 %3487, %v1300_v9  }
 0x250   :  { %3366 = vmatmul.mubr.msk.bf16.gmra.mrb[44].mxu0 %vm857_vm2, %v3505_v27 }
 0x251   :  { %3374 = vmatmul.mubr.msk.bf16.gmra.mrb[44].mxu1 %vm857_vm2, %v3505_v27  ;;  %974 = vmatprep.mubr.bf16.mxu0 %v3554_v3 }
 0x252   :  { %1159 = vmatprep.mubr.bf16.mxu1 %v3554_v3 }
 0x258   :  { %3367 = vmatmul.mubr.msk.bf16.gmra.mrb[48].mxu0 %vm857_vm2, %v3506_v28 }
 0x259   :  { %3375 = vmatmul.mubr.msk.bf16.gmra.mrb[48].mxu1 %vm857_vm2, %v3506_v28  ;;  %984 = vmatprep.mubr.bf16.mxu0 %v3554_v3 }
 0x25a   :  { %1169 = vmatprep.mubr.bf16.mxu1 %v3554_v3 }
 0x260   :  { %3368 = vmatmul.mubr.msk.bf16.gmra.mrb[52].mxu0 %vm857_vm2, %v3507_v29 }
 0x261   :  { %3376 = vmatmul.mubr.msk.bf16.gmra.mrb[52].mxu1 %vm857_vm2, %v3507_v29  ;;  %1612 = vmatprep.mubr.bf16.mxu0 %v3554_v3 }
 0x262   :  { %1949 = vmatprep.mubr.bf16.mxu1 %v3554_v3 }
 0x2fb   :  { %v916_v15 = vpop.f32.mrb[24].mxu0 }
 0x2fc   :  { %v917_v41 = vadd.f32 %v916_v15, %v740_v39  ;;  %v1101_v13 = vpop.f32.mrb[24].mxu1  ;;  %v918_v42 = vpop.f32.mrb[25].mxu0 }
 0x2fd   :  { %v1102_v58 = vadd.f32 %v1101_v13, %v740_v39  ;;  %v919_v57 = vadd.f32 %v918_v42, %v740_v39  ;;  %v1103_v43 = vpop.f32.mrb[25].mxu1  ;;  %v920_v59 = vpop.f32.mrb[26].mxu0 }
 0x2fe   :  { %v1104_v46 = vadd.f32 %v1103_v43, %v740_v39  ;;  %v921_v47 = vadd.f32 %v920_v59, %v745_v40  ;;  %v1105_v48 = vpop.f32.mrb[26].mxu1  ;;  %v922_v49 = vpop.f32.mrb[27].mxu0  ;;  %v995_v53 = vmax.f32 %v917_v41, 0.0 }
 0x2ff   :  { %v1106_v50 = vadd.f32 %v1105_v48, %v745_v40  ;;  %v923_v51 = vadd.f32 %v922_v49, %v745_v40  ;;  %v1107_v52 = vpop.f32.mrb[27].mxu1  ;;  %v1180_v56 = vmax.f32 %v1102_v58, 0.0  ;;  %v996_v61 = vmax.f32 %v919_v57, 0.0  ;;  %v765_v15 = vpop.permute.xlu1 %764  ;;  %v1302_v48 = vld [vmem:[%s4346_s2 + $0xd0] sm:$0xff]  ;;  %v1303_v49 = vld [vmem:[%s4346_s2 + $0xd8] sm:$0xff] }
 0x300   :  { %v997_v54 = vmax.f32 %v921_v47, 0.0  ;;  %v1108_v55 = vadd.f32 %v1107_v52, %v745_v40  ;;  %v1181_v0 = vmax.f32 %v1104_v46, 0.0  ;;  %1456 = vperm.xlu1 %3487, %v1302_v48  }
 0x301   :  { %v1182_v63 = vmax.f32 %v1106_v50, 0.0  ;;  %v998_v62 = vmax.f32 %v923_v51, 0.0 }
 0x302   :  { %v1027_v1 = vpack.c.bf16 %v997_v54, %v995_v53  ;;  %v1183_v2 = vmax.f32 %v1108_v55, 0.0 }
 0x303   :  { %v1212_v7 = vpack.c.bf16 %v1182_v63, %v1180_v56  ;;  %v1028_v60 = vpack.c.bf16 %v998_v62, %v996_v61  ;;  %v926_v10 = vpop.f32.mrb[28].mxu0 }
 0x304   :  { %v1213_v11 = vpack.c.bf16 %v1183_v2, %v1181_v0  ;;  %v927_v14 = vadd.f32 %v926_v10, %v750_v12  ;;  %v1111_v16 = vpop.f32.mrb[28].mxu1  ;;  %v928_v17 = vpop.f32.mrb[29].mxu0  ;;  %v1304_v10 = vld [vmem:[%s4346_s2 + $0xe0] sm:$0xff] }
 0x305   :  { %v1112_v18 = vadd.f32 %v1111_v16, %v750_v12  ;;  %v929_v19 = vadd.f32 %v928_v17, %v750_v12  ;;  %v1113_v20 = vpop.f32.mrb[29].mxu1  ;;  %v930_v21 = vpop.f32.mrb[30].mxu0  ;;  %1580 = vmatprep.subr.bf16.mxu0 %v1028_v60  ;;  %1466 = vperm.xlu1 %3487, %v1304_v10  }
 0x306   :  { %v1114_v24 = vadd.f32 %v1113_v20, %v750_v12  ;;  %v931_v25 = vadd.f32 %v930_v21, %v755_v6  ;;  %v1115_v26 = vpop.f32.mrb[30].mxu1  ;;  %1917 = vmatprep.subr.bf16.mxu1 %v1213_v11  ;;  %v932_v27 = vpop.f32.mrb[31].mxu0  ;;  %1581 = vmatpush1.bf16.msra.mxu0 %v1027_v1  ;;  %v999_v31 = vmax.f32 %v927_v14, 0.0  ;;  %v1301_v12 = vld [vmem:[%s4346_s2 + $0xc8] sm:$0xff] }
 0x307   :  { %v1116_v28 = vadd.f32 %v1115_v26, %v755_v6  ;;  %v933_v29 = vadd.f32 %v932_v27, %v755_v6  ;;  %v1117_v30 = vpop.f32.mrb[31].mxu1  ;;  %1918 = vmatpush1.bf16.msra.mxu1 %v1212_v7  ;;  %v1184_v34 = vmax.f32 %v1112_v18, 0.0  ;;  %v1000_v35 = vmax.f32 %v929_v19, 0.0  ;;  %1451 = vperm.xlu0 %3486, %v1301_v12   ;;  %v1305_v11 = vld [vmem:[%s4346_s2 + $0xe8] sm:$0xff]  ;;  %v775_v14 = vpop.permute.xlu1 %774  ;;  %v1306_v27 = vld [vmem:[%s4346_s2 + $0xf0] sm:$0xff] }
 0x308   :  { %v1001_v32 = vmax.f32 %v931_v25, 0.0  ;;  %v1118_v33 = vadd.f32 %v1117_v30, %v755_v6  ;;  %v1185_v39 = vmax.f32 %v1114_v24, 0.0  ;;  %v780_v12 = vpop.permute.xlu0 %779 }
 0x309   :  { %v1186_v36 = vmax.f32 %v1116_v28, 0.0  ;;  %v1002_v37 = vmax.f32 %v933_v29, 0.0  ;;  %v1307_v28 = vld [vmem:[%s4346_s2 + $0xf8] sm:$0xff]  ;;  %1476 = vperm.xlu1 %3487, %v1306_v27  }
 0x30a   :  { %v1029_v40 = vpack.c.bf16 %v1001_v32, %v999_v31  ;;  %v1187_v8 = vmax.f32 %v1118_v33, 0.0 }
 0x30b   :  { %v1214_v41 = vpack.c.bf16 %v1186_v36, %v1184_v34  ;;  %v1030_v13 = vpack.c.bf16 %v1002_v37, %v1000_v35  ;;  %v936_v42 = vpop.f32.mrb[32].mxu0  ;;  %1461 = vperm.xlu0 %3486, %v1303_v49  }
 0x30c   :  { %v1215_v58 = vpack.c.bf16 %v1187_v8, %v1185_v39  ;;  %v937_v57 = vadd.f32 %v936_v42, %v760_v38  ;;  %v1121_v43 = vpop.f32.mrb[32].mxu1  ;;  %v938_v59 = vpop.f32.mrb[33].mxu0 }
 0x30d   :  { %v1122_v44 = vadd.f32 %v1121_v43, %v760_v38  ;;  %v939_v45 = vadd.f32 %v938_v59, %v760_v38  ;;  %v1123_v46 = vpop.f32.mrb[33].mxu1  ;;  %v940_v47 = vpop.f32.mrb[34].mxu0  ;;  %1582 = vmatprep.subr.bf16.mxu0 %v1030_v13 }
 0x30e   :  { %v1124_v50 = vadd.f32 %v1123_v46, %v760_v38  ;;  %v941_v51 = vadd.f32 %v940_v47, %v765_v15  ;;  %v1125_v52 = vpop.f32.mrb[34].mxu1  ;;  %1919 = vmatprep.subr.bf16.mxu1 %v1215_v58  ;;  %v942_v53 = vpop.f32.mrb[35].mxu0  ;;  %1583 = vmatpush1.bf16.msra.mxu0 %v1029_v40  ;;  %v1003_v61 = vmax.f32 %v937_v57, 0.0 }
 0x30f   :  { %v1126_v54 = vadd.f32 %v1125_v52, %v765_v15  ;;  %v943_v55 = vadd.f32 %v942_v53, %v765_v15  ;;  %v1127_v56 = vpop.f32.mrb[35].mxu1  ;;  %1920 = vmatpush1.bf16.msra.mxu1 %v1214_v41  ;;  %v1188_v0 = vmax.f32 %v1122_v44, 0.0  ;;  %v1004_v1 = vmax.f32 %v939_v45, 0.0  ;;  %1471 = vperm.xlu0 %3486, %v1305_v11   ;;  %v785_v42 = vpop.permute.xlu1 %784 }
 0x310   :  { %v1005_v63 = vmax.f32 %v941_v51, 0.0  ;;  %v1128_v62 = vadd.f32 %v1127_v56, %v765_v15  ;;  %v1189_v6 = vmax.f32 %v1124_v50, 0.0 }
 0x311   :  { %v1190_v2 = vmax.f32 %v1126_v54, 0.0  ;;  %v1006_v4 = vmax.f32 %v943_v55, 0.0 }
 0x312   :  { %v1031_v7 = vpack.c.bf16 %v1005_v63, %v1003_v61  ;;  %v1191_v60 = vmax.f32 %v1128_v62, 0.0 }
 0x313   :  { %v1216_v16 = vpack.c.bf16 %v1190_v2, %v1188_v0  ;;  %v1032_v17 = vpack.c.bf16 %v1006_v4, %v1004_v1  ;;  %v946_v18 = vpop.f32.mrb[36].mxu0  ;;  %1481 = vperm.xlu0 %3486, %v1307_v28   ;;  %v795_v11 = vpop.permute.xlu1 %794 }
 0x314   :  { %v1217_v19 = vpack.c.bf16 %v1191_v60, %v1189_v6  ;;  %v947_v20 = vadd.f32 %v946_v18, %v770_v5  ;;  %v1131_v21 = vpop.f32.mrb[36].mxu1  ;;  %v948_v22 = vpop.f32.mrb[37].mxu0 }
 0x315   :  { %v1132_v23 = vadd.f32 %v1131_v21, %v770_v5  ;;  %v949_v24 = vadd.f32 %v948_v22, %v770_v5  ;;  %v1133_v25 = vpop.f32.mrb[37].mxu1  ;;  %v950_v26 = vpop.f32.mrb[38].mxu0  ;;  %1584 = vmatprep.subr.bf16.mxu0 %v1032_v17 }
 0x316   :  { %v1134_v29 = vadd.f32 %v1133_v25, %v770_v5  ;;  %v951_v30 = vadd.f32 %v950_v26, %v775_v14  ;;  %v1135_v31 = vpop.f32.mrb[38].mxu1  ;;  %1921 = vmatprep.subr.bf16.mxu1 %v1217_v19  ;;  %v952_v32 = vpop.f32.mrb[39].mxu0  ;;  %1585 = vmatpush1.bf16.msra.mxu0 %v1031_v7  ;;  %v1007_v36 = vmax.f32 %v947_v20, 0.0 }
 0x317   :  { %v1136_v33 = vadd.f32 %v1135_v31, %v775_v14  ;;  %v953_v34 = vadd.f32 %v952_v32, %v775_v14  ;;  %v1137_v35 = vpop.f32.mrb[39].mxu1  ;;  %1922 = vmatpush1.bf16.msra.mxu1 %v1216_v16  ;;  %v1192_v39 = vmax.f32 %v1132_v23, 0.0  ;;  %v1008_v40 = vmax.f32 %v949_v24, 0.0  ;;  %v790_v6 = vpop.permute.xlu0 %789 }
 0x318   :  { %v1009_v37 = vmax.f32 %v951_v30, 0.0  ;;  %v1138_v38 = vadd.f32 %v1137_v35, %v775_v14  ;;  %v1193_v15 = vmax.f32 %v1134_v29, 0.0 }
 0x319   :  { %v1194_v8 = vmax.f32 %v1136_v33, 0.0  ;;  %v1010_v9 = vmax.f32 %v953_v34, 0.0 }
 0x31a   :  { %v1033_v41 = vpack.c.bf16 %v1009_v37, %v1007_v36  ;;  %v1195_v13 = vmax.f32 %v1138_v38, 0.0 }
 0x31b   :  { %v1218_v58 = vpack.c.bf16 %v1194_v8, %v1192_v39  ;;  %v1034_v57 = vpack.c.bf16 %v1010_v9, %v1008_v40  ;;  %v956_v43 = vpop.f32.mrb[40].mxu0  ;;  %v800_v40 = vpop.permute.xlu0 %799 }
 0x31c   :  { %v1219_v59 = vpack.c.bf16 %v1195_v13, %v1193_v15  ;;  %v957_v44 = vadd.f32 %v956_v43, %v780_v12  ;;  %v1141_v45 = vpop.f32.mrb[40].mxu1  ;;  %v958_v46 = vpop.f32.mrb[41].mxu0 }
 0x31d   :  { %v1142_v47 = vadd.f32 %v1141_v45, %v780_v12  ;;  %v959_v48 = vadd.f32 %v958_v46, %v780_v12  ;;  %v1143_v49 = vpop.f32.mrb[41].mxu1  ;;  %v960_v50 = vpop.f32.mrb[42].mxu0  ;;  %1586 = vmatprep.subr.bf16.mxu0 %v1034_v57 }
 0x31e   :  { %v1144_v51 = vadd.f32 %v1143_v49, %v780_v12  ;;  %v961_v52 = vadd.f32 %v960_v50, %v785_v42  ;;  %v1145_v53 = vpop.f32.mrb[42].mxu1  ;;  %1923 = vmatprep.subr.bf16.mxu1 %v1219_v59  ;;  %v962_v54 = vpop.f32.mrb[43].mxu0  ;;  %1587 = vmatpush1.bf16.msra.mxu0 %v1033_v41  ;;  %v1011_v63 = vmax.f32 %v957_v44, 0.0 }
 0x31f   :  { %v1146_v55 = vadd.f32 %v1145_v53, %v785_v42  ;;  %v963_v56 = vadd.f32 %v962_v54, %v785_v42  ;;  %v1147_v61 = vpop.f32.mrb[43].mxu1  ;;  %1924 = vmatpush1.bf16.msra.mxu1 %v1218_v58  ;;  %v1196_v1 = vmax.f32 %v1142_v47, 0.0  ;;  %v1012_v2 = vmax.f32 %v959_v48, 0.0  ;;  %v805_v15 = vpop.permute.xlu1 %804 }
 0x320   :  { %v1013_v62 = vmax.f32 %v961_v52, 0.0  ;;  %v1148_v0 = vadd.f32 %v1147_v61, %v785_v42  ;;  %v1197_v7 = vmax.f32 %v1144_v51, 0.0 }
 0x321   :  { %v1198_v4 = vmax.f32 %v1146_v55, 0.0  ;;  %v1014_v5 = vmax.f32 %v963_v56, 0.0 }
 0x322   :  { %v1035_v60 = vpack.c.bf16 %v1013_v62, %v1011_v63  ;;  %v1199_v10 = vmax.f32 %v1148_v0, 0.0 }
 0x323   :  { %v1220_v14 = vpack.c.bf16 %v1198_v4, %v1196_v1  ;;  %v1036_v16 = vpack.c.bf16 %v1014_v5, %v1012_v2  ;;  %v966_v17 = vpop.f32.mrb[44].mxu0  ;;  %v815_v2 = vpop.permute.xlu1 %814 }
 0x324   :  { %v1221_v18 = vpack.c.bf16 %v1199_v10, %v1197_v7  ;;  %v967_v19 = vadd.f32 %v966_v17, %v790_v6  ;;  %v1151_v20 = vpop.f32.mrb[44].mxu1  ;;  %v968_v21 = vpop.f32.mrb[45].mxu0 }
 0x325   :  { %v1152_v22 = vadd.f32 %v1151_v20, %v790_v6  ;;  %v969_v23 = vadd.f32 %v968_v21, %v790_v6  ;;  %v1153_v24 = vpop.f32.mrb[45].mxu1  ;;  %v970_v25 = vpop.f32.mrb[46].mxu0  ;;  %1588 = vmatprep.subr.bf16.mxu0 %v1036_v16 }
 0x326   :  { %v1154_v26 = vadd.f32 %v1153_v24, %v790_v6  ;;  %v971_v27 = vadd.f32 %v970_v25, %v795_v11  ;;  %v1155_v28 = vpop.f32.mrb[46].mxu1  ;;  %1925 = vmatprep.subr.bf16.mxu1 %v1221_v18  ;;  %v972_v29 = vpop.f32.mrb[47].mxu0  ;;  %1589 = vmatpush1.bf16.msra.mxu0 %v1035_v60  ;;  %v1015_v33 = vmax.f32 %v967_v19, 0.0 }
 0x327   :  { %v1156_v30 = vadd.f32 %v1155_v28, %v795_v11  ;;  %v973_v31 = vadd.f32 %v972_v29, %v795_v11  ;;  %v1157_v32 = vpop.f32.mrb[47].mxu1  ;;  %1926 = vmatpush1.bf16.msra.mxu1 %v1220_v14  ;;  %v1200_v36 = vmax.f32 %v1152_v22, 0.0  ;;  %v1016_v37 = vmax.f32 %v969_v23, 0.0  ;;  %v810_v7 = vpop.permute.xlu0 %809 }
 0x328   :  { %v1017_v34 = vmax.f32 %v971_v27, 0.0  ;;  %v1158_v35 = vadd.f32 %v1157_v32, %v795_v11  ;;  %v1201_v8 = vmax.f32 %v1154_v26, 0.0 }
 0x329   :  { %v1202_v38 = vmax.f32 %v1156_v30, 0.0  ;;  %v1018_v39 = vmax.f32 %v973_v31, 0.0 }
 0x32a   :  { %v1037_v9 = vpack.c.bf16 %v1017_v34, %v1015_v33  ;;  %v1203_v12 = vmax.f32 %v1158_v35, 0.0 }
 0x32b   :  { %v1222_v41 = vpack.c.bf16 %v1202_v38, %v1200_v36  ;;  %v1038_v13 = vpack.c.bf16 %v1018_v39, %v1016_v37  ;;  %v976_v42 = vpop.f32.mrb[48].mxu0 }
 0x32c   :  { %v1223_v58 = vpack.c.bf16 %v1203_v12, %v1201_v8  ;;  %v977_v57 = vadd.f32 %v976_v42, %v800_v40  ;;  %v1161_v43 = vpop.f32.mrb[48].mxu1  ;;  %v978_v59 = vpop.f32.mrb[49].mxu0  ;;  %v3508_v12 = vld [vmem:[%s4345_s1 + $0xe0] ss:$8 sps:$4 sm:$0xff]  }
 0x32d   :  { %v1162_v44 = vadd.f32 %v1161_v43, %v800_v40  ;;  %v979_v45 = vadd.f32 %v978_v59, %v800_v40  ;;  %v1163_v46 = vpop.f32.mrb[49].mxu1  ;;  %v980_v47 = vpop.f32.mrb[50].mxu0  ;;  %1590 = vmatprep.subr.bf16.mxu0 %v1038_v13  ;;  %v3511_v13 = vld [vmem:[%s4345_s1 + $0x110] ss:$8 sps:$4 sm:$0xff]   ;;  %v3512_v42 = vld [vmem:[%s4345_s1 + $0x120] ss:$8 sps:$4 sm:$0xff]  }
 0x32e   :  { %v1164_v48 = vadd.f32 %v1163_v46, %v800_v40  ;;  %v981_v49 = vadd.f32 %v980_v47, %v805_v15  ;;  %v1165_v50 = vpop.f32.mrb[50].mxu1  ;;  %1927 = vmatprep.subr.bf16.mxu1 %v1223_v58  ;;  %v982_v51 = vpop.f32.mrb[51].mxu0  ;;  %1591 = vmatpush1.bf16.msra.mxu0 %v1037_v9  ;;  %v1019_v55 = vmax.f32 %v977_v57, 0.0  ;;  %v3513_v58 = vld [vmem:[%s4345_s1 + $0x130] ss:$8 sps:$4 sm:$0xff]  }
 0x32f   :  { %v1166_v52 = vadd.f32 %v1165_v50, %v805_v15  ;;  %v983_v53 = vadd.f32 %v982_v51, %v805_v15  ;;  %v1167_v54 = vpop.f32.mrb[51].mxu1  ;;  %1928 = vmatpush1.bf16.msra.mxu1 %v1222_v41  ;;  %v1204_v63 = vmax.f32 %v1162_v44, 0.0  ;;  %v1020_v62 = vmax.f32 %v979_v45, 0.0  ;;  %v3510_v41 = vld [vmem:[%s4345_s1 + $0x100] ss:$8 sps:$4 sm:$0xff]   ;;  %v1327_v51 = vpop.permute.xlu0 %1326 }
 0x330   :  { %v1021_v56 = vmax.f32 %v981_v49, 0.0  ;;  %v1168_v61 = vadd.f32 %v1167_v54, %v805_v15  ;;  %v1205_v4 = vmax.f32 %v1164_v48, 0.0  ;;  %v3509_v15 = vld [vmem:[%s4345_s1 + $0xf0] ss:$8 sps:$4 sm:$0xff]   ;;  %v3514_v57 = vld [vmem:[%s4345_s1 + $0x140] ss:$8 sps:$4 sm:$0xff]  }
 0x331   :  { %v1206_v0 = vmax.f32 %v1166_v52, 0.0  ;;  %v1022_v1 = vmax.f32 %v983_v53, 0.0  ;;  %v3515_v43 = vld [vmem:[%s4345_s1 + $0x150] ss:$8 sps:$4 sm:$0xff]   ;;  %v3516_v59 = vld [vmem:[%s4345_s1 + $0x160] ss:$8 sps:$4 sm:$0xff]   ;;  %v1332_v52 = vpop.permute.xlu1 %1331 }
 0x332   :  { %v1039_v5 = vpack.c.bf16 %v1021_v56, %v1019_v55  ;;  %v1207_v6 = vmax.f32 %v1168_v61, 0.0  ;;  %v3517_v44 = vld [vmem:[%s4345_s1 + $0x170] ss:$8 sps:$4 sm:$0xff]   ;;  %v3518_v45 = vld [vmem:[%s4345_s1 + $0x180] ss:$8 sps:$4 sm:$0xff]  }
 0x333   :  { %v1224_v60 = vpack.c.bf16 %v1206_v0, %v1204_v63  ;;  %v1040_v10 = vpack.c.bf16 %v1022_v1, %v1020_v62  ;;  %v986_v11 = vpop.f32.mrb[52].mxu0  ;;  %v3519_v46 = vld [vmem:[%s4345_s1 + $0x190] ss:$8 sps:$4 sm:$0xff]   ;;  %v3520_v47 = vld [vmem:[%s4345_s1 + $0x1a0] ss:$8 sps:$4 sm:$0xff]  }
 0x334   :  { %v1225_v14 = vpack.c.bf16 %v1207_v6, %v1205_v4  ;;  %v987_v16 = vadd.f32 %v986_v11, %v810_v7  ;;  %v1171_v17 = vpop.f32.mrb[52].mxu1  ;;  %v988_v18 = vpop.f32.mrb[53].mxu0  ;;  %v3521_v48 = vld [vmem:[%s4345_s1 + $0x1b0] ss:$8 sps:$4 sm:$0xff]   ;;  %v3522_v49 = vld [vmem:[%s4345_s1 + $0x1c0] ss:$8 sps:$4 sm:$0xff]  }
 0x335   :  { %v1172_v19 = vadd.f32 %v1171_v17, %v810_v7  ;;  %v989_v20 = vadd.f32 %v988_v18, %v810_v7  ;;  %v1173_v21 = vpop.f32.mrb[53].mxu1  ;;  %v990_v22 = vpop.f32.mrb[54].mxu0  ;;  %1592 = vmatprep.subr.bf16.mxu0 %v1040_v10  ;;  %v3523_v50 = vld [vmem:[%s4345_s1 + $0x1d0] ss:$8 sps:$4 sm:$0xff]  }
 0x336   :  { %v1174_v23 = vadd.f32 %v1173_v21, %v810_v7  ;;  %v991_v24 = vadd.f32 %v990_v22, %v815_v2  ;;  %v1175_v25 = vpop.f32.mrb[54].mxu1  ;;  %1929 = vmatprep.subr.bf16.mxu1 %v1225_v14  ;;  %v992_v26 = vpop.f32.mrb[55].mxu0  ;;  %1593 = vmatpush1.bf16.msra.mxu0 %v1039_v5  ;;  %v1023_v30 = vmax.f32 %v987_v16, 0.0  ;;  %v3526_v16 = vld [vmem:[%s4345_s1 + $0x1e4] ss:$8 sps:$4 sm:$0xff]  }
 0x337   :  { %v1176_v27 = vadd.f32 %v1175_v25, %v815_v2  ;;  %v993_v28 = vadd.f32 %v992_v26, %v815_v2  ;;  %v1177_v29 = vpop.f32.mrb[55].mxu1  ;;  %1930 = vmatpush1.bf16.msra.mxu1 %v1224_v60  ;;  %v1208_v33 = vmax.f32 %v1172_v19, 0.0  ;;  %v1024_v34 = vmax.f32 %v989_v20, 0.0  ;;  %v1337_v17 = vpop.permute.xlu1 %1336 }
 0x338   :  { %v1025_v31 = vmax.f32 %v991_v24, 0.0  ;;  %v1178_v32 = vadd.f32 %v1177_v29, %v815_v2  ;;  %v1209_v37 = vmax.f32 %v1174_v23, 0.0  ;;  %v1342_v25 = vpop.permute.xlu0 %1341 }
 0x339   :  { %v1210_v35 = vmax.f32 %v1176_v27, 0.0  ;;  %v1026_v36 = vmax.f32 %v993_v28, 0.0 }
 0x33a   :  { %v1041_v38 = vpack.c.bf16 %v1025_v31, %v1023_v30  ;;  %v1211_v39 = vmax.f32 %v1178_v32, 0.0 }
 0x33b   :  { %v1226_v40 = vpack.c.bf16 %v1210_v35, %v1208_v33  ;;  %v1042_v8 = vpack.c.bf16 %v1026_v36, %v1024_v34 }
 0x33c   :  { %v1227_v9 = vpack.c.bf16 %v1211_v39, %v1209_v37 }
 0x33d   :  { %1594 = vmatprep.subr.bf16.mxu0 %v1042_v8 }
 0x33e   :  { %1931 = vmatprep.subr.bf16.mxu1 %v1227_v9  ;;  %1595 = vmatpush1.bf16.msra.mxu0 %v1041_v38 }
 0x33f   :  { %1932 = vmatpush1.bf16.msra.mxu1 %v1226_v40 }
 0x341   :  { %1613 = vmatmul.mubr.bf16.vlgmr.msra.gmra.mrb[56].mxu0 %v3508_v12 }
 0x342   :  { %1950 = vmatmul.mubr.bf16.vlgmr.msra.gmra.mrb[56].mxu1 %v3508_v12  ;;  %1622 = vmatprep.mubr.bf16.mxu0 %v3554_v3 }
 0x343   :  { %1959 = vmatprep.mubr.bf16.mxu1 %v3554_v3 }
 0x349   :  { %1623 = vmatmul.mubr.bf16.gmra.mrb[60].mxu0 %v3509_v15 }
 0x34a   :  { %1960 = vmatmul.mubr.bf16.gmra.mrb[60].mxu1 %v3509_v15  ;;  %1632 = vmatprep.mubr.bf16.mxu0 %v3554_v3 }
 0x34b   :  { %1969 = vmatprep.mubr.bf16.mxu1 %v3554_v3 }
 0x351   :  { %1633 = vmatmul.mubr.bf16.gmra.mrb[64].mxu0 %v3510_v41 }
 0x352   :  { %1970 = vmatmul.mubr.bf16.gmra.mrb[64].mxu1 %v3510_v41  ;;  %1642 = vmatprep.mubr.bf16.mxu0 %v3554_v3 }
 0x353   :  { %1979 = vmatprep.mubr.bf16.mxu1 %v3554_v3 }
 0x359   :  { %1643 = vmatmul.mubr.bf16.gmra.mrb[68].mxu0 %v3511_v13 }
 0x35a   :  { %1980 = vmatmul.mubr.bf16.gmra.mrb[68].mxu1 %v3511_v13  ;;  %1652 = vmatprep.mubr.bf16.mxu0 %v3554_v3 }
 0x35b   :  { %1989 = vmatprep.mubr.bf16.mxu1 %v3554_v3 }
 0x361   :  { %1653 = vmatmul.mubr.bf16.gmra.mrb[72].mxu0 %v3512_v42 }
 0x362   :  { %1990 = vmatmul.mubr.bf16.gmra.mrb[72].mxu1 %v3512_v42  ;;  %1662 = vmatprep.mubr.bf16.mxu0 %v3554_v3 }
 0x363   :  { %1999 = vmatprep.mubr.bf16.mxu1 %v3554_v3 }
 0x369   :  { %1663 = vmatmul.mubr.bf16.gmra.mrb[76].mxu0 %v3513_v58 }
 0x36a   :  { %2000 = vmatmul.mubr.bf16.gmra.mrb[76].mxu1 %v3513_v58  ;;  %1672 = vmatprep.mubr.bf16.mxu0 %v3554_v3 }
 0x36b   :  { %2009 = vmatprep.mubr.bf16.mxu1 %v3554_v3 }
 0x371   :  { %1673 = vmatmul.mubr.bf16.gmra.mrb[80].mxu0 %v3514_v57 }
 0x372   :  { %2010 = vmatmul.mubr.bf16.gmra.mrb[80].mxu1 %v3514_v57  ;;  %1682 = vmatprep.mubr.bf16.mxu0 %v3554_v3 }
 0x373   :  { %2019 = vmatprep.mubr.bf16.mxu1 %v3554_v3 }
 0x379   :  { %1683 = vmatmul.mubr.bf16.gmra.mrb[84].mxu0 %v3515_v43 }
 0x37a   :  { %2020 = vmatmul.mubr.bf16.gmra.mrb[84].mxu1 %v3515_v43  ;;  %1692 = vmatprep.mubr.bf16.mxu0 %v3554_v3 }
 0x37b   :  { %2029 = vmatprep.mubr.bf16.mxu1 %v3554_v3 }
 0x381   :  { %1693 = vmatmul.mubr.bf16.gmra.mrb[88].mxu0 %v3516_v59 }
 0x382   :  { %2030 = vmatmul.mubr.bf16.gmra.mrb[88].mxu1 %v3516_v59  ;;  %1702 = vmatprep.mubr.bf16.mxu0 %v3554_v3  ;;  %v1347_v59 = vpop.permute.xlu1 %1346 }
 0x383   :  { %2039 = vmatprep.mubr.bf16.mxu1 %v3554_v3 }
 0x389   :  { %1703 = vmatmul.mubr.bf16.gmra.mrb[92].mxu0 %v3517_v44 }
 0x38a   :  { %2040 = vmatmul.mubr.bf16.gmra.mrb[92].mxu1 %v3517_v44  ;;  %1712 = vmatprep.mubr.bf16.mxu0 %v3554_v3 }
 0x38b   :  { %2049 = vmatprep.mubr.bf16.mxu1 %v3554_v3 }
 0x391   :  { %1713 = vmatmul.mubr.bf16.gmra.mrb[96].mxu0 %v3518_v45 }
 0x392   :  { %2050 = vmatmul.mubr.bf16.gmra.mrb[96].mxu1 %v3518_v45  ;;  %1722 = vmatprep.mubr.bf16.mxu0 %v3554_v3 }
 0x393   :  { %2059 = vmatprep.mubr.bf16.mxu1 %v3554_v3 }
 0x399   :  { %1723 = vmatmul.mubr.bf16.gmra.mrb[100].mxu0 %v3519_v46 }
 0x39a   :  { %2060 = vmatmul.mubr.bf16.gmra.mrb[100].mxu1 %v3519_v46  ;;  %1732 = vmatprep.mubr.bf16.mxu0 %v3554_v3 }
 0x39b   :  { %2069 = vmatprep.mubr.bf16.mxu1 %v3554_v3 }
 0x3a1   :  { %1733 = vmatmul.mubr.bf16.gmra.mrb[104].mxu0 %v3520_v47 }
 0x3a2   :  { %2070 = vmatmul.mubr.bf16.gmra.mrb[104].mxu1 %v3520_v47  ;;  %1742 = vmatprep.mubr.bf16.mxu0 %v3554_v3  ;;  %v1352_v47 = vpop.permute.xlu0 %1351 }
 0x3a3   :  { %2079 = vmatprep.mubr.bf16.mxu1 %v3554_v3 }
 0x3a9   :  { %1743 = vmatmul.mubr.bf16.gmra.mrb[108].mxu0 %v3521_v48 }
 0x3aa   :  { %2080 = vmatmul.mubr.bf16.gmra.mrb[108].mxu1 %v3521_v48  ;;  %1752 = vmatprep.mubr.bf16.mxu0 %v3554_v3 }
 0x3ab   :  { %2089 = vmatprep.mubr.bf16.mxu1 %v3554_v3 }
 0x3b1   :  { %1753 = vmatmul.mubr.bf16.gmra.mrb[112].mxu0 %v3522_v49 }
 0x3b2   :  { %2090 = vmatmul.mubr.bf16.gmra.mrb[112].mxu1 %v3522_v49  ;;  %1762 = vmatprep.mubr.bf16.mxu0 %v3554_v3 }
 0x3b3   :  { %2099 = vmatprep.mubr.bf16.mxu1 %v3554_v3 }
 0x3b9   :  { %1763 = vmatmul.mubr.bf16.gmra.mrb[116].mxu0 %v3523_v50 }
 0x3ba   :  { %2100 = vmatmul.mubr.bf16.gmra.mrb[116].mxu1 %v3523_v50  ;;  %2494 = vmatprep.mubr.bf16.mxu0 %v3526_v16 }
 0x3bb   :  { %2703 = vmatprep.mubr.bf16.mxu1 %v3526_v16 }
 0x414   :  { %v1614_v53 = vpop.f32.mrb[56].mxu0 }
 0x415   :  { %v1615_v54 = vadd.f32 %v1614_v53, %v1327_v51  ;;  %v1951_v55 = vpop.f32.mrb[56].mxu1  ;;  %v1616_v56 = vpop.f32.mrb[57].mxu0 }
 0x416   :  { %v1952_v61 = vadd.f32 %v1951_v55, %v1327_v51  ;;  %v1617_v63 = vadd.f32 %v1616_v56, %v1327_v51  ;;  %v1953_v62 = vpop.f32.mrb[57].mxu1  ;;  %v1618_v0 = vpop.f32.mrb[58].mxu0 }
 0x417   :  { %v1954_v1 = vadd.f32 %v1953_v62, %v1327_v51  ;;  %v1619_v2 = vadd.f32 %v1618_v0, %v1332_v52  ;;  %v1955_v4 = vpop.f32.mrb[58].mxu1  ;;  %v1620_v5 = vpop.f32.mrb[59].mxu0  ;;  %v1773_v10 = vmax.f32 %v1615_v54, 0.0 }
 0x418   :  { %v1956_v6 = vadd.f32 %v1955_v4, %v1332_v52  ;;  %v1621_v7 = vadd.f32 %v1620_v5, %v1332_v52  ;;  %v1957_v60 = vpop.f32.mrb[59].mxu1  ;;  %v2110_v18 = vmax.f32 %v1952_v61, 0.0  ;;  %v1774_v19 = vmax.f32 %v1617_v63, 0.0 }
 0x419   :  { %v1775_v11 = vmax.f32 %v1619_v2, 0.0  ;;  %v1958_v14 = vadd.f32 %v1957_v60, %v1332_v52  ;;  %v2111_v22 = vmax.f32 %v1954_v1, 0.0 }
 0x41a   :  { %v2112_v20 = vmax.f32 %v1956_v6, 0.0  ;;  %v1776_v21 = vmax.f32 %v1621_v7, 0.0 }
 0x41b   :  { %v1837_v23 = vpack.c.bf16 %v1775_v11, %v1773_v10  ;;  %v2113_v24 = vmax.f32 %v1958_v14, 0.0 }
 0x41c   :  { %v2174_v26 = vpack.c.bf16 %v2112_v20, %v2110_v18  ;;  %v1838_v27 = vpack.c.bf16 %v1776_v21, %v1774_v19  ;;  %v1624_v28 = vpop.f32.mrb[60].mxu0  ;;  %v1357_v18 = vpop.permute.xlu1 %1356 }
 0x41d   :  { %v2175_v29 = vpack.c.bf16 %v2113_v24, %v2111_v22  ;;  %v1625_v30 = vadd.f32 %v1624_v28, %v1337_v17  ;;  %v1961_v31 = vpop.f32.mrb[60].mxu1  ;;  %v1626_v32 = vpop.f32.mrb[61].mxu0 }
 0x41e   :  { %v1962_v33 = vadd.f32 %v1961_v31, %v1337_v17  ;;  %v1627_v34 = vadd.f32 %v1626_v32, %v1337_v17  ;;  %v1963_v35 = vpop.f32.mrb[61].mxu1  ;;  %v1628_v36 = vpop.f32.mrb[62].mxu0  ;;  %2462 = vmatprep.subr.bf16.mxu0 %v1838_v27 }
 0x41f   :  { %v1964_v37 = vadd.f32 %v1963_v35, %v1337_v17  ;;  %v1629_v38 = vadd.f32 %v1628_v36, %v1342_v25  ;;  %v1965_v39 = vpop.f32.mrb[62].mxu1  ;;  %2671 = vmatprep.subr.bf16.mxu1 %v2175_v29  ;;  %v1630_v40 = vpop.f32.mrb[63].mxu0  ;;  %2463 = vmatpush1.bf16.msra.mxu0 %v1837_v23  ;;  %v1777_v15 = vmax.f32 %v1625_v30, 0.0 }
 0x420   :  { %v1966_v8 = vadd.f32 %v1965_v39, %v1342_v25  ;;  %v1631_v9 = vadd.f32 %v1630_v40, %v1342_v25  ;;  %v1967_v12 = vpop.f32.mrb[63].mxu1  ;;  %2672 = vmatpush1.bf16.msra.mxu1 %v2174_v26  ;;  %v2114_v42 = vmax.f32 %v1962_v33, 0.0  ;;  %v1778_v58 = vmax.f32 %v1627_v34, 0.0  ;;  %v1362_v22 = vpop.permute.xlu0 %1361 }
 0x421   :  { %v1779_v41 = vmax.f32 %v1629_v38, 0.0  ;;  %v1968_v13 = vadd.f32 %v1967_v12, %v1342_v25  ;;  %v2115_v44 = vmax.f32 %v1964_v37, 0.0 }
 0x422   :  { %v2116_v57 = vmax.f32 %v1966_v8, 0.0  ;;  %v1780_v43 = vmax.f32 %v1631_v9, 0.0 }
 0x423   :  { %v1839_v45 = vpack.c.bf16 %v1779_v41, %v1777_v15  ;;  %v2117_v46 = vmax.f32 %v1968_v13, 0.0 }
 0x424   :  { %v2176_v48 = vpack.c.bf16 %v2116_v57, %v2114_v42  ;;  %v1840_v49 = vpack.c.bf16 %v1780_v43, %v1778_v58  ;;  %v1634_v50 = vpop.f32.mrb[64].mxu0  ;;  %v1367_v58 = vpop.permute.xlu1 %1366 }
 0x425   :  { %v2177_v51 = vpack.c.bf16 %v2117_v46, %v2115_v44  ;;  %v1635_v52 = vadd.f32 %v1634_v50, %v1347_v59  ;;  %v1971_v53 = vpop.f32.mrb[64].mxu1  ;;  %v1636_v54 = vpop.f32.mrb[65].mxu0 }
 0x426   :  { %v1972_v55 = vadd.f32 %v1971_v53, %v1347_v59  ;;  %v1637_v56 = vadd.f32 %v1636_v54, %v1347_v59  ;;  %v1973_v61 = vpop.f32.mrb[65].mxu1  ;;  %v1638_v63 = vpop.f32.mrb[66].mxu0  ;;  %2464 = vmatprep.subr.bf16.mxu0 %v1840_v49 }
 0x427   :  { %v1974_v62 = vadd.f32 %v1973_v61, %v1347_v59  ;;  %v1639_v0 = vadd.f32 %v1638_v63, %v1352_v47  ;;  %v1975_v1 = vpop.f32.mrb[66].mxu1  ;;  %2673 = vmatprep.subr.bf16.mxu1 %v2177_v51  ;;  %v1640_v2 = vpop.f32.mrb[67].mxu0  ;;  %2465 = vmatpush1.bf16.msra.mxu0 %v1839_v45  ;;  %v1781_v7 = vmax.f32 %v1635_v52, 0.0 }
 0x428   :  { %v1976_v4 = vadd.f32 %v1975_v1, %v1352_v47  ;;  %v1641_v5 = vadd.f32 %v1640_v2, %v1352_v47  ;;  %v1977_v6 = vpop.f32.mrb[67].mxu1  ;;  %2674 = vmatpush1.bf16.msra.mxu1 %v2176_v48  ;;  %v2118_v11 = vmax.f32 %v1972_v55, 0.0  ;;  %v1782_v14 = vmax.f32 %v1637_v56, 0.0  ;;  %v1372_v44 = vpop.permute.xlu0 %1371 }
 0x429   :  { %v1783_v60 = vmax.f32 %v1639_v0, 0.0  ;;  %v1978_v10 = vadd.f32 %v1977_v6, %v1352_v47  ;;  %v2119_v19 = vmax.f32 %v1974_v62, 0.0 }
 0x42a   :  { %v2120_v16 = vmax.f32 %v1976_v4, 0.0  ;;  %v1784_v17 = vmax.f32 %v1641_v5, 0.0 }
 0x42b   :  { %v1841_v20 = vpack.c.bf16 %v1783_v60, %v1781_v7  ;;  %v2121_v21 = vmax.f32 %v1978_v10, 0.0 }
 0x42c   :  { %v2178_v23 = vpack.c.bf16 %v2120_v16, %v2118_v11  ;;  %v1842_v24 = vpack.c.bf16 %v1784_v17, %v1782_v14  ;;  %v1644_v25 = vpop.f32.mrb[68].mxu0  ;;  %v1377_v14 = vpop.permute.xlu1 %1376 }
 0x42d   :  { %v2179_v26 = vpack.c.bf16 %v2121_v21, %v2119_v19  ;;  %v1645_v27 = vadd.f32 %v1644_v25, %v1357_v18  ;;  %v1981_v28 = vpop.f32.mrb[68].mxu1  ;;  %v1646_v29 = vpop.f32.mrb[69].mxu0 }
 0x42e   :  { %v1982_v30 = vadd.f32 %v1981_v28, %v1357_v18  ;;  %v1647_v31 = vadd.f32 %v1646_v29, %v1357_v18  ;;  %v1983_v32 = vpop.f32.mrb[69].mxu1  ;;  %v1648_v33 = vpop.f32.mrb[70].mxu0  ;;  %2466 = vmatprep.subr.bf16.mxu0 %v1842_v24 }
 0x42f   :  { %v1984_v34 = vadd.f32 %v1983_v32, %v1357_v18  ;;  %v1649_v35 = vadd.f32 %v1648_v33, %v1362_v22  ;;  %v1985_v36 = vpop.f32.mrb[70].mxu1  ;;  %2675 = vmatprep.subr.bf16.mxu1 %v2179_v26  ;;  %v1650_v37 = vpop.f32.mrb[71].mxu0  ;;  %2467 = vmatpush1.bf16.msra.mxu0 %v1841_v20  ;;  %v1785_v8 = vmax.f32 %v1645_v27, 0.0 }
 0x430   :  { %v1986_v38 = vadd.f32 %v1985_v36, %v1362_v22  ;;  %v1651_v39 = vadd.f32 %v1650_v37, %v1362_v22  ;;  %v1987_v40 = vpop.f32.mrb[71].mxu1  ;;  %2676 = vmatpush1.bf16.msra.mxu1 %v2178_v23  ;;  %v2122_v15 = vmax.f32 %v1982_v30, 0.0  ;;  %v1786_v41 = vmax.f32 %v1647_v31, 0.0  ;;  %v1382_v19 = vpop.permute.xlu0 %1381 }
 0x431   :  { %v1787_v9 = vmax.f32 %v1649_v35, 0.0  ;;  %v1988_v12 = vadd.f32 %v1987_v40, %v1362_v22  ;;  %v2123_v57 = vmax.f32 %v1984_v34, 0.0 }
 0x432   :  { %v2124_v13 = vmax.f32 %v1986_v38, 0.0  ;;  %v1788_v42 = vmax.f32 %v1651_v39, 0.0 }
 0x433   :  { %v1843_v43 = vpack.c.bf16 %v1787_v9, %v1785_v8  ;;  %v2125_v59 = vmax.f32 %v1988_v12, 0.0 }
 0x434   :  { %v2180_v45 = vpack.c.bf16 %v2124_v13, %v2122_v15  ;;  %v1844_v46 = vpack.c.bf16 %v1788_v42, %v1786_v41  ;;  %v1654_v47 = vpop.f32.mrb[72].mxu0  ;;  %v1387_v41 = vpop.permute.xlu1 %1386 }
 0x435   :  { %v2181_v48 = vpack.c.bf16 %v2125_v59, %v2123_v57  ;;  %v1655_v49 = vadd.f32 %v1654_v47, %v1367_v58  ;;  %v1991_v50 = vpop.f32.mrb[72].mxu1  ;;  %v1656_v51 = vpop.f32.mrb[73].mxu0 }
 0x436   :  { %v1992_v52 = vadd.f32 %v1991_v50, %v1367_v58  ;;  %v1657_v53 = vadd.f32 %v1656_v51, %v1367_v58  ;;  %v1993_v54 = vpop.f32.mrb[73].mxu1  ;;  %v1658_v55 = vpop.f32.mrb[74].mxu0  ;;  %2468 = vmatprep.subr.bf16.mxu0 %v1844_v46 }
 0x437   :  { %v1994_v56 = vadd.f32 %v1993_v54, %v1367_v58  ;;  %v1659_v61 = vadd.f32 %v1658_v55, %v1372_v44  ;;  %v1995_v63 = vpop.f32.mrb[74].mxu1  ;;  %2677 = vmatprep.subr.bf16.mxu1 %v2181_v48  ;;  %v1660_v62 = vpop.f32.mrb[75].mxu0  ;;  %2469 = vmatpush1.bf16.msra.mxu0 %v1843_v43  ;;  %v1789_v4 = vmax.f32 %v1655_v49, 0.0 }
 0x438   :  { %v1996_v0 = vadd.f32 %v1995_v63, %v1372_v44  ;;  %v1661_v1 = vadd.f32 %v1660_v62, %v1372_v44  ;;  %v1997_v2 = vpop.f32.mrb[75].mxu1  ;;  %2678 = vmatpush1.bf16.msra.mxu1 %v2180_v45  ;;  %v2126_v7 = vmax.f32 %v1992_v52, 0.0  ;;  %v1790_v60 = vmax.f32 %v1657_v53, 0.0  ;;  %v1392_v57 = vpop.permute.xlu0 %1391 }
 0x439   :  { %v1791_v5 = vmax.f32 %v1659_v61, 0.0  ;;  %v1998_v6 = vadd.f32 %v1997_v2, %v1372_v44  ;;  %v2127_v16 = vmax.f32 %v1994_v56, 0.0 }
 0x43a   :  { %v2128_v10 = vmax.f32 %v1996_v0, 0.0  ;;  %v1792_v11 = vmax.f32 %v1661_v1, 0.0 }
 0x43b   :  { %v1845_v17 = vpack.c.bf16 %v1791_v5, %v1789_v4  ;;  %v2129_v18 = vmax.f32 %v1998_v6, 0.0 }
 0x43c   :  { %v2182_v20 = vpack.c.bf16 %v2128_v10, %v2126_v7  ;;  %v1846_v21 = vpack.c.bf16 %v1792_v11, %v1790_v60  ;;  %v1664_v22 = vpop.f32.mrb[76].mxu0  ;;  %v1397_v60 = vpop.permute.xlu1 %1396 }
 0x43d   :  { %v2183_v23 = vpack.c.bf16 %v2129_v18, %v2127_v16  ;;  %v1665_v24 = vadd.f32 %v1664_v22, %v1377_v14  ;;  %v2001_v25 = vpop.f32.mrb[76].mxu1  ;;  %v1666_v26 = vpop.f32.mrb[77].mxu0  ;;  %v4186_v16 = vld [vmem:[%s4346_s2] sm:$0xff] }
 0x43e   :  { %v2002_v27 = vadd.f32 %v2001_v25, %v1377_v14  ;;  %v1667_v28 = vadd.f32 %v1666_v26, %v1377_v14  ;;  %v2003_v29 = vpop.f32.mrb[77].mxu1  ;;  %v1668_v30 = vpop.f32.mrb[78].mxu0  ;;  %2470 = vmatprep.subr.bf16.mxu0 %v1846_v21  ;;  %v3558_v21 = vmov 4  }
 0x43f   :  { %v2004_v31 = vadd.f32 %v2003_v29, %v1377_v14  ;;  %v1669_v32 = vadd.f32 %v1668_v30, %v1382_v19  ;;  %v2005_v33 = vpop.f32.mrb[78].mxu1  ;;  %2679 = vmatprep.subr.bf16.mxu1 %v2183_v23  ;;  %v1670_v34 = vpop.f32.mrb[79].mxu0  ;;  %2471 = vmatpush1.bf16.msra.mxu0 %v1845_v17  ;;  %v1793_v38 = vmax.f32 %v1665_v24, 0.0 }
 0x440   :  { %v2006_v35 = vadd.f32 %v2005_v33, %v1382_v19  ;;  %v1671_v36 = vadd.f32 %v1670_v34, %v1382_v19  ;;  %v2007_v37 = vpop.f32.mrb[79].mxu1  ;;  %2680 = vmatpush1.bf16.msra.mxu1 %v2182_v20  ;;  %v2130_v8 = vmax.f32 %v2002_v27, 0.0  ;;  %v1794_v9 = vmax.f32 %v1667_v28, 0.0  ;;  %v1402_v17 = vpop.permute.xlu0 %1401  ;;  %3488 = vset.pattern.permute.xlu1 %v3558_v21 }
 0x441   :  { %v1795_v39 = vmax.f32 %v1669_v32, 0.0  ;;  %v2008_v40 = vadd.f32 %v2007_v37, %v1382_v19  ;;  %v2131_v13 = vmax.f32 %v2004_v31, 0.0  ;;  %3489 = vset.pattern.permute.xlu0 %v3558_v21  ;;  %2304 = vperm.xlu1 %3488, %v4186_v16  }
 0x442   :  { %v2132_v12 = vmax.f32 %v2006_v35, 0.0  ;;  %v1796_v15 = vmax.f32 %v1671_v36, 0.0 }
 0x443   :  { %v1847_v42 = vpack.c.bf16 %v1795_v39, %v1793_v38  ;;  %v2133_v58 = vmax.f32 %v2008_v40, 0.0 }
 0x444   :  { %v2184_v43 = vpack.c.bf16 %v2132_v12, %v2130_v8  ;;  %v1848_v59 = vpack.c.bf16 %v1796_v15, %v1794_v9  ;;  %v1674_v44 = vpop.f32.mrb[80].mxu0  ;;  %v1407_v15 = vpop.permute.xlu1 %1406 }
 0x445   :  { %v2185_v45 = vpack.c.bf16 %v2133_v58, %v2131_v13  ;;  %v1675_v46 = vadd.f32 %v1674_v44, %v1387_v41  ;;  %v2011_v47 = vpop.f32.mrb[80].mxu1  ;;  %v1676_v48 = vpop.f32.mrb[81].mxu0  ;;  %v4192_v58 = vld [vmem:[%s4346_s2 + $0x10] sm:$0xff] }
 0x446   :  { %v2012_v49 = vadd.f32 %v2011_v47, %v1387_v41  ;;  %v1677_v50 = vadd.f32 %v1676_v48, %v1387_v41  ;;  %v2013_v51 = vpop.f32.mrb[81].mxu1  ;;  %v1678_v52 = vpop.f32.mrb[82].mxu0  ;;  %2472 = vmatprep.subr.bf16.mxu0 %v1848_v59  ;;  %2314 = vperm.xlu1 %3488, %v4192_v58  }
 0x447   :  { %v2014_v53 = vadd.f32 %v2013_v51, %v1387_v41  ;;  %v1679_v54 = vadd.f32 %v1678_v52, %v1392_v57  ;;  %v2015_v55 = vpop.f32.mrb[82].mxu1  ;;  %2681 = vmatprep.subr.bf16.mxu1 %v2185_v45  ;;  %v1680_v56 = vpop.f32.mrb[83].mxu0  ;;  %2473 = vmatpush1.bf16.msra.mxu0 %v1847_v42  ;;  %v1797_v0 = vmax.f32 %v1675_v46, 0.0 }
 0x448   :  { %v2016_v61 = vadd.f32 %v2015_v55, %v1392_v57  ;;  %v1681_v63 = vadd.f32 %v1680_v56, %v1392_v57  ;;  %v2017_v62 = vpop.f32.mrb[83].mxu1  ;;  %2682 = vmatpush1.bf16.msra.mxu1 %v2184_v43  ;;  %v2134_v4 = vmax.f32 %v2012_v49, 0.0  ;;  %v1798_v5 = vmax.f32 %v1677_v50, 0.0  ;;  %v1412_v43 = vpop.permute.xlu0 %1411  ;;  %v4204_v50 = vld [vmem:[%s4346_s2 + $0x18] sm:$0xff]  ;;  %v4209_v55 = vld [vmem:[%s4346_s2 + $0x20] sm:$0xff] }
 0x449   :  { %v1799_v1 = vmax.f32 %v1679_v54, 0.0  ;;  %v2018_v2 = vadd.f32 %v2017_v62, %v1392_v57  ;;  %v2135_v10 = vmax.f32 %v2014_v53, 0.0  ;;  %v4197_v57 = vld [vmem:[%s4346_s2 + $0x8] sm:$0xff] }
 0x44a   :  { %v2136_v6 = vmax.f32 %v2016_v61, 0.0  ;;  %v1800_v7 = vmax.f32 %v1681_v63, 0.0  ;;  %2309 = vperm.xlu0 %3489, %v4197_v57   ;;  %2319 = vperm.xlu1 %3488, %v4204_v50  }
 0x44b   :  { %v1849_v11 = vpack.c.bf16 %v1799_v1, %v1797_v0  ;;  %v2137_v14 = vmax.f32 %v2018_v2, 0.0 }
 0x44c   :  { %v2186_v18 = vpack.c.bf16 %v2136_v6, %v2134_v4  ;;  %v1850_v19 = vpack.c.bf16 %v1800_v7, %v1798_v5  ;;  %v1684_v20 = vpop.f32.mrb[84].mxu0  ;;  %v4215_v7 = vld [vmem:[%s4346_s2 + $0x28] sm:$0xff] }
 0x44d   :  { %v2187_v22 = vpack.c.bf16 %v2137_v14, %v2135_v10  ;;  %v1685_v23 = vadd.f32 %v1684_v20, %v1397_v60  ;;  %v2021_v24 = vpop.f32.mrb[84].mxu1  ;;  %v1686_v25 = vpop.f32.mrb[85].mxu0 }
 0x44e   :  { %v2022_v26 = vadd.f32 %v2021_v24, %v1397_v60  ;;  %v1687_v27 = vadd.f32 %v1686_v25, %v1397_v60  ;;  %v2023_v28 = vpop.f32.mrb[85].mxu1  ;;  %v1688_v29 = vpop.f32.mrb[86].mxu0  ;;  %2474 = vmatprep.subr.bf16.mxu0 %v1850_v19  ;;  %2324 = vperm.xlu0 %3489, %v4209_v55  }
 0x44f   :  { %v2024_v30 = vadd.f32 %v2023_v28, %v1397_v60  ;;  %v1689_v31 = vadd.f32 %v1688_v29, %v1402_v17  ;;  %v2025_v32 = vpop.f32.mrb[86].mxu1  ;;  %2683 = vmatprep.subr.bf16.mxu1 %v2187_v22  ;;  %v1690_v33 = vpop.f32.mrb[87].mxu0  ;;  %2475 = vmatpush1.bf16.msra.mxu0 %v1849_v11  ;;  %v1801_v37 = vmax.f32 %v1685_v23, 0.0 }
 0x450   :  { %v2026_v34 = vadd.f32 %v2025_v32, %v1402_v17  ;;  %v1691_v35 = vadd.f32 %v1690_v33, %v1402_v17  ;;  %v2027_v36 = vpop.f32.mrb[87].mxu1  ;;  %2684 = vmatpush1.bf16.msra.mxu1 %v2186_v18  ;;  %v2138_v40 = vmax.f32 %v2022_v26, 0.0  ;;  %v1802_v8 = vmax.f32 %v1687_v27, 0.0  ;;  %v1417_v18 = vpop.permute.xlu1 %1416  ;;  %2329 = vperm.xlu1 %3488, %v4215_v7  }
 0x451   :  { %v1803_v38 = vmax.f32 %v1689_v31, 0.0  ;;  %v2028_v39 = vadd.f32 %v2027_v36, %v1402_v17  ;;  %v2139_v41 = vmax.f32 %v2024_v30, 0.0  ;;  %v4221_v17 = vld [vmem:[%s4346_s2 + $0x30] sm:$0xff]  ;;  %v1422_v22 = vpop.permute.xlu0 %1421  ;;  %v4227_v30 = vld [vmem:[%s4346_s2 + $0x38] sm:$0xff] }
 0x452   :  { %v2140_v9 = vmax.f32 %v2026_v34, 0.0  ;;  %v1804_v12 = vmax.f32 %v1691_v35, 0.0  ;;  %2334 = vperm.xlu0 %3489, %v4221_v17   ;;  %v2262_v35 = vld [vmem:[%s4346_s2 + $0x40] sm:$0xff] }
 0x453   :  { %v1851_v13 = vpack.c.bf16 %v1803_v38, %v1801_v37  ;;  %v2141_v42 = vmax.f32 %v2028_v39, 0.0 }
 0x454   :  { %v2188_v59 = vpack.c.bf16 %v2140_v9, %v2138_v40  ;;  %v1852_v44 = vpack.c.bf16 %v1804_v12, %v1802_v8  ;;  %v1694_v45 = vpop.f32.mrb[88].mxu0  ;;  %2339 = vperm.xlu1 %3488, %v4227_v30  }
 0x455   :  { %v2189_v46 = vpack.c.bf16 %v2141_v42, %v2139_v41  ;;  %v1695_v47 = vadd.f32 %v1694_v45, %v1407_v15  ;;  %v2031_v48 = vpop.f32.mrb[88].mxu1  ;;  %v1696_v49 = vpop.f32.mrb[89].mxu0  ;;  %v2264_v45 = vld [vmem:[%s4346_s2 + $0x50] sm:$0xff] }
 0x456   :  { %v2032_v51 = vadd.f32 %v2031_v48, %v1407_v15  ;;  %v1697_v52 = vadd.f32 %v1696_v49, %v1407_v15  ;;  %v2033_v53 = vpop.f32.mrb[89].mxu1  ;;  %v1698_v54 = vpop.f32.mrb[90].mxu0  ;;  %2476 = vmatprep.subr.bf16.mxu0 %v1852_v44  ;;  %2344 = vperm.xlu0 %3489, %v2262_v35  }
 0x457   :  { %v2034_v56 = vadd.f32 %v2033_v53, %v1407_v15  ;;  %v1699_v61 = vadd.f32 %v1698_v54, %v1412_v43  ;;  %v2035_v63 = vpop.f32.mrb[90].mxu1  ;;  %2685 = vmatprep.subr.bf16.mxu1 %v2189_v46  ;;  %v1700_v62 = vpop.f32.mrb[91].mxu0  ;;  %2477 = vmatpush1.bf16.msra.mxu0 %v1851_v13  ;;  %v1805_v4 = vmax.f32 %v1695_v47, 0.0  ;;  %v2263_v13 = vld [vmem:[%s4346_s2 + $0x48] sm:$0xff] }
 0x458   :  { %v2036_v0 = vadd.f32 %v2035_v63, %v1412_v43  ;;  %v1701_v1 = vadd.f32 %v1700_v62, %v1412_v43  ;;  %v2037_v2 = vpop.f32.mrb[91].mxu1  ;;  %2686 = vmatpush1.bf16.msra.mxu1 %v2188_v59  ;;  %v2142_v60 = vmax.f32 %v2032_v51, 0.0  ;;  %v1806_v10 = vmax.f32 %v1697_v52, 0.0  ;;  %v1427_v46 = vpop.permute.xlu1 %1426  ;;  %2349 = vperm.xlu1 %3488, %v2263_v13  }
 0x459   :  { %v1807_v5 = vmax.f32 %v1699_v61, 0.0  ;;  %v2038_v6 = vadd.f32 %v2037_v2, %v1412_v43  ;;  %v2143_v19 = vmax.f32 %v2034_v56, 0.0  ;;  %v1432_v51 = vpop.permute.xlu0 %1431 }
 0x45a   :  { %v2144_v11 = vmax.f32 %v2036_v0, 0.0  ;;  %v1808_v14 = vmax.f32 %v1701_v1, 0.0  ;;  %v2265_v0 = vld [vmem:[%s4346_s2 + $0x58] sm:$0xff]  ;;  %2354 = vperm.xlu0 %3489, %v2264_v45  }
 0x45b   :  { %v1853_v20 = vpack.c.bf16 %v1807_v5, %v1805_v4  ;;  %v2145_v21 = vmax.f32 %v2038_v6, 0.0  ;;  %v2266_v6 = vld [vmem:[%s4346_s2 + $0x60] sm:$0xff] }
 0x45c   :  { %v2190_v23 = vpack.c.bf16 %v2144_v11, %v2142_v60  ;;  %v1854_v24 = vpack.c.bf16 %v1808_v14, %v1806_v10  ;;  %v1704_v25 = vpop.f32.mrb[92].mxu0  ;;  %2359 = vperm.xlu1 %3488, %v2265_v0  }
 0x45d   :  { %v2191_v26 = vpack.c.bf16 %v2145_v21, %v2143_v19  ;;  %v1705_v27 = vadd.f32 %v1704_v25, %v1417_v18  ;;  %v2041_v28 = vpop.f32.mrb[92].mxu1  ;;  %v1706_v29 = vpop.f32.mrb[93].mxu0 }
 0x45e   :  { %v2042_v31 = vadd.f32 %v2041_v28, %v1417_v18  ;;  %v1707_v32 = vadd.f32 %v1706_v29, %v1417_v18  ;;  %v2043_v33 = vpop.f32.mrb[93].mxu1  ;;  %v1708_v34 = vpop.f32.mrb[94].mxu0  ;;  %2478 = vmatprep.subr.bf16.mxu0 %v1854_v24  ;;  %v2267_v24 = vld [vmem:[%s4346_s2 + $0x68] sm:$0xff]  ;;  %2364 = vperm.xlu0 %3489, %v2266_v6   ;;  %v2268_v29 = vld [vmem:[%s4346_s2 + $0x70] sm:$0xff] }
 0x45f   :  { %v2044_v36 = vadd.f32 %v2043_v33, %v1417_v18  ;;  %v1709_v37 = vadd.f32 %v1708_v34, %v1422_v22  ;;  %v2045_v38 = vpop.f32.mrb[94].mxu1  ;;  %2687 = vmatprep.subr.bf16.mxu1 %v2191_v26  ;;  %v1710_v39 = vpop.f32.mrb[95].mxu0  ;;  %2479 = vmatpush1.bf16.msra.mxu0 %v1853_v20  ;;  %v1809_v12 = vmax.f32 %v1705_v27, 0.0 }
 0x460   :  { %v2046_v40 = vadd.f32 %v2045_v38, %v1422_v22  ;;  %v1711_v8 = vadd.f32 %v1710_v39, %v1422_v22  ;;  %v2047_v9 = vpop.f32.mrb[95].mxu1  ;;  %2688 = vmatpush1.bf16.msra.mxu1 %v2190_v23  ;;  %v2146_v42 = vmax.f32 %v2042_v31, 0.0  ;;  %v1810_v43 = vmax.f32 %v1707_v32, 0.0  ;;  %v1437_v31 = vpop.permute.xlu1 %1436  ;;  %2369 = vperm.xlu1 %3488, %v2267_v24  }
 0x461   :  { %v1811_v15 = vmax.f32 %v1709_v37, 0.0  ;;  %v2048_v41 = vadd.f32 %v2047_v9, %v1422_v22  ;;  %v2147_v47 = vmax.f32 %v2044_v36, 0.0  ;;  %v1442_v35 = vpop.permute.xlu0 %1441 }
 0x462   :  { %v2148_v59 = vmax.f32 %v2046_v40, 0.0  ;;  %v1812_v44 = vmax.f32 %v1711_v8, 0.0  ;;  %2374 = vperm.xlu0 %3489, %v2268_v29  }
 0x463   :  { %v1855_v48 = vpack.c.bf16 %v1811_v15, %v1809_v12  ;;  %v2149_v49 = vmax.f32 %v2048_v41, 0.0  ;;  %v2269_v12 = vld [vmem:[%s4346_s2 + $0x78] sm:$0xff] }
 0x464   :  { %v2192_v52 = vpack.c.bf16 %v2148_v59, %v2146_v42  ;;  %v1856_v53 = vpack.c.bf16 %v1812_v44, %v1810_v43  ;;  %v1714_v54 = vpop.f32.mrb[96].mxu0  ;;  %2379 = vperm.xlu1 %3488, %v2269_v12  }
 0x465   :  { %v2193_v56 = vpack.c.bf16 %v2149_v49, %v2147_v47  ;;  %v1715_v61 = vadd.f32 %v1714_v54, %v1427_v46  ;;  %v2051_v63 = vpop.f32.mrb[96].mxu1  ;;  %v1716_v62 = vpop.f32.mrb[97].mxu0 }
 0x466   :  { %v2052_v1 = vadd.f32 %v2051_v63, %v1427_v46  ;;  %v1717_v2 = vadd.f32 %v1716_v62, %v1427_v46  ;;  %v2053_v4 = vpop.f32.mrb[97].mxu1  ;;  %v1718_v5 = vpop.f32.mrb[98].mxu0  ;;  %2480 = vmatprep.subr.bf16.mxu0 %v1856_v53 }
 0x467   :  { %v2054_v60 = vadd.f32 %v2053_v4, %v1427_v46  ;;  %v1719_v10 = vadd.f32 %v1718_v5, %v1432_v51  ;;  %v2055_v11 = vpop.f32.mrb[98].mxu1  ;;  %2689 = vmatprep.subr.bf16.mxu1 %v2193_v56  ;;  %v1720_v14 = vpop.f32.mrb[99].mxu0  ;;  %2481 = vmatpush1.bf16.msra.mxu0 %v1855_v48  ;;  %v1813_v21 = vmax.f32 %v1715_v61, 0.0 }
 0x468   :  { %v2056_v18 = vadd.f32 %v2055_v11, %v1432_v51  ;;  %v1721_v19 = vadd.f32 %v1720_v14, %v1432_v51  ;;  %v2057_v20 = vpop.f32.mrb[99].mxu1  ;;  %2690 = vmatpush1.bf16.msra.mxu1 %v2192_v52  ;;  %v2150_v25 = vmax.f32 %v2052_v1, 0.0  ;;  %v1814_v26 = vmax.f32 %v1717_v2, 0.0  ;;  %v1447_v63 = vpop.permute.xlu1 %1446 }
 0x469   :  { %v1815_v22 = vmax.f32 %v1719_v10, 0.0  ;;  %v2058_v23 = vadd.f32 %v2057_v20, %v1432_v51  ;;  %v2151_v32 = vmax.f32 %v2054_v60, 0.0  ;;  %v1452_v2 = vpop.permute.xlu0 %1451 }
 0x46a   :  { %v2152_v27 = vmax.f32 %v2056_v18, 0.0  ;;  %v1816_v28 = vmax.f32 %v1721_v19, 0.0 }
 0x46b   :  { %v1857_v33 = vpack.c.bf16 %v1815_v22, %v1813_v21  ;;  %v2153_v34 = vmax.f32 %v2058_v23, 0.0 }
 0x46c   :  { %v2194_v36 = vpack.c.bf16 %v2152_v27, %v2150_v25  ;;  %v1858_v37 = vpack.c.bf16 %v1816_v28, %v1814_v26  ;;  %v1724_v38 = vpop.f32.mrb[100].mxu0 }
 0x46d   :  { %v2195_v39 = vpack.c.bf16 %v2153_v34, %v2151_v32  ;;  %v1725_v40 = vadd.f32 %v1724_v38, %v1437_v31  ;;  %v2061_v8 = vpop.f32.mrb[100].mxu1  ;;  %v1726_v9 = vpop.f32.mrb[101].mxu0 }
 0x46e   :  { %v2062_v15 = vadd.f32 %v2061_v8, %v1437_v31  ;;  %v1727_v41 = vadd.f32 %v1726_v9, %v1437_v31  ;;  %v2063_v13 = vpop.f32.mrb[101].mxu1  ;;  %v1728_v42 = vpop.f32.mrb[102].mxu0  ;;  %2482 = vmatprep.subr.bf16.mxu0 %v1858_v37 }
 0x46f   :  { %v2064_v43 = vadd.f32 %v2063_v13, %v1437_v31  ;;  %v1729_v59 = vadd.f32 %v1728_v42, %v1442_v35  ;;  %v2065_v44 = vpop.f32.mrb[102].mxu1  ;;  %2691 = vmatprep.subr.bf16.mxu1 %v2195_v39  ;;  %v1730_v45 = vpop.f32.mrb[103].mxu0  ;;  %2483 = vmatpush1.bf16.msra.mxu0 %v1857_v33  ;;  %v1817_v49 = vmax.f32 %v1725_v40, 0.0 }
 0x470   :  { %v2066_v46 = vadd.f32 %v2065_v44, %v1442_v35  ;;  %v1731_v47 = vadd.f32 %v1730_v45, %v1442_v35  ;;  %v2067_v48 = vpop.f32.mrb[103].mxu1  ;;  %2692 = vmatpush1.bf16.msra.mxu1 %v2194_v36  ;;  %v2154_v53 = vmax.f32 %v2062_v15, 0.0  ;;  %v1818_v54 = vmax.f32 %v1727_v41, 0.0  ;;  %v1457_v37 = vpop.permute.xlu1 %1456 }
 0x471   :  { %v1819_v51 = vmax.f32 %v1729_v59, 0.0  ;;  %v2068_v52 = vadd.f32 %v2067_v48, %v1442_v35  ;;  %v2155_v62 = vmax.f32 %v2064_v43, 0.0  ;;  %v1462_v8 = vpop.permute.xlu0 %1461 }
 0x472   :  { %v2156_v56 = vmax.f32 %v2066_v46, 0.0  ;;  %v1820_v61 = vmax.f32 %v1731_v47, 0.0 }
 0x473   :  { %v1859_v0 = vpack.c.bf16 %v1819_v51, %v1817_v49  ;;  %v2157_v1 = vmax.f32 %v2068_v52, 0.0 }
 0x474   :  { %v2196_v4 = vpack.c.bf16 %v2156_v56, %v2154_v53  ;;  %v1860_v5 = vpack.c.bf16 %v1820_v61, %v1818_v54  ;;  %v1734_v6 = vpop.f32.mrb[104].mxu0 }
 0x475   :  { %v2197_v60 = vpack.c.bf16 %v2157_v1, %v2155_v62  ;;  %v1735_v10 = vadd.f32 %v1734_v6, %v1447_v63  ;;  %v2071_v11 = vpop.f32.mrb[104].mxu1  ;;  %v1736_v14 = vpop.f32.mrb[105].mxu0 }
 0x476   :  { %v2072_v18 = vadd.f32 %v2071_v11, %v1447_v63  ;;  %v1737_v19 = vadd.f32 %v1736_v14, %v1447_v63  ;;  %v2073_v20 = vpop.f32.mrb[105].mxu1  ;;  %v1738_v21 = vpop.f32.mrb[106].mxu0  ;;  %2484 = vmatprep.subr.bf16.mxu0 %v1860_v5 }
 0x477   :  { %v2074_v22 = vadd.f32 %v2073_v20, %v1447_v63  ;;  %v1739_v23 = vadd.f32 %v1738_v21, %v1452_v2  ;;  %v2075_v24 = vpop.f32.mrb[106].mxu1  ;;  %2693 = vmatprep.subr.bf16.mxu1 %v2197_v60  ;;  %v1740_v25 = vpop.f32.mrb[107].mxu0  ;;  %2485 = vmatpush1.bf16.msra.mxu0 %v1859_v0  ;;  %v1821_v29 = vmax.f32 %v1735_v10, 0.0 }
 0x478   :  { %v2076_v26 = vadd.f32 %v2075_v24, %v1452_v2  ;;  %v1741_v27 = vadd.f32 %v1740_v25, %v1452_v2  ;;  %v2077_v28 = vpop.f32.mrb[107].mxu1  ;;  %2694 = vmatpush1.bf16.msra.mxu1 %v2196_v4  ;;  %v2158_v33 = vmax.f32 %v2072_v18, 0.0  ;;  %v1822_v34 = vmax.f32 %v1737_v19, 0.0  ;;  %v1467_v4 = vpop.permute.xlu1 %1466 }
 0x479   :  { %v1823_v31 = vmax.f32 %v1739_v23, 0.0  ;;  %v2078_v32 = vadd.f32 %v2077_v28, %v1452_v2  ;;  %v2159_v38 = vmax.f32 %v2074_v22, 0.0  ;;  %v1472_v10 = vpop.permute.xlu0 %1471 }
 0x47a   :  { %v2160_v35 = vmax.f32 %v2076_v26, 0.0  ;;  %v1824_v36 = vmax.f32 %v1741_v27, 0.0 }
 0x47b   :  { %v1861_v39 = vpack.c.bf16 %v1823_v31, %v1821_v29  ;;  %v2161_v40 = vmax.f32 %v2078_v32, 0.0 }
 0x47c   :  { %v2198_v9 = vpack.c.bf16 %v2160_v35, %v2158_v33  ;;  %v1862_v12 = vpack.c.bf16 %v1824_v36, %v1822_v34  ;;  %v1744_v15 = vpop.f32.mrb[108].mxu0 }
 0x47d   :  { %v2199_v41 = vpack.c.bf16 %v2161_v40, %v2159_v38  ;;  %v1745_v13 = vadd.f32 %v1744_v15, %v1457_v37  ;;  %v2081_v42 = vpop.f32.mrb[108].mxu1  ;;  %v1746_v43 = vpop.f32.mrb[109].mxu0 }
 0x47e   :  { %v2082_v59 = vadd.f32 %v2081_v42, %v1457_v37  ;;  %v1747_v44 = vadd.f32 %v1746_v43, %v1457_v37  ;;  %v2083_v45 = vpop.f32.mrb[109].mxu1  ;;  %v1748_v46 = vpop.f32.mrb[110].mxu0  ;;  %2486 = vmatprep.subr.bf16.mxu0 %v1862_v12 }
 0x47f   :  { %v2084_v47 = vadd.f32 %v2083_v45, %v1457_v37  ;;  %v1749_v48 = vadd.f32 %v1748_v46, %v1462_v8  ;;  %v2085_v49 = vpop.f32.mrb[110].mxu1  ;;  %2695 = vmatprep.subr.bf16.mxu1 %v2199_v41  ;;  %v1750_v51 = vpop.f32.mrb[111].mxu0  ;;  %2487 = vmatpush1.bf16.msra.mxu0 %v1861_v39  ;;  %v1825_v56 = vmax.f32 %v1745_v13, 0.0 }
 0x480   :  { %v2086_v52 = vadd.f32 %v2085_v49, %v1462_v8  ;;  %v1751_v53 = vadd.f32 %v1750_v51, %v1462_v8  ;;  %v2087_v54 = vpop.f32.mrb[111].mxu1  ;;  %2696 = vmatpush1.bf16.msra.mxu1 %v2198_v9  ;;  %v2162_v62 = vmax.f32 %v2082_v59, 0.0  ;;  %v1826_v0 = vmax.f32 %v1747_v44, 0.0  ;;  %v1477_v9 = vpop.permute.xlu1 %1476 }
 0x481   :  { %v1827_v61 = vmax.f32 %v1749_v48, 0.0  ;;  %v2088_v63 = vadd.f32 %v2087_v54, %v1462_v8  ;;  %v2163_v5 = vmax.f32 %v2084_v47, 0.0  ;;  %v1482_v13 = vpop.permute.xlu0 %1481 }
 0x482   :  { %v2164_v1 = vmax.f32 %v2086_v52, 0.0  ;;  %v1828_v2 = vmax.f32 %v1751_v53, 0.0 }
 0x483   :  { %v1863_v6 = vpack.c.bf16 %v1827_v61, %v1825_v56  ;;  %v2165_v60 = vmax.f32 %v2088_v63, 0.0 }
 0x484   :  { %v2200_v11 = vpack.c.bf16 %v2164_v1, %v2162_v62  ;;  %v1864_v14 = vpack.c.bf16 %v1828_v2, %v1826_v0  ;;  %v1754_v18 = vpop.f32.mrb[112].mxu0 }
 0x485   :  { %v2201_v19 = vpack.c.bf16 %v2165_v60, %v2163_v5  ;;  %v1755_v20 = vadd.f32 %v1754_v18, %v1467_v4  ;;  %v2091_v21 = vpop.f32.mrb[112].mxu1  ;;  %v1756_v22 = vpop.f32.mrb[113].mxu0 }
 0x486   :  { %v2092_v23 = vadd.f32 %v2091_v21, %v1467_v4  ;;  %v1757_v24 = vadd.f32 %v1756_v22, %v1467_v4  ;;  %v2093_v25 = vpop.f32.mrb[113].mxu1  ;;  %v1758_v26 = vpop.f32.mrb[114].mxu0  ;;  %2488 = vmatprep.subr.bf16.mxu0 %v1864_v14  ;;  %v3524_v22 = vld [vmem:[%s4345_s1 + $0x1e0] ss:$8 sps:$4 sm:$0xff]  }
 0x487   :  { %v2094_v27 = vadd.f32 %v2093_v25, %v1467_v4  ;;  %v1759_v28 = vadd.f32 %v1758_v26, %v1472_v10  ;;  %v2095_v29 = vpop.f32.mrb[114].mxu1  ;;  %2697 = vmatprep.subr.bf16.mxu1 %v2201_v19  ;;  %v1760_v31 = vpop.f32.mrb[115].mxu0  ;;  %2489 = vmatpush1.bf16.msra.mxu0 %v1863_v6  ;;  %v1829_v35 = vmax.f32 %v1755_v20, 0.0  ;;  %v3530_v25 = vld [vmem:[%s4345_s1 + $0x204] ss:$8 sps:$4 sm:$0xff]  }
 0x488   :  { %v2096_v32 = vadd.f32 %v2095_v29, %v1472_v10  ;;  %v1761_v33 = vadd.f32 %v1760_v31, %v1472_v10  ;;  %v2097_v34 = vpop.f32.mrb[115].mxu1  ;;  %2698 = vmatpush1.bf16.msra.mxu1 %v2200_v11  ;;  %v2166_v38 = vmax.f32 %v2092_v23, 0.0  ;;  %v1830_v39 = vmax.f32 %v1757_v24, 0.0  ;;  %v3527_v23 = vld [vmem:[%s4345_s1 + $0x1f4] ss:$8 sps:$4 sm:$0xff]  }
 0x489   :  { %v1831_v36 = vmax.f32 %v1759_v28, 0.0  ;;  %v2098_v37 = vadd.f32 %v2097_v34, %v1472_v10  ;;  %v2167_v12 = vmax.f32 %v2094_v27, 0.0  ;;  %v3529_v24 = vld [vmem:[%s4345_s1 + $0x1f0] ss:$8 sps:$4 sm:$0xff]   ;;  %v3532_v26 = vld [vmem:[%s4345_s1 + $0x200] ss:$8 sps:$4 sm:$0xff]  }
 0x48a   :  { %v2168_v40 = vmax.f32 %v2096_v32, 0.0  ;;  %v1832_v8 = vmax.f32 %v1761_v33, 0.0  ;;  %v3533_v27 = vld [vmem:[%s4345_s1 + $0x214] ss:$8 sps:$4 sm:$0xff]   ;;  %v3535_v28 = vld [vmem:[%s4345_s1 + $0x210] ss:$8 sps:$4 sm:$0xff]  }
 0x48b   :  { %v1865_v15 = vpack.c.bf16 %v1831_v36, %v1829_v35  ;;  %v2169_v41 = vmax.f32 %v2098_v37, 0.0  ;;  %v3536_v29 = vld [vmem:[%s4345_s1 + $0x224] ss:$8 sps:$4 sm:$0xff]   ;;  %v3538_v31 = vld [vmem:[%s4345_s1 + $0x220] ss:$8 sps:$4 sm:$0xff]  }
 0x48c   :  { %v2202_v42 = vpack.c.bf16 %v2168_v40, %v2166_v38  ;;  %v1866_v43 = vpack.c.bf16 %v1832_v8, %v1830_v39  ;;  %v1764_v59 = vpop.f32.mrb[116].mxu0  ;;  %v3539_v32 = vld [vmem:[%s4345_s1 + $0x234] ss:$8 sps:$4 sm:$0xff]   ;;  %v3541_v33 = vld [vmem:[%s4345_s1 + $0x230] ss:$8 sps:$4 sm:$0xff]   ;;  %v3559_v38 = vmov 5  }
 0x48d   :  { %v2203_v44 = vpack.c.bf16 %v2169_v41, %v2167_v12  ;;  %v1765_v45 = vadd.f32 %v1764_v59, %v1477_v9  ;;  %v2101_v46 = vpop.f32.mrb[116].mxu1  ;;  %v1766_v47 = vpop.f32.mrb[117].mxu0  ;;  %v3542_v34 = vld [vmem:[%s4345_s1 + $0x244] ss:$8 sps:$4 sm:$0xff]   ;;  %v3544_v35 = vld [vmem:[%s4345_s1 + $0x240] ss:$8 sps:$4 sm:$0xff]   ;;  %3491 = vset.pattern.permute.xlu1 %v3559_v38  ;;  %3490 = vset.pattern.permute.xlu0 %v3559_v38 }
 0x48e   :  { %v2102_v48 = vadd.f32 %v2101_v46, %v1477_v9  ;;  %v1767_v49 = vadd.f32 %v1766_v47, %v1477_v9  ;;  %v2103_v51 = vpop.f32.mrb[117].mxu1  ;;  %v1768_v52 = vpop.f32.mrb[118].mxu0  ;;  %2490 = vmatprep.subr.bf16.mxu0 %v1866_v43  ;;  %v3545_v36 = vld [vmem:[%s4345_s1 + $0x254] ss:$8 sps:$4 sm:$0xff]   ;;  %v3547_v37 = vld [vmem:[%s4345_s1 + $0x250] ss:$8 sps:$4 sm:$0xff]   ;;  %2887 = vperm.xlu1 %3491, %v4197_v57  }
 0x48f   :  { %v2104_v53 = vadd.f32 %v2103_v51, %v1477_v9  ;;  %v1769_v54 = vadd.f32 %v1768_v52, %v1482_v13  ;;  %v2105_v56 = vpop.f32.mrb[118].mxu1  ;;  %2699 = vmatprep.subr.bf16.mxu1 %v2203_v44  ;;  %v1770_v61 = vpop.f32.mrb[119].mxu0  ;;  %2491 = vmatpush1.bf16.msra.mxu0 %v1865_v15  ;;  %v1833_v1 = vmax.f32 %v1765_v45, 0.0 }
 0x490   :  { %v2106_v63 = vadd.f32 %v2105_v56, %v1482_v13  ;;  %v1771_v62 = vadd.f32 %v1770_v61, %v1482_v13  ;;  %v2107_v0 = vpop.f32.mrb[119].mxu1  ;;  %2700 = vmatpush1.bf16.msra.mxu1 %v2202_v42  ;;  %v2170_v5 = vmax.f32 %v2102_v48, 0.0  ;;  %v1834_v6 = vmax.f32 %v1767_v49, 0.0  ;;  %2882 = vperm.xlu0 %3490, %v4186_v16  }
 0x491   :  { %v1835_v2 = vmax.f32 %v1769_v54, 0.0  ;;  %v2108_v4 = vadd.f32 %v2107_v0, %v1482_v13  ;;  %v2171_v11 = vmax.f32 %v2104_v53, 0.0 }
 0x492   :  { %v2172_v60 = vmax.f32 %v2106_v63, 0.0  ;;  %v1836_v10 = vmax.f32 %v1771_v62, 0.0  ;;  %2892 = vperm.xlu1 %3491, %v4192_v58  }
 0x493   :  { %v1867_v14 = vpack.c.bf16 %v1835_v2, %v1833_v1  ;;  %v2173_v18 = vmax.f32 %v2108_v4, 0.0 }
 0x494   :  { %v2204_v19 = vpack.c.bf16 %v2172_v60, %v2170_v5  ;;  %v1868_v20 = vpack.c.bf16 %v1836_v10, %v1834_v6  ;;  %2897 = vperm.xlu0 %3490, %v4204_v50  }
 0x495   :  { %v2205_v21 = vpack.c.bf16 %v2173_v18, %v2171_v11 }
 0x496   :  { %2492 = vmatprep.subr.bf16.mxu0 %v1868_v20  ;;  %2902 = vperm.xlu1 %3491, %v4209_v55  }
 0x497   :  { %2701 = vmatprep.subr.bf16.mxu1 %v2205_v21  ;;  %2493 = vmatpush1.bf16.msra.mxu0 %v1867_v14 }
 0x498   :  { %2702 = vmatpush1.bf16.msra.mxu1 %v2204_v19  ;;  %2907 = vperm.xlu0 %3490, %v4215_v7  }
 0x49a   :  { %2495 = vmatmul.mubr.bf16.vlgmr.msra.gmra.mrb[120].mxu0 %v3524_v22  ;;  %2912 = vperm.xlu1 %3491, %v4221_v17  }
 0x49b   :  { %2704 = vmatmul.mubr.bf16.vlgmr.msra.gmra.mrb[120].mxu1 %v3524_v22  ;;  %2504 = vmatprep.mubr.bf16.mxu0 %v3527_v23 }
 0x49c   :  { %2713 = vmatprep.mubr.bf16.mxu1 %v3527_v23  ;;  %2917 = vperm.xlu0 %3490, %v4227_v30  }
 0x4a2   :  { %2505 = vmatmul.mubr.bf16.gmra.mrb[124].mxu0 %v3529_v24 }
 0x4a3   :  { %2714 = vmatmul.mubr.bf16.gmra.mrb[124].mxu1 %v3529_v24  ;;  %2514 = vmatprep.mubr.bf16.mxu0 %v3530_v25 }
 0x4a4   :  { %2723 = vmatprep.mubr.bf16.mxu1 %v3530_v25 }
 0x4aa   :  { %2515 = vmatmul.mubr.bf16.gmra.mrb[128].mxu0 %v3532_v26 }
 0x4ab   :  { %2724 = vmatmul.mubr.bf16.gmra.mrb[128].mxu1 %v3532_v26  ;;  %2524 = vmatprep.mubr.bf16.mxu0 %v3533_v27 }
 0x4ac   :  { %2733 = vmatprep.mubr.bf16.mxu1 %v3533_v27 }
 0x4b2   :  { %2525 = vmatmul.mubr.bf16.gmra.mrb[132].mxu0 %v3535_v28 }
 0x4b3   :  { %2734 = vmatmul.mubr.bf16.gmra.mrb[132].mxu1 %v3535_v28  ;;  %2534 = vmatprep.mubr.bf16.mxu0 %v3536_v29 }
 0x4b4   :  { %2743 = vmatprep.mubr.bf16.mxu1 %v3536_v29 }
 0x4ba   :  { %2535 = vmatmul.mubr.bf16.gmra.mrb[136].mxu0 %v3538_v31 }
 0x4bb   :  { %2744 = vmatmul.mubr.bf16.gmra.mrb[136].mxu1 %v3538_v31  ;;  %2544 = vmatprep.mubr.bf16.mxu0 %v3539_v32 }
 0x4bc   :  { %2753 = vmatprep.mubr.bf16.mxu1 %v3539_v32 }
 0x4c0   :  { %v2305_v39 = vpop.permute.xlu1 %2304 }
 0x4c2   :  { %2545 = vmatmul.mubr.bf16.gmra.mrb[140].mxu0 %v3541_v33 }
 0x4c3   :  { %2754 = vmatmul.mubr.bf16.gmra.mrb[140].mxu1 %v3541_v33  ;;  %2554 = vmatprep.mubr.bf16.mxu0 %v3542_v34 }
 0x4c4   :  { %2763 = vmatprep.mubr.bf16.mxu1 %v3542_v34 }
 0x4c5   :  { %v2315_v40 = vpop.permute.xlu1 %2314 }
 0x4c9   :  { %v2310_v8 = vpop.permute.xlu0 %2309  ;;  %v2320_v54 = vpop.permute.xlu1 %2319 }
 0x4ca   :  { %2555 = vmatmul.mubr.bf16.gmra.mrb[144].mxu0 %v3544_v35 }
 0x4cb   :  { %2764 = vmatmul.mubr.bf16.gmra.mrb[144].mxu1 %v3544_v35  ;;  %2564 = vmatprep.mubr.bf16.mxu0 %v3545_v36 }
 0x4cc   :  { %2773 = vmatprep.mubr.bf16.mxu1 %v3545_v36 }
 0x4cd   :  { %v2325_v29 = vpop.permute.xlu0 %2324 }
 0x4cf   :  { %v2330_v34 = vpop.permute.xlu1 %2329 }
 0x4d2   :  { %2565 = vmatmul.mubr.bf16.gmra.mrb[148].mxu0 %v3547_v37 }
 0x4d3   :  { %2774 = vmatmul.mubr.bf16.gmra.mrb[148].mxu1 %v3547_v37  ;;  %2976 = vmatprep.mubr.bf16.mxu0 %v3554_v3 }
 0x4d4   :  { %3097 = vmatprep.mubr.bf16.mxu1 %v3554_v3 }
 0x56d   :  { %v2496_v9 = vpop.f32.mrb[120].mxu0 }
 0x56e   :  { %v2497_v12 = vadd.f32 %v2496_v9, %v2305_v39  ;;  %v2705_v57 = vpop.f32.mrb[120].mxu1  ;;  %v2498_v15 = vpop.f32.mrb[121].mxu0 }
 0x56f   :  { %v2706_v16 = vadd.f32 %v2705_v57, %v2305_v39  ;;  %v2499_v41 = vadd.f32 %v2498_v15, %v2305_v39  ;;  %v2707_v58 = vpop.f32.mrb[121].mxu1  ;;  %v2500_v13 = vpop.f32.mrb[122].mxu0 }
 0x570   :  { %v2708_v50 = vadd.f32 %v2707_v58, %v2305_v39  ;;  %v2501_v42 = vadd.f32 %v2500_v13, %v2310_v8  ;;  %v2709_v55 = vpop.f32.mrb[122].mxu1  ;;  %v2502_v43 = vpop.f32.mrb[123].mxu0  ;;  %v2575_v44 = vmax.f32 %v2497_v12, 0.0 }
 0x571   :  { %v2710_v7 = vadd.f32 %v2709_v55, %v2310_v8  ;;  %v2503_v59 = vadd.f32 %v2502_v43, %v2310_v8  ;;  %v2711_v17 = vpop.f32.mrb[123].mxu1  ;;  %v2784_v46 = vmax.f32 %v2706_v16, 0.0  ;;  %v2576_v47 = vmax.f32 %v2499_v41, 0.0 }
 0x572   :  { %v2577_v30 = vmax.f32 %v2501_v42, 0.0  ;;  %v2712_v45 = vadd.f32 %v2711_v17, %v2310_v8  ;;  %v2785_v51 = vmax.f32 %v2708_v50, 0.0 }
 0x573   :  { %v2786_v48 = vmax.f32 %v2710_v7, 0.0  ;;  %v2578_v49 = vmax.f32 %v2503_v59, 0.0 }
 0x574   :  { %v2607_v52 = vpack.c.bf16 %v2577_v30, %v2575_v44  ;;  %v2787_v53 = vmax.f32 %v2712_v45, 0.0 }
 0x575   :  { %v2816_v56 = vpack.c.bf16 %v2786_v48, %v2784_v46  ;;  %v2608_v61 = vpack.c.bf16 %v2578_v49, %v2576_v47  ;;  %v2506_v63 = vpop.f32.mrb[124].mxu0  ;;  %v2335_v46 = vpop.permute.xlu0 %2334 }
 0x576   :  { %v2817_v62 = vpack.c.bf16 %v2787_v53, %v2785_v51  ;;  %v2507_v0 = vadd.f32 %v2506_v63, %v2315_v40  ;;  %v2715_v1 = vpop.f32.mrb[124].mxu1  ;;  %v2508_v2 = vpop.f32.mrb[125].mxu0 }
 0x577   :  { %v2716_v4 = vadd.f32 %v2715_v1, %v2315_v40  ;;  %v2509_v5 = vadd.f32 %v2508_v2, %v2315_v40  ;;  %v2717_v6 = vpop.f32.mrb[125].mxu1  ;;  %v2510_v60 = vpop.f32.mrb[126].mxu0  ;;  %2944 = vmatprep.subr.bf16.mxu0 %v2608_v61 }
 0x578   :  { %v2718_v10 = vadd.f32 %v2717_v6, %v2315_v40  ;;  %v2511_v11 = vadd.f32 %v2510_v60, %v2320_v54  ;;  %v2719_v14 = vpop.f32.mrb[126].mxu1  ;;  %3065 = vmatprep.subr.bf16.mxu1 %v2817_v62  ;;  %v2512_v18 = vpop.f32.mrb[127].mxu0  ;;  %2945 = vmatpush1.bf16.msra.mxu0 %v2607_v52  ;;  %v2579_v22 = vmax.f32 %v2507_v0, 0.0 }
 0x579   :  { %v2720_v19 = vadd.f32 %v2719_v14, %v2320_v54  ;;  %v2513_v20 = vadd.f32 %v2512_v18, %v2320_v54  ;;  %v2721_v21 = vpop.f32.mrb[127].mxu1  ;;  %3066 = vmatpush1.bf16.msra.mxu1 %v2816_v56  ;;  %v2788_v25 = vmax.f32 %v2716_v4, 0.0  ;;  %v2580_v26 = vmax.f32 %v2509_v5, 0.0  ;;  %v2340_v51 = vpop.permute.xlu1 %2339 }
 0x57a   :  { %v2581_v23 = vmax.f32 %v2511_v11, 0.0  ;;  %v2722_v24 = vadd.f32 %v2721_v21, %v2320_v54  ;;  %v2789_v31 = vmax.f32 %v2718_v10, 0.0 }
 0x57b   :  { %v2790_v27 = vmax.f32 %v2720_v19, 0.0  ;;  %v2582_v28 = vmax.f32 %v2513_v20, 0.0 }
 0x57c   :  { %v2609_v32 = vpack.c.bf16 %v2581_v23, %v2579_v22  ;;  %v2791_v33 = vmax.f32 %v2722_v24, 0.0 }
 0x57d   :  { %v2818_v35 = vpack.c.bf16 %v2790_v27, %v2788_v25  ;;  %v2610_v36 = vpack.c.bf16 %v2582_v28, %v2580_v26  ;;  %v2516_v37 = vpop.f32.mrb[128].mxu0  ;;  %v2345_v26 = vpop.permute.xlu0 %2344 }
 0x57e   :  { %v2819_v38 = vpack.c.bf16 %v2791_v33, %v2789_v31  ;;  %v2517_v39 = vadd.f32 %v2516_v37, %v2325_v29  ;;  %v2725_v40 = vpop.f32.mrb[128].mxu1  ;;  %v2518_v8 = vpop.f32.mrb[129].mxu0 }
 0x57f   :  { %v2726_v9 = vadd.f32 %v2725_v40, %v2325_v29  ;;  %v2519_v12 = vadd.f32 %v2518_v8, %v2325_v29  ;;  %v2727_v57 = vpop.f32.mrb[129].mxu1  ;;  %v2520_v15 = vpop.f32.mrb[130].mxu0  ;;  %2946 = vmatprep.subr.bf16.mxu0 %v2610_v36 }
 0x580   :  { %v2728_v16 = vadd.f32 %v2727_v57, %v2325_v29  ;;  %v2521_v41 = vadd.f32 %v2520_v15, %v2330_v34  ;;  %v2729_v58 = vpop.f32.mrb[130].mxu1  ;;  %3067 = vmatprep.subr.bf16.mxu1 %v2819_v38  ;;  %v2522_v13 = vpop.f32.mrb[131].mxu0  ;;  %2947 = vmatpush1.bf16.msra.mxu0 %v2609_v32  ;;  %v2583_v43 = vmax.f32 %v2517_v39, 0.0 }
 0x581   :  { %v2730_v50 = vadd.f32 %v2729_v58, %v2330_v34  ;;  %v2523_v42 = vadd.f32 %v2522_v13, %v2330_v34  ;;  %v2731_v55 = vpop.f32.mrb[131].mxu1  ;;  %3068 = vmatpush1.bf16.msra.mxu1 %v2818_v35  ;;  %v2792_v17 = vmax.f32 %v2726_v9, 0.0  ;;  %v2584_v44 = vmax.f32 %v2519_v12, 0.0  ;;  %v2350_v31 = vpop.permute.xlu1 %2349 }
 0x582   :  { %v2585_v7 = vmax.f32 %v2521_v41, 0.0  ;;  %v2732_v59 = vadd.f32 %v2731_v55, %v2330_v34  ;;  %v2793_v47 = vmax.f32 %v2728_v16, 0.0 }
 0x583   :  { %v2794_v30 = vmax.f32 %v2730_v50, 0.0  ;;  %v2586_v45 = vmax.f32 %v2523_v42, 0.0 }
 0x584   :  { %v2611_v48 = vpack.c.bf16 %v2585_v7, %v2583_v43  ;;  %v2795_v49 = vmax.f32 %v2732_v59, 0.0 }
 0x585   :  { %v2820_v52 = vpack.c.bf16 %v2794_v30, %v2792_v17  ;;  %v2612_v53 = vpack.c.bf16 %v2586_v45, %v2584_v44  ;;  %v2526_v54 = vpop.f32.mrb[132].mxu0  ;;  %v2355_v44 = vpop.permute.xlu0 %2354 }
 0x586   :  { %v2821_v56 = vpack.c.bf16 %v2795_v49, %v2793_v47  ;;  %v2527_v61 = vadd.f32 %v2526_v54, %v2335_v46  ;;  %v2735_v63 = vpop.f32.mrb[132].mxu1  ;;  %v2528_v62 = vpop.f32.mrb[133].mxu0 }
 0x587   :  { %v2736_v0 = vadd.f32 %v2735_v63, %v2335_v46  ;;  %v2529_v1 = vadd.f32 %v2528_v62, %v2335_v46  ;;  %v2737_v2 = vpop.f32.mrb[133].mxu1  ;;  %v2530_v4 = vpop.f32.mrb[134].mxu0  ;;  %2948 = vmatprep.subr.bf16.mxu0 %v2612_v53 }
 0x588   :  { %v2738_v5 = vadd.f32 %v2737_v2, %v2335_v46  ;;  %v2531_v6 = vadd.f32 %v2530_v4, %v2340_v51  ;;  %v2739_v60 = vpop.f32.mrb[134].mxu1  ;;  %3069 = vmatprep.subr.bf16.mxu1 %v2821_v56  ;;  %v2532_v10 = vpop.f32.mrb[135].mxu0  ;;  %2949 = vmatpush1.bf16.msra.mxu0 %v2611_v48  ;;  %v2587_v19 = vmax.f32 %v2527_v61, 0.0 }
 0x589   :  { %v2740_v11 = vadd.f32 %v2739_v60, %v2340_v51  ;;  %v2533_v14 = vadd.f32 %v2532_v10, %v2340_v51  ;;  %v2741_v18 = vpop.f32.mrb[135].mxu1  ;;  %3070 = vmatpush1.bf16.msra.mxu1 %v2820_v52  ;;  %v2796_v22 = vmax.f32 %v2736_v0, 0.0  ;;  %v2588_v23 = vmax.f32 %v2529_v1, 0.0  ;;  %v2360_v47 = vpop.permute.xlu1 %2359 }
 0x58a   :  { %v2589_v20 = vmax.f32 %v2531_v6, 0.0  ;;  %v2742_v21 = vadd.f32 %v2741_v18, %v2340_v51  ;;  %v2797_v27 = vmax.f32 %v2738_v5, 0.0 }
 0x58b   :  { %v2798_v24 = vmax.f32 %v2740_v11, 0.0  ;;  %v2590_v25 = vmax.f32 %v2533_v14, 0.0 }
 0x58c   :  { %v2613_v28 = vpack.c.bf16 %v2589_v20, %v2587_v19  ;;  %v2799_v29 = vmax.f32 %v2742_v21, 0.0 }
 0x58d   :  { %v2822_v32 = vpack.c.bf16 %v2798_v24, %v2796_v22  ;;  %v2614_v33 = vpack.c.bf16 %v2590_v25, %v2588_v23  ;;  %v2536_v34 = vpop.f32.mrb[136].mxu0  ;;  %v2365_v23 = vpop.permute.xlu0 %2364 }
 0x58e   :  { %v2823_v35 = vpack.c.bf16 %v2799_v29, %v2797_v27  ;;  %v2537_v36 = vadd.f32 %v2536_v34, %v2345_v26  ;;  %v2745_v37 = vpop.f32.mrb[136].mxu1  ;;  %v2538_v38 = vpop.f32.mrb[137].mxu0 }
 0x58f   :  { %v2746_v39 = vadd.f32 %v2745_v37, %v2345_v26  ;;  %v2539_v40 = vadd.f32 %v2538_v38, %v2345_v26  ;;  %v2747_v8 = vpop.f32.mrb[137].mxu1  ;;  %v2540_v9 = vpop.f32.mrb[138].mxu0  ;;  %2950 = vmatprep.subr.bf16.mxu0 %v2614_v33 }
 0x590   :  { %v2748_v12 = vadd.f32 %v2747_v8, %v2345_v26  ;;  %v2541_v57 = vadd.f32 %v2540_v9, %v2350_v31  ;;  %v2749_v15 = vpop.f32.mrb[138].mxu1  ;;  %3071 = vmatprep.subr.bf16.mxu1 %v2823_v35  ;;  %v2542_v16 = vpop.f32.mrb[139].mxu0  ;;  %2951 = vmatpush1.bf16.msra.mxu0 %v2613_v28  ;;  %v2591_v50 = vmax.f32 %v2537_v36, 0.0 }
 0x591   :  { %v2750_v41 = vadd.f32 %v2749_v15, %v2350_v31  ;;  %v2543_v58 = vadd.f32 %v2542_v16, %v2350_v31  ;;  %v2751_v13 = vpop.f32.mrb[139].mxu1  ;;  %3072 = vmatpush1.bf16.msra.mxu1 %v2822_v32  ;;  %v2800_v43 = vmax.f32 %v2746_v39, 0.0  ;;  %v2592_v7 = vmax.f32 %v2539_v40, 0.0  ;;  %v2370_v27 = vpop.permute.xlu1 %2369 }
 0x592   :  { %v2593_v42 = vmax.f32 %v2541_v57, 0.0  ;;  %v2752_v55 = vadd.f32 %v2751_v13, %v2350_v31  ;;  %v2801_v30 = vmax.f32 %v2748_v12, 0.0 }
 0x593   :  { %v2802_v59 = vmax.f32 %v2750_v41, 0.0  ;;  %v2594_v17 = vmax.f32 %v2543_v58, 0.0 }
 0x594   :  { %v2615_v45 = vpack.c.bf16 %v2593_v42, %v2591_v50  ;;  %v2803_v46 = vmax.f32 %v2752_v55, 0.0 }
 0x595   :  { %v2824_v48 = vpack.c.bf16 %v2802_v59, %v2800_v43  ;;  %v2616_v49 = vpack.c.bf16 %v2594_v17, %v2592_v7  ;;  %v2546_v51 = vpop.f32.mrb[140].mxu0  ;;  %v2380_v7 = vpop.permute.xlu1 %2379 }
 0x596   :  { %v2825_v52 = vpack.c.bf16 %v2803_v46, %v2801_v30  ;;  %v2547_v53 = vadd.f32 %v2546_v51, %v2355_v44  ;;  %v2755_v54 = vpop.f32.mrb[140].mxu1  ;;  %v2548_v56 = vpop.f32.mrb[141].mxu0 }
 0x597   :  { %v2756_v61 = vadd.f32 %v2755_v54, %v2355_v44  ;;  %v2549_v63 = vadd.f32 %v2548_v56, %v2355_v44  ;;  %v2757_v62 = vpop.f32.mrb[141].mxu1  ;;  %v2550_v0 = vpop.f32.mrb[142].mxu0  ;;  %2952 = vmatprep.subr.bf16.mxu0 %v2616_v49 }
 0x598   :  { %v2758_v1 = vadd.f32 %v2757_v62, %v2355_v44  ;;  %v2551_v2 = vadd.f32 %v2550_v0, %v2360_v47  ;;  %v2759_v4 = vpop.f32.mrb[142].mxu1  ;;  %3073 = vmatprep.subr.bf16.mxu1 %v2825_v52  ;;  %v2552_v5 = vpop.f32.mrb[143].mxu0  ;;  %2953 = vmatpush1.bf16.msra.mxu0 %v2615_v45  ;;  %v2595_v11 = vmax.f32 %v2547_v53, 0.0 }
 0x599   :  { %v2760_v6 = vadd.f32 %v2759_v4, %v2360_v47  ;;  %v2553_v60 = vadd.f32 %v2552_v5, %v2360_v47  ;;  %v2761_v10 = vpop.f32.mrb[143].mxu1  ;;  %3074 = vmatpush1.bf16.msra.mxu1 %v2824_v48  ;;  %v2804_v19 = vmax.f32 %v2756_v61, 0.0  ;;  %v2596_v20 = vmax.f32 %v2549_v63, 0.0  ;;  %v2375_v30 = vpop.permute.xlu0 %2374 }
 0x59a   :  { %v2597_v14 = vmax.f32 %v2551_v2, 0.0  ;;  %v2762_v18 = vadd.f32 %v2761_v10, %v2360_v47  ;;  %v2805_v24 = vmax.f32 %v2758_v1, 0.0 }
 0x59b   :  { %v2806_v21 = vmax.f32 %v2760_v6, 0.0  ;;  %v2598_v22 = vmax.f32 %v2553_v60, 0.0 }
 0x59c   :  { %v2617_v25 = vpack.c.bf16 %v2597_v14, %v2595_v11  ;;  %v2807_v26 = vmax.f32 %v2762_v18, 0.0 }
 0x59d   :  { %v2826_v28 = vpack.c.bf16 %v2806_v21, %v2804_v19  ;;  %v2618_v29 = vpack.c.bf16 %v2598_v22, %v2596_v20  ;;  %v2556_v31 = vpop.f32.mrb[144].mxu0 }
 0x59e   :  { %v2827_v32 = vpack.c.bf16 %v2807_v26, %v2805_v24  ;;  %v2557_v33 = vadd.f32 %v2556_v31, %v2365_v23  ;;  %v2765_v34 = vpop.f32.mrb[144].mxu1  ;;  %v2558_v35 = vpop.f32.mrb[145].mxu0  ;;  %v3548_v26 = vld [vmem:[%s4345_s1 + $0x260] ss:$8 sps:$4 sm:$0xff]   ;;  %v3560_v31 = vmov 6  }
 0x59f   :  { %v2766_v36 = vadd.f32 %v2765_v34, %v2365_v23  ;;  %v2559_v37 = vadd.f32 %v2558_v35, %v2365_v23  ;;  %v2767_v38 = vpop.f32.mrb[145].mxu1  ;;  %v2560_v39 = vpop.f32.mrb[146].mxu0  ;;  %2954 = vmatprep.subr.bf16.mxu0 %v2618_v29  ;;  %v3551_v29 = vld [vmem:[%s4345_s1 + $0x290] ss:$8 sps:$4 sm:$0xff]   ;;  %3492 = vset.pattern.permute.xlu1 %v3560_v31 }
 0x5a0   :  { %v2768_v40 = vadd.f32 %v2767_v38, %v2365_v23  ;;  %v2561_v8 = vadd.f32 %v2560_v39, %v2370_v27  ;;  %v2769_v9 = vpop.f32.mrb[146].mxu1  ;;  %3075 = vmatprep.subr.bf16.mxu1 %v2827_v32  ;;  %v2562_v12 = vpop.f32.mrb[147].mxu0  ;;  %2955 = vmatpush1.bf16.msra.mxu0 %v2617_v25  ;;  %v2599_v41 = vmax.f32 %v2557_v33, 0.0  ;;  %v3553_v32 = vld [vmem:[%s4346_s2] sm:$0xff] }
 0x5a1   :  { %v2770_v57 = vadd.f32 %v2769_v9, %v2370_v27  ;;  %v2563_v15 = vadd.f32 %v2562_v12, %v2370_v27  ;;  %v2771_v16 = vpop.f32.mrb[147].mxu1  ;;  %3076 = vmatpush1.bf16.msra.mxu1 %v2826_v28  ;;  %v2808_v50 = vmax.f32 %v2766_v36, 0.0  ;;  %v2600_v42 = vmax.f32 %v2559_v37, 0.0  ;;  %v3550_v28 = vld [vmem:[%s4345_s1 + $0x280] ss:$8 sps:$4 sm:$0xff]   ;;  %3493 = vset.pattern.permute.xlu0 %v3560_v31  ;;  %v2883_v33 = vpop.permute.xlu0 %2882 }
 0x5a2   :  { %v2601_v58 = vmax.f32 %v2561_v8, 0.0  ;;  %v2772_v13 = vadd.f32 %v2771_v16, %v2370_v27  ;;  %v2809_v59 = vmax.f32 %v2768_v40, 0.0  ;;  %v3549_v27 = vld [vmem:[%s4345_s1 + $0x270] ss:$8 sps:$4 sm:$0xff]   ;;  %3184 = vperm.xlu1 %3492, %v3553_v32   ;;  %v2888_v34 = vpop.permute.xlu1 %2887 }
 0x5a3   :  { %v2810_v55 = vmax.f32 %v2770_v57, 0.0  ;;  %v2602_v43 = vmax.f32 %v2563_v15, 0.0 }
 0x5a4   :  { %v2619_v17 = vpack.c.bf16 %v2601_v58, %v2599_v41  ;;  %v2811_v44 = vmax.f32 %v2772_v13, 0.0 }
 0x5a5   :  { %v2828_v45 = vpack.c.bf16 %v2810_v55, %v2808_v50  ;;  %v2620_v46 = vpack.c.bf16 %v2602_v43, %v2600_v42  ;;  %v2566_v47 = vpop.f32.mrb[148].mxu0 }
 0x5a6   :  { %v2829_v48 = vpack.c.bf16 %v2811_v44, %v2809_v59  ;;  %v2567_v49 = vadd.f32 %v2566_v47, %v2375_v30  ;;  %v2775_v51 = vpop.f32.mrb[148].mxu1  ;;  %v2568_v52 = vpop.f32.mrb[149].mxu0 }
 0x5a7   :  { %v2776_v53 = vadd.f32 %v2775_v51, %v2375_v30  ;;  %v2569_v54 = vadd.f32 %v2568_v52, %v2375_v30  ;;  %v2777_v56 = vpop.f32.mrb[149].mxu1  ;;  %v2570_v61 = vpop.f32.mrb[150].mxu0  ;;  %2956 = vmatprep.subr.bf16.mxu0 %v2620_v46 }
 0x5a8   :  { %v2778_v63 = vadd.f32 %v2777_v56, %v2375_v30  ;;  %v2571_v62 = vadd.f32 %v2570_v61, %v2380_v7  ;;  %v2779_v0 = vpop.f32.mrb[150].mxu1  ;;  %3077 = vmatprep.subr.bf16.mxu1 %v2829_v48  ;;  %v2572_v1 = vpop.f32.mrb[151].mxu0  ;;  %2957 = vmatpush1.bf16.msra.mxu0 %v2619_v17  ;;  %v2603_v6 = vmax.f32 %v2567_v49, 0.0 }
 0x5a9   :  { %v2780_v2 = vadd.f32 %v2779_v0, %v2380_v7  ;;  %v2573_v4 = vadd.f32 %v2572_v1, %v2380_v7  ;;  %v2781_v5 = vpop.f32.mrb[151].mxu1  ;;  %3078 = vmatpush1.bf16.msra.mxu1 %v2828_v45  ;;  %v2812_v11 = vmax.f32 %v2776_v53, 0.0  ;;  %v2604_v14 = vmax.f32 %v2569_v54, 0.0  ;;  %v2893_v55 = vpop.permute.xlu1 %2892 }
 0x5aa   :  { %v2605_v60 = vmax.f32 %v2571_v62, 0.0  ;;  %v2782_v10 = vadd.f32 %v2781_v5, %v2380_v7  ;;  %v2813_v20 = vmax.f32 %v2778_v63, 0.0  ;;  %v2898_v46 = vpop.permute.xlu0 %2897 }
 0x5ab   :  { %v2814_v18 = vmax.f32 %v2780_v2, 0.0  ;;  %v2606_v19 = vmax.f32 %v2573_v4, 0.0 }
 0x5ac   :  { %v2621_v21 = vpack.c.bf16 %v2605_v60, %v2603_v6  ;;  %v2815_v22 = vmax.f32 %v2782_v10, 0.0 }
 0x5ad   :  { %v2830_v23 = vpack.c.bf16 %v2814_v18, %v2812_v11  ;;  %v2622_v24 = vpack.c.bf16 %v2606_v19, %v2604_v14 }
 0x5ae   :  { %v2831_v25 = vpack.c.bf16 %v2815_v22, %v2813_v20  ;;  %v2903_v22 = vpop.permute.xlu1 %2902 }
 0x5af   :  { %2958 = vmatprep.subr.bf16.mxu0 %v2622_v24 }
 0x5b0   :  { %3079 = vmatprep.subr.bf16.mxu1 %v2831_v25  ;;  %2959 = vmatpush1.bf16.msra.mxu0 %v2621_v21 }
 0x5b1   :  { %3080 = vmatpush1.bf16.msra.mxu1 %v2830_v23 }
 0x5b3   :  { %2977 = vmatmul.mubr.bf16.vlgmr.msra.gmra.mrb[152].mxu0 %v3548_v26 }
 0x5b4   :  { %3098 = vmatmul.mubr.bf16.vlgmr.msra.gmra.mrb[152].mxu1 %v3548_v26  ;;  %2986 = vmatprep.mubr.bf16.mxu0 %v3554_v3  ;;  %v2908_v26 = vpop.permute.xlu0 %2907 }
 0x5b5   :  { %3107 = vmatprep.mubr.bf16.mxu1 %v3554_v3 }
 0x5bb   :  { %2987 = vmatmul.mubr.bf16.gmra.mrb[156].mxu0 %v3549_v27 }
 0x5bc   :  { %3108 = vmatmul.mubr.bf16.gmra.mrb[156].mxu1 %v3549_v27  ;;  %2996 = vmatprep.mubr.bf16.mxu0 %v3554_v3 }
 0x5bd   :  { %3117 = vmatprep.mubr.bf16.mxu1 %v3554_v3 }
 0x5c3   :  { %2997 = vmatmul.mubr.bf16.gmra.mrb[160].mxu0 %v3550_v28 }
 0x5c4   :  { %3118 = vmatmul.mubr.bf16.gmra.mrb[160].mxu1 %v3550_v28  ;;  %3006 = vmatprep.mubr.bf16.mxu0 %v3554_v3 }
 0x5c5   :  { %3127 = vmatprep.mubr.bf16.mxu1 %v3554_v3 }
 0x5cb   :  { %3007 = vmatmul.mubr.bf16.gmra.mrb[164].mxu0 %v3551_v29 }
 0x5cc   :  { %3128 = vmatmul.mubr.bf16.gmra.mrb[164].mxu1 %v3551_v29  ;;  %3231 = vmatprep.mubr.bf16.mxu0 %v3554_v3 }
 0x5cd   :  { %3303 = vmatprep.mubr.bf16.mxu1 %v3554_v3 }
 0x686   :  { %v2978_v35 = vpop.f32.mrb[152].mxu0 }
 0x687   :  { %v2979_v36 = vadd.f32 %v2978_v35, %v2883_v33  ;;  %v3099_v37 = vpop.f32.mrb[152].mxu1  ;;  %v2980_v38 = vpop.f32.mrb[153].mxu0 }
 0x688   :  { %v3100_v39 = vadd.f32 %v3099_v37, %v2883_v33  ;;  %v2981_v40 = vadd.f32 %v2980_v38, %v2883_v33  ;;  %v3101_v8 = vpop.f32.mrb[153].mxu1  ;;  %v2982_v9 = vpop.f32.mrb[154].mxu0 }
 0x689   :  { %v3102_v12 = vadd.f32 %v3101_v8, %v2883_v33  ;;  %v2983_v3 = vadd.f32 %v2982_v9, %v2888_v34  ;;  %v3103_v57 = vpop.f32.mrb[154].mxu1  ;;  %v2984_v15 = vpop.f32.mrb[155].mxu0  ;;  %v3017_v13 = vmax.f32 %v2979_v36, 0.0 }
 0x68a   :  { %v3104_v16 = vadd.f32 %v3103_v57, %v2888_v34  ;;  %v2985_v41 = vadd.f32 %v2984_v15, %v2888_v34  ;;  %v3105_v58 = vpop.f32.mrb[155].mxu1  ;;  %v3138_v43 = vmax.f32 %v3100_v39, 0.0  ;;  %v3018_v7 = vmax.f32 %v2981_v40, 0.0 }
 0x68b   :  { %v3019_v50 = vmax.f32 %v2983_v3, 0.0  ;;  %v3106_v42 = vadd.f32 %v3105_v58, %v2888_v34  ;;  %v3139_v44 = vmax.f32 %v3102_v12, 0.0 }
 0x68c   :  { %v3140_v59 = vmax.f32 %v3104_v16, 0.0  ;;  %v3020_v17 = vmax.f32 %v2985_v41, 0.0 }
 0x68d   :  { %v3033_v30 = vpack.c.bf16 %v3019_v50, %v3017_v13  ;;  %v3141_v45 = vmax.f32 %v3106_v42, 0.0 }
 0x68e   :  { %v3154_v47 = vpack.c.bf16 %v3140_v59, %v3138_v43  ;;  %v3034_v48 = vpack.c.bf16 %v3020_v17, %v3018_v7  ;;  %v2988_v49 = vpop.f32.mrb[156].mxu0  ;;  %v2918_v17 = vpop.permute.xlu0 %2917 }
 0x68f   :  { %v3155_v51 = vpack.c.bf16 %v3141_v45, %v3139_v44  ;;  %v2989_v52 = vadd.f32 %v2988_v49, %v2893_v55  ;;  %v3109_v53 = vpop.f32.mrb[156].mxu1  ;;  %v2990_v54 = vpop.f32.mrb[157].mxu0 }
 0x690   :  { %v3110_v56 = vadd.f32 %v3109_v53, %v2893_v55  ;;  %v2991_v61 = vadd.f32 %v2990_v54, %v2893_v55  ;;  %v3111_v63 = vpop.f32.mrb[157].mxu1  ;;  %v2992_v62 = vpop.f32.mrb[158].mxu0  ;;  %3199 = vmatprep.subr.bf16.mxu0 %v3034_v48 }
 0x691   :  { %v3112_v0 = vadd.f32 %v3111_v63, %v2893_v55  ;;  %v2993_v1 = vadd.f32 %v2992_v62, %v2898_v46  ;;  %v3113_v2 = vpop.f32.mrb[158].mxu1  ;;  %3271 = vmatprep.subr.bf16.mxu1 %v3155_v51  ;;  %v2994_v4 = vpop.f32.mrb[159].mxu0  ;;  %3200 = vmatpush1.bf16.msra.mxu0 %v3033_v30  ;;  %v3021_v10 = vmax.f32 %v2989_v52, 0.0 }
 0x692   :  { %v3114_v5 = vadd.f32 %v3113_v2, %v2898_v46  ;;  %v2995_v6 = vadd.f32 %v2994_v4, %v2898_v46  ;;  %v3115_v60 = vpop.f32.mrb[159].mxu1  ;;  %3272 = vmatpush1.bf16.msra.mxu1 %v3154_v47  ;;  %v3142_v18 = vmax.f32 %v3110_v56, 0.0  ;;  %v3022_v19 = vmax.f32 %v2991_v61, 0.0  ;;  %v2913_v55 = vpop.permute.xlu1 %2912 }
 0x693   :  { %v3023_v11 = vmax.f32 %v2993_v1, 0.0  ;;  %v3116_v14 = vadd.f32 %v3115_v60, %v2898_v46  ;;  %v3143_v23 = vmax.f32 %v3112_v0, 0.0 }
 0x694   :  { %v3144_v20 = vmax.f32 %v3114_v5, 0.0  ;;  %v3024_v21 = vmax.f32 %v2995_v6, 0.0 }
 0x695   :  { %v3035_v24 = vpack.c.bf16 %v3023_v11, %v3021_v10  ;;  %v3145_v25 = vmax.f32 %v3116_v14, 0.0 }
 0x696   :  { %v3156_v27 = vpack.c.bf16 %v3144_v20, %v3142_v18  ;;  %v3036_v28 = vpack.c.bf16 %v3024_v21, %v3022_v19  ;;  %v2998_v29 = vpop.f32.mrb[160].mxu0 }
 0x697   :  { %v3157_v31 = vpack.c.bf16 %v3145_v25, %v3143_v23  ;;  %v2999_v32 = vadd.f32 %v2998_v29, %v2903_v22  ;;  %v3119_v33 = vpop.f32.mrb[160].mxu1  ;;  %v3000_v34 = vpop.f32.mrb[161].mxu0  ;;  %v3561_v25 = vmov 1966171168  }
 0x698   :  { %v3120_v35 = vadd.f32 %v3119_v33, %v2903_v22  ;;  %v3001_v36 = vadd.f32 %v3000_v34, %v2903_v22  ;;  %v3121_v37 = vpop.f32.mrb[161].mxu1  ;;  %v3002_v38 = vpop.f32.mrb[162].mxu0  ;;  %3201 = vmatprep.subr.bf16.mxu0 %v3036_v28 }
 0x699   :  { %v3122_v39 = vadd.f32 %v3121_v37, %v2903_v22  ;;  %v3003_v40 = vadd.f32 %v3002_v38, %v2908_v26  ;;  %v3123_v8 = vpop.f32.mrb[162].mxu1  ;;  %3273 = vmatprep.subr.bf16.mxu1 %v3157_v31  ;;  %v3004_v9 = vpop.f32.mrb[163].mxu0  ;;  %3202 = vmatpush1.bf16.msra.mxu0 %v3035_v24  ;;  %v3025_v15 = vmax.f32 %v2999_v32, 0.0  ;;  %v3552_v24 = vld [vmem:[%s4345_s1 + $0x2a0] ss:$8 sps:$4 sm:$0xff]  }
 0x69a   :  { %v3124_v12 = vadd.f32 %v3123_v8, %v2908_v26  ;;  %v3005_v3 = vadd.f32 %v3004_v9, %v2908_v26  ;;  %v3125_v57 = vpop.f32.mrb[163].mxu1  ;;  %3274 = vmatpush1.bf16.msra.mxu1 %v3156_v27  ;;  %v3146_v58 = vmax.f32 %v3120_v35, 0.0  ;;  %v3026_v13 = vmax.f32 %v3001_v36, 0.0  ;;  %v3185_v31 = vpop.permute.xlu1 %3184 }
 0x69b   :  { %v3027_v16 = vmax.f32 %v3003_v40, 0.0  ;;  %v3126_v41 = vadd.f32 %v3125_v57, %v2908_v26  ;;  %v3147_v43 = vmax.f32 %v3122_v39, 0.0  ;;  %v3244_v26 = vunpack.c.l.s4 %v3561_v25 }
 0x69c   :  { %v3148_v50 = vmax.f32 %v3124_v12, 0.0  ;;  %v3028_v42 = vmax.f32 %v3005_v3, 0.0  ;;  %v3246_v27 = vlaneseq }
 0x69d   :  { %v3037_v7 = vpack.c.bf16 %v3027_v16, %v3025_v15  ;;  %v3149_v59 = vmax.f32 %v3126_v41, 0.0  ;;  %v3245_v28 = vunpack.c.0.s8 %v3244_v26 }
 0x69e   :  { %v3158_v44 = vpack.c.bf16 %v3148_v50, %v3146_v58  ;;  %v3038_v30 = vpack.c.bf16 %v3028_v42, %v3026_v13  ;;  %v3008_v45 = vpop.f32.mrb[164].mxu0  ;;  %v3247_v29 = vshrl.u32 %v3246_v27, 7  ;;  %vm3260_vm3 = vcmp.lt.s32.totalorder %v3246_v27, 256 }
 0x69f   :  { %v3159_v46 = vpack.c.bf16 %v3149_v59, %v3147_v43  ;;  %v3009_v47 = vadd.f32 %v3008_v45, %v2913_v55  ;;  %v3129_v48 = vpop.f32.mrb[164].mxu1  ;;  %v3010_v49 = vpop.f32.mrb[165].mxu0 }
 0x6a0   :  { %v3130_v51 = vadd.f32 %v3129_v48, %v2913_v55  ;;  %v3011_v52 = vadd.f32 %v3010_v49, %v2913_v55  ;;  %v3131_v53 = vpop.f32.mrb[165].mxu1  ;;  %v3012_v54 = vpop.f32.mrb[166].mxu0  ;;  %3203 = vmatprep.subr.bf16.mxu0 %v3038_v30  ;;  %v3248_v38 = vsub.s32 %v3245_v28, %v3247_v29 }
 0x6a1   :  { %v3132_v56 = vadd.f32 %v3131_v53, %v2913_v55  ;;  %v3013_v61 = vadd.f32 %v3012_v54, %v2918_v17  ;;  %v3133_v63 = vpop.f32.mrb[166].mxu1  ;;  %3275 = vmatprep.subr.bf16.mxu1 %v3159_v46  ;;  %v3014_v62 = vpop.f32.mrb[167].mxu0  ;;  %3204 = vmatpush1.bf16.msra.mxu0 %v3037_v7  ;;  %v3029_v4 = vmax.f32 %v3009_v47, 0.0 }
 0x6a2   :  { %v3134_v0 = vadd.f32 %v3133_v63, %v2918_v17  ;;  %v3015_v1 = vadd.f32 %v3014_v62, %v2918_v17  ;;  %v3135_v2 = vpop.f32.mrb[167].mxu1  ;;  %3276 = vmatpush1.bf16.msra.mxu1 %v3158_v44  ;;  %v3150_v60 = vmax.f32 %v3130_v51, 0.0  ;;  %v3030_v10 = vmax.f32 %v3011_v52, 0.0 }
 0x6a3   :  { %v3031_v5 = vmax.f32 %v3013_v61, 0.0  ;;  %v3136_v6 = vadd.f32 %v3135_v2, %v2918_v17  ;;  %v3151_v18 = vmax.f32 %v3132_v56, 0.0 }
 0x6a4   :  { %v3152_v11 = vmax.f32 %v3134_v0, 0.0  ;;  %v3032_v14 = vmax.f32 %v3015_v1, 0.0 }
 0x6a5   :  { %v3039_v19 = vpack.c.bf16 %v3031_v5, %v3029_v4  ;;  %v3153_v20 = vmax.f32 %v3136_v6, 0.0 }
 0x6a6   :  { %v3160_v21 = vpack.c.bf16 %v3152_v11, %v3150_v60  ;;  %v3040_v22 = vpack.c.bf16 %v3032_v14, %v3030_v10 }
 0x6a7   :  { %v3161_v23 = vpack.c.bf16 %v3153_v20, %v3151_v18 }
 0x6a8   :  { %3205 = vmatprep.subr.bf16.mxu0 %v3040_v22 }
 0x6a9   :  { %3277 = vmatprep.subr.bf16.mxu1 %v3161_v23  ;;  %3206 = vmatpush1.bf16.msra.mxu0 %v3039_v19 }
 0x6aa   :  { %3278 = vmatpush1.bf16.msra.mxu1 %v3160_v21 }
 0x6ac   :  { %3414 = vmatmul.mubr.msk.bf16.vlgmr.msra.gmra.mrb[168].mxu0 %vm857_vm2, %v3552_v24 }
 0x6ad   :  { %3415 = vmatmul.mubr.msk.bf16.vlgmr.msra.gmra.mrb[168].mxu1 %vm857_vm2, %v3552_v24 }
 0x77f   :  { %v3233_v32 = vpop.f32.mrb[168].mxu0 }
 0x780   :  { %v3305_v33 = vpop.f32.mrb[168].mxu1  ;;  %v3235_v34 = vpop.f32.mrb[169].mxu0  ;;  %v3234_v35 = vadd.f32 %v3233_v32, %v3185_v31 }
 0x781   :  { %v3307_v36 = vpop.f32.mrb[169].mxu1  ;;  %v3237_v37 = vpop.f32.mrb[170].mxu0  ;;  %v3236_v39 = vadd.f32 %v3235_v34, %v3185_v31  ;;  %v3306_v40 = vadd.f32 %v3305_v33, %v3185_v31 }
 0x782   :  { %v3309_v8 = vpop.f32.mrb[170].mxu1  ;;  %v3308_v9 = vadd.f32 %v3307_v36, %v3185_v31  ;;  %v3238_v12 = vpop.f32.mrb[171].mxu0 }
 0x783   :  { %v3242_v3 = vcombine.low %v3234_v35, %v3236_v39  ;;  %v3310_v57 = vpop.f32.mrb[171].mxu1 }
 0x784   :  { %v3314_v15 = vcombine.low %v3306_v40, %v3308_v9 }
 0x785   :  { %v3249_v16 = vrot.slane %v3242_v3, %v3248_v38 }
 0x786   :  { %v3321_v41 = vrot.slane %v3314_v15, %v3248_v38 }
 0x787   :  { %v3256_v58 = vrot.slane %v3249_v16, %v3248_v38 }
 0x788   :  { %v3328_v13 = vrot.slane %v3321_v41, %v3248_v38 }
 0x789   :  { %3262 = vst.msk [vmem:[%s4347_s3] sm:$0x3] %vm3260_vm3, %v3256_v58 }
 0x78a   :  { %3330 = vst.msk [vmem:[%s4347_s3 + $0x2] sm:$0x3] %vm3260_vm3, %v3328_v13 }

</bundles_post_ra>
